<compile_context>
chip_gen: v5e
topology: v5e:2x2
jax: 0.10.0
libtpu: 0.0.40
codegen_flags: <defaults>
</compile_context>

<pallas_src>
import numpy as np
import jax
import jax.numpy as jnp
from jax.experimental import pallas as pl
from jax.experimental.pallas import tpu as pltpu


def _round_up(x, m):
    return (x + m - 1) // m * m


def _ode_interp_kernel(dt_ref, uniq_ref, pos0_ref, pos1_ref, slope_ref,
                       x0_ref, w1_ref, b1_ref, w2_ref, b2_ref,
                       out_ref, buf_ref):
    """Full Euler solve + output interpolation in one kernel invocation.

    SMEM (scalar prefetch):
      dt_ref    : (n_steps,)  f32  per-step dt (t_grid[s+1] - t_grid[s])
      uniq_ref  : (2T,)       i32  sorted (padded) grid indices to checkpoint
      pos0_ref  : (T,)        i32  checkpoint slot of the left bracket
      pos1_ref  : (T,)        i32  checkpoint slot of the right bracket
      slope_ref : (T,)        f32  interpolation weight for the right bracket
    VMEM:
      x0/w1/b1/w2/b2 padded blocks; buf_ref (2T, Bp, Dp) checkpoint scratch.
    """
    # Hoist weight / (pre-broadcast) bias loads out of the step loop.
    w1 = w1_ref[...]
    b1 = b1_ref[...]
    w2 = w2_ref[...]
    b2 = b2_ref[...]

    def euler_step(s, y):
        # NeuralODEfunc (fast=False): fc2(tanh(fc1(y))), all f32.
        h = jnp.tanh(
            jnp.dot(y, w1, preferred_element_type=jnp.float32,
                    precision=jax.lax.Precision.HIGHEST) + b1)
        f = (jnp.dot(h, w2, preferred_element_type=jnp.float32,
                     precision=jax.lax.Precision.HIGHEST) + b2)
        return y + dt_ref[s] * f

    # Sequentially integrate up to each needed grid index (sorted, padded with
    # repeats so the trip count is static) and checkpoint the state into VMEM.
    y = x0_ref[...].astype(jnp.float32)
    prev = jnp.int32(0)
    for k in range(buf_ref.shape[0]):          # static, <= 2T iterations
        target = uniq_ref[k]
        y = jax.lax.fori_loop(prev, target, euler_step, y)
        buf_ref[k] = y
        prev = target

    # Linear interpolation onto the requested times (torchdiffeq fixed-grid
    # Euler output selection); T is small and static -> unrolled.
    for j in range(out_ref.shape[0]):
        ya = buf_ref[pos0_ref[j]]
        yb = buf_ref[pos1_ref[j]]
        out_ref[j] = ya + slope_ref[j] * (yb - ya)


def neural_ode_solve(x0, w1, b1, w2, b2, step_dt, uniq, pos0, pos1, slope):
    """Euler-integrates y' = fc2(tanh(fc1(y))) and returns (T, B, D) float32."""
    B, D = x0.shape
    H = w1.shape[1]
    T = int(pos0.shape[0])
    n_save = int(uniq.shape[0])

    # Pad to hardware tiles: batch -> sublane multiple of 8, features/hidden ->
    # lane multiple of 128.  Zero padding keeps the valid region exact.
    Bp = _round_up(max(B, 8), 8)
    Dp = _round_up(D, 128)
    Hp = _round_up(H, 128)

    x0p = jnp.zeros((Bp, Dp), jnp.float32).at[:B, :D].set(x0)
    w1p = jnp.zeros((Dp, Hp), jnp.float32).at[:D, :H].set(w1)
    w2p = jnp.zeros((Hp, Dp), jnp.float32).at[:H, :D].set(w2)
    b1p = jnp.zeros((Bp, Hp), jnp.float32).at[:, :H].set(jnp.broadcast_to(b1, (Bp, H)))
    b2p = jnp.zeros((Bp, Dp), jnp.float32).at[:, :D].set(jnp.broadcast_to(b2, (Bp, D)))

    grid_spec = pltpu.PrefetchScalarGridSpec(
        num_scalar_prefetch=5,                 # step_dt, uniq, pos0, pos1, slope -> SMEM
        grid=(1,),                             # whole solve in one invocation
        in_specs=[
            pl.BlockSpec((Bp, Dp), lambda i, *_: (0, 0)),   # x0 (padded)
            pl.BlockSpec((Dp, Hp), lambda i, *_: (0, 0)),   # W1 (in, out)
            pl.BlockSpec((Bp, Hp), lambda i, *_: (0, 0)),   # b1 (pre-broadcast)
            pl.BlockSpec((Hp, Dp), lambda i, *_: (0, 0)),   # W2 (in, out)
            pl.BlockSpec((Bp, Dp), lambda i, *_: (0, 0)),   # b2 (pre-broadcast)
        ],
        out_specs=pl.BlockSpec((T, Bp, Dp), lambda i, *_: (0, 0, 0)),
        scratch_shapes=[pltpu.VMEM((n_save, Bp, Dp), jnp.float32)],
    )

    out = pl.pallas_call(
        _ode_interp_kernel,
        out_shape=jax.ShapeDtypeStruct((T, Bp, Dp), jnp.float32),
        grid_spec=grid_spec,
        compiler_params=pltpu.CompilerParams(
            dimension_semantics=("arbitrary",)),   # time integration is sequential
    )(step_dt, uniq, pos0, pos1, slope, x0p, w1p, b1p, w2p, b2p)

    return out[:, :B, :D]                      # strip padding -> (T, B, D)


class NeuralODEPallas:
    """JAX/Pallas port of NeuralODE(in_channels, feature_dim, nhidden, fast=False)."""

    def __init__(self, in_channels, feature_dim, nhidden=64, key=None):
        D = in_channels * feature_dim
        k1, k2, k3, k4 = jax.random.split(key, 4)
        bnd1 = 1.0 / float(np.sqrt(D))
        bnd2 = 1.0 / float(np.sqrt(nhidden))
        # deterministic synthetic params (PyTorch Linear default init ranges);
        # weights stored transposed w.r.t. PyTorch, i.e. (in, out).
        self.w1 = jax.random.uniform(k1, (D, nhidden), jnp.float32, -bnd1, bnd1)
        self.b1 = jax.random.uniform(k2, (1, nhidden), jnp.float32, -bnd1, bnd1)
        self.w2 = jax.random.uniform(k3, (nhidden, D), jnp.float32, -bnd2, bnd2)
        self.b2 = jax.random.uniform(k4, (1, D), jnp.float32, -bnd2, bnd2)

    @staticmethod
    def _time_grid(t, dt):
        # torchdiffeq fixed-grid construction for step_size=dt
        t = np.asarray(t, dtype=np.float32)
        start, end = float(t[0]), float(t[-1])
        niters = int(np.ceil((end - start) / dt + 1))
        t_grid = np.arange(niters, dtype=np.float32) * np.float32(dt) + np.float32(start)
        t_grid[-1] = end
        return t, t_grid

    @staticmethod
    def _interp_plan(t, t_grid):
        """torchdiffeq output selection as bracketing grid indices + slopes."""
        T = int(t.shape[0])
        idx0 = np.zeros((T,), np.int64)
        idx1 = np.zeros((T,), np.int64)
        slope = np.zeros((T,), np.float32)
        # j = 0: solution at the first grid point is y0 itself (indices stay 0).
        for j in range(1, T):
            s = int(np.searchsorted(t_grid[1:], t[j], side="left"))
            t0, t1 = float(t_grid[s]), float(t_grid[s + 1])
            if float(t[j]) == t0:
                idx0[j] = idx1[j] = s
            elif float(t[j]) == t1:
                idx0[j] = idx1[j] = s + 1
            else:
                idx0[j], idx1[j] = s, s + 1
                slope[j] = (float(t[j]) - t0) / (t1 - t0)
        uniq = np.unique(np.concatenate([idx0, idx1]))
        lut = {int(g): k for k, g in enumerate(uniq)}
        pos0 = np.array([lut[int(g)] for g in idx0], np.int32)
        pos1 = np.array([lut[int(g)] for g in idx1], np.int32)
        uniq_pad = np.full((2 * T,), uniq[-1], np.int32)   # pad -> static shape
        uniq_pad[:uniq.shape[0]] = uniq
        return uniq_pad, pos0, pos1, slope

    def __call__(self, x0, t, dt=0.001, background=None):
        # TODO(synk): fast=True path (uses `background`) not implemented.
        t, t_grid = self._time_grid(t, dt)
        n_grid = int(t_grid.shape[0])
        step_dt = np.zeros((max(1, n_grid - 1),), np.float32)
        if n_grid > 1:
            step_dt[:n_grid - 1] = t_grid[1:] - t_grid[:-1]
        uniq, pos0, pos1, slope = self._interp_plan(t, t_grid)

        out = neural_ode_solve(
            x0, self.w1, self.b1, self.w2, self.b2,
            jnp.asarray(step_dt), jnp.asarray(uniq), jnp.asarray(pos0),
            jnp.asarray(pos1), jnp.asarray(slope))          # (T, B, D)
        return jnp.transpose(out, (1, 0, 2))                # .permute(1, 0, 2) -> (B, T, D)


def _reference(x0, w1, b1, w2, b2, t, dt):
    """Pure-numpy reference of the same fixed-grid Euler solve."""
    x0 = np.asarray(x0, np.float32)
    w1, b1 = np.asarray(w1, np.float32), np.asarray(b1, np.float32)
    w2, b2 = np.asarray(w2, np.float32), np.asarray(b2, np.float32)

    def f(y):
        return np.tanh(y @ w1 + b1) @ w2 + b2

    t, t_grid = NeuralODEPallas._time_grid(t, dt)
    ys = [x0]
    y = x0
    for s in range(1, t_grid.shape[0]):
        y = y + (t_grid[s] - t_grid[s - 1]) * f(y)
        ys.append(y)
    sols = [ys[0]]
    for j in range(1, t.shape[0]):
        s = int(np.searchsorted(t_grid[1:], t[j], side="left"))
        t0, t1 = float(t_grid[s]), float(t_grid[s + 1])
        if float(t[j]) == t0:
            sols.append(ys[s])
        elif float(t[j]) == t1:
            sols.append(ys[s + 1])
        else:
            slope = (float(t[j]) - t0) / (t1 - t0)
            sols.append(ys[s] + slope * (ys[s + 1] - ys[s]))
    return np.transpose(np.stack(sols, 0), (1, 0, 2))


if __name__ == "__main__":
    key = jax.random.PRNGKey(0)
    kx, kp = jax.random.split(key)

    in_channels, feature_dim, nhidden = 4, 16, 64
    B = 2
    D = in_channels * feature_dim             # 64

    x0 = jax.random.normal(kx, (B, D), jnp.float32)
    t = np.array([0.0, 0.25, 0.5, 1.0], dtype=np.float32)
    dt = 0.01                                 # -> 101-point grid, 100 Euler steps

    model = NeuralODEPallas(in_channels, feature_dim, nhidden, key=kp)
    out = model(x0, t, dt=dt)
    out = jax.block_until_ready(out)

    assert out.shape == (B, t.shape[0], D), out.shape
    ref = _reference(x0, model.w1, model.b1, model.w2, model.b2, t, dt)
    np.testing.assert_allclose(np.asarray(out), ref, rtol=1e-4, atol=1e-4)

    print("KERNEL_OK")
</pallas_src>

<mosaic_0001>
module attributes {stable_mosaic.version = 11 : i64} {
  func.func @_ode_interp_kernel(%arg0: i32, %arg1: memref<100xf32, #tpu.memory_space<smem>>, %arg2: memref<8xi32, #tpu.memory_space<smem>>, %arg3: memref<4xi32, #tpu.memory_space<smem>>, %arg4: memref<4xi32, #tpu.memory_space<smem>>, %arg5: memref<4xf32, #tpu.memory_space<smem>>, %arg6: memref<8x128xf32, #tpu.memory_space<vmem>>, %arg7: memref<128x128xf32, #tpu.memory_space<vmem>>, %arg8: memref<8x128xf32, #tpu.memory_space<vmem>>, %arg9: memref<128x128xf32, #tpu.memory_space<vmem>>, %arg10: memref<8x128xf32, #tpu.memory_space<vmem>>, %arg11: memref<4x8x128xf32, #tpu.memory_space<vmem>>, %arg12: memref<8x8x128xf32, #tpu.memory_space<vmem>>) attributes {dimension_semantics = [#tpu.dimension_semantics<arbitrary>], iteration_bounds = array<i64: 1>, scalar_prefetch = 5 : i64, scratch_operands = 1 : i64, tpu.core_type = #tpu.core_type<tc>, window_params = [{pipeline_mode = #tpu.pipeline_mode<synchronous>, transform_indices = @transform_0, window_bounds = array<i64: 8, 128>}, {pipeline_mode = #tpu.pipeline_mode<synchronous>, transform_indices = @transform_1, window_bounds = array<i64: 128, 128>}, {pipeline_mode = #tpu.pipeline_mode<synchronous>, transform_indices = @transform_2, window_bounds = array<i64: 8, 128>}, {pipeline_mode = #tpu.pipeline_mode<synchronous>, transform_indices = @transform_3, window_bounds = array<i64: 128, 128>}, {pipeline_mode = #tpu.pipeline_mode<synchronous>, transform_indices = @transform_4, window_bounds = array<i64: 8, 128>}, {pipeline_mode = #tpu.pipeline_mode<synchronous>, transform_indices = @transform_5, window_bounds = array<i64: 4, 8, 128>}]} {
    %c0 = arith.constant 0 : index
    %c0_0 = arith.constant 0 : index
    %0 = vector.load %arg7[%c0, %c0_0] : memref<128x128xf32, #tpu.memory_space<vmem>>, vector<128x128xf32>
    %c0_1 = arith.constant 0 : index
    %c0_2 = arith.constant 0 : index
    %1 = vector.load %arg8[%c0_1, %c0_2] : memref<8x128xf32, #tpu.memory_space<vmem>>, vector<8x128xf32>
    %c0_3 = arith.constant 0 : index
    %c0_4 = arith.constant 0 : index
    %2 = vector.load %arg9[%c0_3, %c0_4] : memref<128x128xf32, #tpu.memory_space<vmem>>, vector<128x128xf32>
    %c0_5 = arith.constant 0 : index
    %c0_6 = arith.constant 0 : index
    %3 = vector.load %arg10[%c0_5, %c0_6] : memref<8x128xf32, #tpu.memory_space<vmem>>, vector<8x128xf32>
    %c0_7 = arith.constant 0 : index
    %c0_8 = arith.constant 0 : index
    %4 = vector.load %arg6[%c0_7, %c0_8] : memref<8x128xf32, #tpu.memory_space<vmem>>, vector<8x128xf32>
    %c0_9 = arith.constant 0 : index
    %5 = memref.load %arg2[%c0_9] : memref<8xi32, #tpu.memory_space<smem>>
    %c0_i32 = arith.constant 0 : i32
    %6 = arith.subi %5, %c0_i32 : i32
    %7 = arith.addi %c0_i32, %6 : i32
    %c1_i32 = arith.constant 1 : i32
    %8 = scf.for %arg13 = %c0_i32 to %7 step %c1_i32 iter_args(%arg14 = %4) -> (vector<8x128xf32>)  : i32 {
      %cst = arith.constant dense<0.000000e+00> : vector<8x128xf32>
      %125 = tpu.matmul %arg14, %0, %cst {dimension_numbers = #tpu.dot_dimension_numbers<[1], [0], [0], [1], [0, 0, 1, 1], [], []>, precision = #tpu.contract_precision<fp32>} : vector<8x128xf32>, vector<128x128xf32>, vector<8x128xf32> -> vector<8x128xf32>
      %126 = arith.addf %125, %1 : vector<8x128xf32>
      %127 = math.tanh %126 : vector<8x128xf32>
      %cst_81 = arith.constant dense<0.000000e+00> : vector<8x128xf32>
      %128 = tpu.matmul %127, %2, %cst_81 {dimension_numbers = #tpu.dot_dimension_numbers<[1], [0], [0], [1], [0, 0, 1, 1], [], []>, precision = #tpu.contract_precision<fp32>} : vector<8x128xf32>, vector<128x128xf32>, vector<8x128xf32> -> vector<8x128xf32>
      %129 = arith.addf %128, %3 : vector<8x128xf32>
      %130 = arith.index_cast %arg13 : i32 to index
      %131 = memref.load %arg1[%130] : memref<100xf32, #tpu.memory_space<smem>>
      %132 = vector.broadcast %131 : f32 to vector<8x128xf32>
      %133 = arith.mulf %132, %129 : vector<8x128xf32>
      %134 = arith.addf %arg14, %133 : vector<8x128xf32>
      scf.yield %134 : vector<8x128xf32>
    }
    %c0_10 = arith.constant 0 : index
    %c0_11 = arith.constant 0 : index
    %c0_12 = arith.constant 0 : index
    %9 = vector.load %arg12[%c0_10, %c0_11, %c0_12] : memref<8x8x128xf32, #tpu.memory_space<vmem>>, vector<1x8x128xf32>
    %10 = vector.shape_cast %9 : vector<1x8x128xf32> to vector<8x128xf32>
    %11 = vector.shape_cast %8 : vector<8x128xf32> to vector<1x8x128xf32>
    tpu.vector_store %arg12[%c0_10, %c0_11, %c0_12], %11 {strides = array<i32>} : memref<8x8x128xf32, #tpu.memory_space<vmem>>, vector<1x8x128xf32>,
    %c1 = arith.constant 1 : index
    %12 = memref.load %arg2[%c1] : memref<8xi32, #tpu.memory_space<smem>>
    %13 = arith.subi %12, %5 : i32
    %14 = arith.addi %5, %13 : i32
    %c1_i32_13 = arith.constant 1 : i32
    %15 = scf.for %arg13 = %5 to %14 step %c1_i32_13 iter_args(%arg14 = %8) -> (vector<8x128xf32>)  : i32 {
      %cst = arith.constant dense<0.000000e+00> : vector<8x128xf32>
      %125 = tpu.matmul %arg14, %0, %cst {dimension_numbers = #tpu.dot_dimension_numbers<[1], [0], [0], [1], [0, 0, 1, 1], [], []>, precision = #tpu.contract_precision<fp32>} : vector<8x128xf32>, vector<128x128xf32>, vector<8x128xf32> -> vector<8x128xf32>
      %126 = arith.addf %125, %1 : vector<8x128xf32>
      %127 = math.tanh %126 : vector<8x128xf32>
      %cst_81 = arith.constant dense<0.000000e+00> : vector<8x128xf32>
      %128 = tpu.matmul %127, %2, %cst_81 {dimension_numbers = #tpu.dot_dimension_numbers<[1], [0], [0], [1], [0, 0, 1, 1], [], []>, precision = #tpu.contract_precision<fp32>} : vector<8x128xf32>, vector<128x128xf32>, vector<8x128xf32> -> vector<8x128xf32>
      %129 = arith.addf %128, %3 : vector<8x128xf32>
      %130 = arith.index_cast %arg13 : i32 to index
      %131 = memref.load %arg1[%130] : memref<100xf32, #tpu.memory_space<smem>>
      %132 = vector.broadcast %131 : f32 to vector<8x128xf32>
      %133 = arith.mulf %132, %129 : vector<8x128xf32>
      %134 = arith.addf %arg14, %133 : vector<8x128xf32>
      scf.yield %134 : vector<8x128xf32>
    }
    %c1_14 = arith.constant 1 : index
    %c0_15 = arith.constant 0 : index
    %c0_16 = arith.constant 0 : index
    %16 = vector.load %arg12[%c1_14, %c0_15, %c0_16] : memref<8x8x128xf32, #tpu.memory_space<vmem>>, vector<1x8x128xf32>
    %17 = vector.shape_cast %16 : vector<1x8x128xf32> to vector<8x128xf32>
    %18 = vector.shape_cast %15 : vector<8x128xf32> to vector<1x8x128xf32>
    tpu.vector_store %arg12[%c1_14, %c0_15, %c0_16], %18 {strides = array<i32>} : memref<8x8x128xf32, #tpu.memory_space<vmem>>, vector<1x8x128xf32>,
    %c2 = arith.constant 2 : index
    %19 = memref.load %arg2[%c2] : memref<8xi32, #tpu.memory_space<smem>>
    %20 = arith.subi %19, %12 : i32
    %21 = arith.addi %12, %20 : i32
    %c1_i32_17 = arith.constant 1 : i32
    %22 = scf.for %arg13 = %12 to %21 step %c1_i32_17 iter_args(%arg14 = %15) -> (vector<8x128xf32>)  : i32 {
      %cst = arith.constant dense<0.000000e+00> : vector<8x128xf32>
      %125 = tpu.matmul %arg14, %0, %cst {dimension_numbers = #tpu.dot_dimension_numbers<[1], [0], [0], [1], [0, 0, 1, 1], [], []>, precision = #tpu.contract_precision<fp32>} : vector<8x128xf32>, vector<128x128xf32>, vector<8x128xf32> -> vector<8x128xf32>
      %126 = arith.addf %125, %1 : vector<8x128xf32>
      %127 = math.tanh %126 : vector<8x128xf32>
      %cst_81 = arith.constant dense<0.000000e+00> : vector<8x128xf32>
      %128 = tpu.matmul %127, %2, %cst_81 {dimension_numbers = #tpu.dot_dimension_numbers<[1], [0], [0], [1], [0, 0, 1, 1], [], []>, precision = #tpu.contract_precision<fp32>} : vector<8x128xf32>, vector<128x128xf32>, vector<8x128xf32> -> vector<8x128xf32>
      %129 = arith.addf %128, %3 : vector<8x128xf32>
      %130 = arith.index_cast %arg13 : i32 to index
      %131 = memref.load %arg1[%130] : memref<100xf32, #tpu.memory_space<smem>>
      %132 = vector.broadcast %131 : f32 to vector<8x128xf32>
      %133 = arith.mulf %132, %129 : vector<8x128xf32>
      %134 = arith.addf %arg14, %133 : vector<8x128xf32>
      scf.yield %134 : vector<8x128xf32>
    }
    %c2_18 = arith.constant 2 : index
    %c0_19 = arith.constant 0 : index
    %c0_20 = arith.constant 0 : index
    %23 = vector.load %arg12[%c2_18, %c0_19, %c0_20] : memref<8x8x128xf32, #tpu.memory_space<vmem>>, vector<1x8x128xf32>
    %24 = vector.shape_cast %23 : vector<1x8x128xf32> to vector<8x128xf32>
    %25 = vector.shape_cast %22 : vector<8x128xf32> to vector<1x8x128xf32>
    tpu.vector_store %arg12[%c2_18, %c0_19, %c0_20], %25 {strides = array<i32>} : memref<8x8x128xf32, #tpu.memory_space<vmem>>, vector<1x8x128xf32>,
    %c3 = arith.constant 3 : index
    %26 = memref.load %arg2[%c3] : memref<8xi32, #tpu.memory_space<smem>>
    %27 = arith.subi %26, %19 : i32
    %28 = arith.addi %19, %27 : i32
    %c1_i32_21 = arith.constant 1 : i32
    %29 = scf.for %arg13 = %19 to %28 step %c1_i32_21 iter_args(%arg14 = %22) -> (vector<8x128xf32>)  : i32 {
      %cst = arith.constant dense<0.000000e+00> : vector<8x128xf32>
      %125 = tpu.matmul %arg14, %0, %cst {dimension_numbers = #tpu.dot_dimension_numbers<[1], [0], [0], [1], [0, 0, 1, 1], [], []>, precision = #tpu.contract_precision<fp32>} : vector<8x128xf32>, vector<128x128xf32>, vector<8x128xf32> -> vector<8x128xf32>
      %126 = arith.addf %125, %1 : vector<8x128xf32>
      %127 = math.tanh %126 : vector<8x128xf32>
      %cst_81 = arith.constant dense<0.000000e+00> : vector<8x128xf32>
      %128 = tpu.matmul %127, %2, %cst_81 {dimension_numbers = #tpu.dot_dimension_numbers<[1], [0], [0], [1], [0, 0, 1, 1], [], []>, precision = #tpu.contract_precision<fp32>} : vector<8x128xf32>, vector<128x128xf32>, vector<8x128xf32> -> vector<8x128xf32>
      %129 = arith.addf %128, %3 : vector<8x128xf32>
      %130 = arith.index_cast %arg13 : i32 to index
      %131 = memref.load %arg1[%130] : memref<100xf32, #tpu.memory_space<smem>>
      %132 = vector.broadcast %131 : f32 to vector<8x128xf32>
      %133 = arith.mulf %132, %129 : vector<8x128xf32>
      %134 = arith.addf %arg14, %133 : vector<8x128xf32>
      scf.yield %134 : vector<8x128xf32>
    }
    %c3_22 = arith.constant 3 : index
    %c0_23 = arith.constant 0 : index
    %c0_24 = arith.constant 0 : index
    %30 = vector.load %arg12[%c3_22, %c0_23, %c0_24] : memref<8x8x128xf32, #tpu.memory_space<vmem>>, vector<1x8x128xf32>
    %31 = vector.shape_cast %30 : vector<1x8x128xf32> to vector<8x128xf32>
    %32 = vector.shape_cast %29 : vector<8x128xf32> to vector<1x8x128xf32>
    tpu.vector_store %arg12[%c3_22, %c0_23, %c0_24], %32 {strides = array<i32>} : memref<8x8x128xf32, #tpu.memory_space<vmem>>, vector<1x8x128xf32>,
    %c4 = arith.constant 4 : index
    %33 = memref.load %arg2[%c4] : memref<8xi32, #tpu.memory_space<smem>>
    %34 = arith.subi %33, %26 : i32
    %35 = arith.addi %26, %34 : i32
    %c1_i32_25 = arith.constant 1 : i32
    %36 = scf.for %arg13 = %26 to %35 step %c1_i32_25 iter_args(%arg14 = %29) -> (vector<8x128xf32>)  : i32 {
      %cst = arith.constant dense<0.000000e+00> : vector<8x128xf32>
      %125 = tpu.matmul %arg14, %0, %cst {dimension_numbers = #tpu.dot_dimension_numbers<[1], [0], [0], [1], [0, 0, 1, 1], [], []>, precision = #tpu.contract_precision<fp32>} : vector<8x128xf32>, vector<128x128xf32>, vector<8x128xf32> -> vector<8x128xf32>
      %126 = arith.addf %125, %1 : vector<8x128xf32>
      %127 = math.tanh %126 : vector<8x128xf32>
      %cst_81 = arith.constant dense<0.000000e+00> : vector<8x128xf32>
      %128 = tpu.matmul %127, %2, %cst_81 {dimension_numbers = #tpu.dot_dimension_numbers<[1], [0], [0], [1], [0, 0, 1, 1], [], []>, precision = #tpu.contract_precision<fp32>} : vector<8x128xf32>, vector<128x128xf32>, vector<8x128xf32> -> vector<8x128xf32>
      %129 = arith.addf %128, %3 : vector<8x128xf32>
      %130 = arith.index_cast %arg13 : i32 to index
      %131 = memref.load %arg1[%130] : memref<100xf32, #tpu.memory_space<smem>>
      %132 = vector.broadcast %131 : f32 to vector<8x128xf32>
      %133 = arith.mulf %132, %129 : vector<8x128xf32>
      %134 = arith.addf %arg14, %133 : vector<8x128xf32>
      scf.yield %134 : vector<8x128xf32>
    }
    %c4_26 = arith.constant 4 : index
    %c0_27 = arith.constant 0 : index
    %c0_28 = arith.constant 0 : index
    %37 = vector.load %arg12[%c4_26, %c0_27, %c0_28] : memref<8x8x128xf32, #tpu.memory_space<vmem>>, vector<1x8x128xf32>
    %38 = vector.shape_cast %37 : vector<1x8x128xf32> to vector<8x128xf32>
    %39 = vector.shape_cast %36 : vector<8x128xf32> to vector<1x8x128xf32>
    tpu.vector_store %arg12[%c4_26, %c0_27, %c0_28], %39 {strides = array<i32>} : memref<8x8x128xf32, #tpu.memory_space<vmem>>, vector<1x8x128xf32>,
    %c5 = arith.constant 5 : index
    %40 = memref.load %arg2[%c5] : memref<8xi32, #tpu.memory_space<smem>>
    %41 = arith.subi %40, %33 : i32
    %42 = arith.addi %33, %41 : i32
    %c1_i32_29 = arith.constant 1 : i32
    %43 = scf.for %arg13 = %33 to %42 step %c1_i32_29 iter_args(%arg14 = %36) -> (vector<8x128xf32>)  : i32 {
      %cst = arith.constant dense<0.000000e+00> : vector<8x128xf32>
      %125 = tpu.matmul %arg14, %0, %cst {dimension_numbers = #tpu.dot_dimension_numbers<[1], [0], [0], [1], [0, 0, 1, 1], [], []>, precision = #tpu.contract_precision<fp32>} : vector<8x128xf32>, vector<128x128xf32>, vector<8x128xf32> -> vector<8x128xf32>
      %126 = arith.addf %125, %1 : vector<8x128xf32>
      %127 = math.tanh %126 : vector<8x128xf32>
      %cst_81 = arith.constant dense<0.000000e+00> : vector<8x128xf32>
      %128 = tpu.matmul %127, %2, %cst_81 {dimension_numbers = #tpu.dot_dimension_numbers<[1], [0], [0], [1], [0, 0, 1, 1], [], []>, precision = #tpu.contract_precision<fp32>} : vector<8x128xf32>, vector<128x128xf32>, vector<8x128xf32> -> vector<8x128xf32>
      %129 = arith.addf %128, %3 : vector<8x128xf32>
      %130 = arith.index_cast %arg13 : i32 to index
      %131 = memref.load %arg1[%130] : memref<100xf32, #tpu.memory_space<smem>>
      %132 = vector.broadcast %131 : f32 to vector<8x128xf32>
      %133 = arith.mulf %132, %129 : vector<8x128xf32>
      %134 = arith.addf %arg14, %133 : vector<8x128xf32>
      scf.yield %134 : vector<8x128xf32>
    }
    %c5_30 = arith.constant 5 : index
    %c0_31 = arith.constant 0 : index
    %c0_32 = arith.constant 0 : index
    %44 = vector.load %arg12[%c5_30, %c0_31, %c0_32] : memref<8x8x128xf32, #tpu.memory_space<vmem>>, vector<1x8x128xf32>
    %45 = vector.shape_cast %44 : vector<1x8x128xf32> to vector<8x128xf32>
    %46 = vector.shape_cast %43 : vector<8x128xf32> to vector<1x8x128xf32>
    tpu.vector_store %arg12[%c5_30, %c0_31, %c0_32], %46 {strides = array<i32>} : memref<8x8x128xf32, #tpu.memory_space<vmem>>, vector<1x8x128xf32>,
    %c6 = arith.constant 6 : index
    %47 = memref.load %arg2[%c6] : memref<8xi32, #tpu.memory_space<smem>>
    %48 = arith.subi %47, %40 : i32
    %49 = arith.addi %40, %48 : i32
    %c1_i32_33 = arith.constant 1 : i32
    %50 = scf.for %arg13 = %40 to %49 step %c1_i32_33 iter_args(%arg14 = %43) -> (vector<8x128xf32>)  : i32 {
      %cst = arith.constant dense<0.000000e+00> : vector<8x128xf32>
      %125 = tpu.matmul %arg14, %0, %cst {dimension_numbers = #tpu.dot_dimension_numbers<[1], [0], [0], [1], [0, 0, 1, 1], [], []>, precision = #tpu.contract_precision<fp32>} : vector<8x128xf32>, vector<128x128xf32>, vector<8x128xf32> -> vector<8x128xf32>
      %126 = arith.addf %125, %1 : vector<8x128xf32>
      %127 = math.tanh %126 : vector<8x128xf32>
      %cst_81 = arith.constant dense<0.000000e+00> : vector<8x128xf32>
      %128 = tpu.matmul %127, %2, %cst_81 {dimension_numbers = #tpu.dot_dimension_numbers<[1], [0], [0], [1], [0, 0, 1, 1], [], []>, precision = #tpu.contract_precision<fp32>} : vector<8x128xf32>, vector<128x128xf32>, vector<8x128xf32> -> vector<8x128xf32>
      %129 = arith.addf %128, %3 : vector<8x128xf32>
      %130 = arith.index_cast %arg13 : i32 to index
      %131 = memref.load %arg1[%130] : memref<100xf32, #tpu.memory_space<smem>>
      %132 = vector.broadcast %131 : f32 to vector<8x128xf32>
      %133 = arith.mulf %132, %129 : vector<8x128xf32>
      %134 = arith.addf %arg14, %133 : vector<8x128xf32>
      scf.yield %134 : vector<8x128xf32>
    }
    %c6_34 = arith.constant 6 : index
    %c0_35 = arith.constant 0 : index
    %c0_36 = arith.constant 0 : index
    %51 = vector.load %arg12[%c6_34, %c0_35, %c0_36] : memref<8x8x128xf32, #tpu.memory_space<vmem>>, vector<1x8x128xf32>
    %52 = vector.shape_cast %51 : vector<1x8x128xf32> to vector<8x128xf32>
    %53 = vector.shape_cast %50 : vector<8x128xf32> to vector<1x8x128xf32>
    tpu.vector_store %arg12[%c6_34, %c0_35, %c0_36], %53 {strides = array<i32>} : memref<8x8x128xf32, #tpu.memory_space<vmem>>, vector<1x8x128xf32>,
    %c7 = arith.constant 7 : index
    %54 = memref.load %arg2[%c7] : memref<8xi32, #tpu.memory_space<smem>>
    %55 = arith.subi %54, %47 : i32
    %56 = arith.addi %47, %55 : i32
    %c1_i32_37 = arith.constant 1 : i32
    %57 = scf.for %arg13 = %47 to %56 step %c1_i32_37 iter_args(%arg14 = %50) -> (vector<8x128xf32>)  : i32 {
      %cst = arith.constant dense<0.000000e+00> : vector<8x128xf32>
      %125 = tpu.matmul %arg14, %0, %cst {dimension_numbers = #tpu.dot_dimension_numbers<[1], [0], [0], [1], [0, 0, 1, 1], [], []>, precision = #tpu.contract_precision<fp32>} : vector<8x128xf32>, vector<128x128xf32>, vector<8x128xf32> -> vector<8x128xf32>
      %126 = arith.addf %125, %1 : vector<8x128xf32>
      %127 = math.tanh %126 : vector<8x128xf32>
      %cst_81 = arith.constant dense<0.000000e+00> : vector<8x128xf32>
      %128 = tpu.matmul %127, %2, %cst_81 {dimension_numbers = #tpu.dot_dimension_numbers<[1], [0], [0], [1], [0, 0, 1, 1], [], []>, precision = #tpu.contract_precision<fp32>} : vector<8x128xf32>, vector<128x128xf32>, vector<8x128xf32> -> vector<8x128xf32>
      %129 = arith.addf %128, %3 : vector<8x128xf32>
      %130 = arith.index_cast %arg13 : i32 to index
      %131 = memref.load %arg1[%130] : memref<100xf32, #tpu.memory_space<smem>>
      %132 = vector.broadcast %131 : f32 to vector<8x128xf32>
      %133 = arith.mulf %132, %129 : vector<8x128xf32>
      %134 = arith.addf %arg14, %133 : vector<8x128xf32>
      scf.yield %134 : vector<8x128xf32>
    }
    %c7_38 = arith.constant 7 : index
    %c0_39 = arith.constant 0 : index
    %c0_40 = arith.constant 0 : index
    %58 = vector.load %arg12[%c7_38, %c0_39, %c0_40] : memref<8x8x128xf32, #tpu.memory_space<vmem>>, vector<1x8x128xf32>
    %59 = vector.shape_cast %58 : vector<1x8x128xf32> to vector<8x128xf32>
    %60 = vector.shape_cast %57 : vector<8x128xf32> to vector<1x8x128xf32>
    tpu.vector_store %arg12[%c7_38, %c0_39, %c0_40], %60 {strides = array<i32>} : memref<8x8x128xf32, #tpu.memory_space<vmem>>, vector<1x8x128xf32>,
    %c0_41 = arith.constant 0 : index
    %61 = memref.load %arg3[%c0_41] : memref<4xi32, #tpu.memory_space<smem>>
    %62 = arith.index_cast %61 : i32 to index
    %c0_42 = arith.constant 0 : index
    %c0_43 = arith.constant 0 : index
    %63 = vector.load %arg12[%62, %c0_42, %c0_43] : memref<8x8x128xf32, #tpu.memory_space<vmem>>, vector<1x8x128xf32>
    %64 = vector.shape_cast %63 : vector<1x8x128xf32> to vector<8x128xf32>
    %c0_44 = arith.constant 0 : index
    %65 = memref.load %arg4[%c0_44] : memref<4xi32, #tpu.memory_space<smem>>
    %66 = arith.index_cast %65 : i32 to index
    %c0_45 = arith.constant 0 : index
    %c0_46 = arith.constant 0 : index
    %67 = vector.load %arg12[%66, %c0_45, %c0_46] : memref<8x8x128xf32, #tpu.memory_space<vmem>>, vector<1x8x128xf32>
    %68 = vector.shape_cast %67 : vector<1x8x128xf32> to vector<8x128xf32>
    %c0_47 = arith.constant 0 : index
    %69 = memref.load %arg5[%c0_47] : memref<4xf32, #tpu.memory_space<smem>>
    %70 = arith.subf %68, %64 : vector<8x128xf32>
    %71 = vector.broadcast %69 : f32 to vector<8x128xf32>
    %72 = arith.mulf %71, %70 : vector<8x128xf32>
    %73 = arith.addf %64, %72 : vector<8x128xf32>
    %c0_48 = arith.constant 0 : index
    %c0_49 = arith.constant 0 : index
    %c0_50 = arith.constant 0 : index
    %74 = vector.load %arg11[%c0_48, %c0_49, %c0_50] : memref<4x8x128xf32, #tpu.memory_space<vmem>>, vector<1x8x128xf32>
    %75 = vector.shape_cast %74 : vector<1x8x128xf32> to vector<8x128xf32>
    %76 = vector.shape_cast %73 : vector<8x128xf32> to vector<1x8x128xf32>
    tpu.vector_store %arg11[%c0_48, %c0_49, %c0_50], %76 {strides = array<i32>} : memref<4x8x128xf32, #tpu.memory_space<vmem>>, vector<1x8x128xf32>,
    %c1_51 = arith.constant 1 : index
    %77 = memref.load %arg3[%c1_51] : memref<4xi32, #tpu.memory_space<smem>>
    %78 = arith.index_cast %77 : i32 to index
    %c0_52 = arith.constant 0 : index
    %c0_53 = arith.constant 0 : index
    %79 = vector.load %arg12[%78, %c0_52, %c0_53] : memref<8x8x128xf32, #tpu.memory_space<vmem>>, vector<1x8x128xf32>
    %80 = vector.shape_cast %79 : vector<1x8x128xf32> to vector<8x128xf32>
    %c1_54 = arith.constant 1 : index
    %81 = memref.load %arg4[%c1_54] : memref<4xi32, #tpu.memory_space<smem>>
    %82 = arith.index_cast %81 : i32 to index
    %c0_55 = arith.constant 0 : index
    %c0_56 = arith.constant 0 : index
    %83 = vector.load %arg12[%82, %c0_55, %c0_56] : memref<8x8x128xf32, #tpu.memory_space<vmem>>, vector<1x8x128xf32>
    %84 = vector.shape_cast %83 : vector<1x8x128xf32> to vector<8x128xf32>
    %c1_57 = arith.constant 1 : index
    %85 = memref.load %arg5[%c1_57] : memref<4xf32, #tpu.memory_space<smem>>
    %86 = arith.subf %84, %80 : vector<8x128xf32>
    %87 = vector.broadcast %85 : f32 to vector<8x128xf32>
    %88 = arith.mulf %87, %86 : vector<8x128xf32>
    %89 = arith.addf %80, %88 : vector<8x128xf32>
    %c1_58 = arith.constant 1 : index
    %c0_59 = arith.constant 0 : index
    %c0_60 = arith.constant 0 : index
    %90 = vector.load %arg11[%c1_58, %c0_59, %c0_60] : memref<4x8x128xf32, #tpu.memory_space<vmem>>, vector<1x8x128xf32>
    %91 = vector.shape_cast %90 : vector<1x8x128xf32> to vector<8x128xf32>
    %92 = vector.shape_cast %89 : vector<8x128xf32> to vector<1x8x128xf32>
    tpu.vector_store %arg11[%c1_58, %c0_59, %c0_60], %92 {strides = array<i32>} : memref<4x8x128xf32, #tpu.memory_space<vmem>>, vector<1x8x128xf32>,
    %c2_61 = arith.constant 2 : index
    %93 = memref.load %arg3[%c2_61] : memref<4xi32, #tpu.memory_space<smem>>
    %94 = arith.index_cast %93 : i32 to index
    %c0_62 = arith.constant 0 : index
    %c0_63 = arith.constant 0 : index
    %95 = vector.load %arg12[%94, %c0_62, %c0_63] : memref<8x8x128xf32, #tpu.memory_space<vmem>>, vector<1x8x128xf32>
    %96 = vector.shape_cast %95 : vector<1x8x128xf32> to vector<8x128xf32>
    %c2_64 = arith.constant 2 : index
    %97 = memref.load %arg4[%c2_64] : memref<4xi32, #tpu.memory_space<smem>>
    %98 = arith.index_cast %97 : i32 to index
    %c0_65 = arith.constant 0 : index
    %c0_66 = arith.constant 0 : index
    %99 = vector.load %arg12[%98, %c0_65, %c0_66] : memref<8x8x128xf32, #tpu.memory_space<vmem>>, vector<1x8x128xf32>
    %100 = vector.shape_cast %99 : vector<1x8x128xf32> to vector<8x128xf32>
    %c2_67 = arith.constant 2 : index
    %101 = memref.load %arg5[%c2_67] : memref<4xf32, #tpu.memory_space<smem>>
    %102 = arith.subf %100, %96 : vector<8x128xf32>
    %103 = vector.broadcast %101 : f32 to vector<8x128xf32>
    %104 = arith.mulf %103, %102 : vector<8x128xf32>
    %105 = arith.addf %96, %104 : vector<8x128xf32>
    %c2_68 = arith.constant 2 : index
    %c0_69 = arith.constant 0 : index
    %c0_70 = arith.constant 0 : index
    %106 = vector.load %arg11[%c2_68, %c0_69, %c0_70] : memref<4x8x128xf32, #tpu.memory_space<vmem>>, vector<1x8x128xf32>
    %107 = vector.shape_cast %106 : vector<1x8x128xf32> to vector<8x128xf32>
    %108 = vector.shape_cast %105 : vector<8x128xf32> to vector<1x8x128xf32>
    tpu.vector_store %arg11[%c2_68, %c0_69, %c0_70], %108 {strides = array<i32>} : memref<4x8x128xf32, #tpu.memory_space<vmem>>, vector<1x8x128xf32>,
    %c3_71 = arith.constant 3 : index
    %109 = memref.load %arg3[%c3_71] : memref<4xi32, #tpu.memory_space<smem>>
    %110 = arith.index_cast %109 : i32 to index
    %c0_72 = arith.constant 0 : index
    %c0_73 = arith.constant 0 : index
    %111 = vector.load %arg12[%110, %c0_72, %c0_73] : memref<8x8x128xf32, #tpu.memory_space<vmem>>, vector<1x8x128xf32>
    %112 = vector.shape_cast %111 : vector<1x8x128xf32> to vector<8x128xf32>
    %c3_74 = arith.constant 3 : index
    %113 = memref.load %arg4[%c3_74] : memref<4xi32, #tpu.memory_space<smem>>
    %114 = arith.index_cast %113 : i32 to index
    %c0_75 = arith.constant 0 : index
    %c0_76 = arith.constant 0 : index
    %115 = vector.load %arg12[%114, %c0_75, %c0_76] : memref<8x8x128xf32, #tpu.memory_space<vmem>>, vector<1x8x128xf32>
    %116 = vector.shape_cast %115 : vector<1x8x128xf32> to vector<8x128xf32>
    %c3_77 = arith.constant 3 : index
    %117 = memref.load %arg5[%c3_77] : memref<4xf32, #tpu.memory_space<smem>>
    %118 = arith.subf %116, %112 : vector<8x128xf32>
    %119 = vector.broadcast %117 : f32 to vector<8x128xf32>
    %120 = arith.mulf %119, %118 : vector<8x128xf32>
    %121 = arith.addf %112, %120 : vector<8x128xf32>
    %c3_78 = arith.constant 3 : index
    %c0_79 = arith.constant 0 : index
    %c0_80 = arith.constant 0 : index
    %122 = vector.load %arg11[%c3_78, %c0_79, %c0_80] : memref<4x8x128xf32, #tpu.memory_space<vmem>>, vector<1x8x128xf32>
    %123 = vector.shape_cast %122 : vector<1x8x128xf32> to vector<8x128xf32>
    %124 = vector.shape_cast %121 : vector<8x128xf32> to vector<1x8x128xf32>
    tpu.vector_store %arg11[%c3_78, %c0_79, %c0_80], %124 {strides = array<i32>} : memref<4x8x128xf32, #tpu.memory_space<vmem>>, vector<1x8x128xf32>,
    return
  }
  func.func @transform_0(%arg0: i32, %arg1: memref<100xf32, #tpu.memory_space<smem>>, %arg2: memref<8xi32, #tpu.memory_space<smem>>, %arg3: memref<4xi32, #tpu.memory_space<smem>>, %arg4: memref<4xi32, #tpu.memory_space<smem>>, %arg5: memref<4xf32, #tpu.memory_space<smem>>) -> (i32, i32) {
    %c0_i32 = arith.constant 0 : i32
    %c0_i32_0 = arith.constant 0 : i32
    %c0_i32_1 = arith.constant 0 : i32
    return %c0_i32, %c0_i32_0 : i32, i32
  }
  func.func @transform_1(%arg0: i32, %arg1: memref<100xf32, #tpu.memory_space<smem>>, %arg2: memref<8xi32, #tpu.memory_space<smem>>, %arg3: memref<4xi32, #tpu.memory_space<smem>>, %arg4: memref<4xi32, #tpu.memory_space<smem>>, %arg5: memref<4xf32, #tpu.memory_space<smem>>) -> (i32, i32) {
    %c0_i32 = arith.constant 0 : i32
    %c0_i32_0 = arith.constant 0 : i32
    %c0_i32_1 = arith.constant 0 : i32
    return %c0_i32, %c0_i32_0 : i32, i32
  }
  func.func @transform_2(%arg0: i32, %arg1: memref<100xf32, #tpu.memory_space<smem>>, %arg2: memref<8xi32, #tpu.memory_space<smem>>, %arg3: memref<4xi32, #tpu.memory_space<smem>>, %arg4: memref<4xi32, #tpu.memory_space<smem>>, %arg5: memref<4xf32, #tpu.memory_space<smem>>) -> (i32, i32) {
    %c0_i32 = arith.constant 0 : i32
    %c0_i32_0 = arith.constant 0 : i32
    %c0_i32_1 = arith.constant 0 : i32
    return %c0_i32, %c0_i32_0 : i32, i32
  }
  func.func @transform_3(%arg0: i32, %arg1: memref<100xf32, #tpu.memory_space<smem>>, %arg2: memref<8xi32, #tpu.memory_space<smem>>, %arg3: memref<4xi32, #tpu.memory_space<smem>>, %arg4: memref<4xi32, #tpu.memory_space<smem>>, %arg5: memref<4xf32, #tpu.memory_space<smem>>) -> (i32, i32) {
    %c0_i32 = arith.constant 0 : i32
    %c0_i32_0 = arith.constant 0 : i32
    %c0_i32_1 = arith.constant 0 : i32
    return %c0_i32, %c0_i32_0 : i32, i32
  }
  func.func @transform_4(%arg0: i32, %arg1: memref<100xf32, #tpu.memory_space<smem>>, %arg2: memref<8xi32, #tpu.memory_space<smem>>, %arg3: memref<4xi32, #tpu.memory_space<smem>>, %arg4: memref<4xi32, #tpu.memory_space<smem>>, %arg5: memref<4xf32, #tpu.memory_space<smem>>) -> (i32, i32) {
    %c0_i32 = arith.constant 0 : i32
    %c0_i32_0 = arith.constant 0 : i32
    %c0_i32_1 = arith.constant 0 : i32
    return %c0_i32, %c0_i32_0 : i32, i32
  }
  func.func @transform_5(%arg0: i32, %arg1: memref<100xf32, #tpu.memory_space<smem>>, %arg2: memref<8xi32, #tpu.memory_space<smem>>, %arg3: memref<4xi32, #tpu.memory_space<smem>>, %arg4: memref<4xi32, #tpu.memory_space<smem>>, %arg5: memref<4xf32, #tpu.memory_space<smem>>) -> (i32, i32, i32) {
    %c0_i32 = arith.constant 0 : i32
    %c0_i32_0 = arith.constant 0 : i32
    %c0_i32_1 = arith.constant 0 : i32
    %c0_i32_2 = arith.constant 0 : i32
    return %c0_i32, %c0_i32_0, %c0_i32_1 : i32, i32, i32
  }
}

</mosaic_0001>

<bundles_post_ra>
// kernel: tpu_custom_call.1
= control target key start
LH: loop header
LB: loop body
LE: loop exit
PB: predicated region body
PF: predicated region fallthrough
CT: control target
= control target key end

     0   :  { %s6510_s19 = smov [#allocation4]   ;;  %s6511_s20 = smov [#allocation5]   ;;  %s11341_s0 = inlined_call_operand.hbm [shape: f32[100], index: 0, kind: input, shape index: {}]   ;;  %s11342_s5 = inlined_call_operand.hbm [shape: f32[8,128], index: 5, kind: input, shape index: {}]   ;;  %s11343_s6 = inlined_call_operand.hbm [shape: f32[128,128], index: 6, kind: input, shape index: {}]   ;;  %s11344_s7 = inlined_call_operand.hbm [shape: f32[8,128], index: 7, kind: input, shape index: {}]   ;;  %s11345_s8 = inlined_call_operand.hbm [shape: f32[128,128], index: 8, kind: input, shape index: {}]   ;;  %s11346_s9 = inlined_call_operand.vmem [shape: f32[8,128], index: 9, kind: input, shape index: {}]   ;;  %s11347_s10 = inlined_call_operand.hbm [shape: f32[4,8,128], index: 10, kind: output, shape index: {}]   ;;  %s11348_s1 = inlined_call_operand.hbm [shape: s32[8], index: 1, kind: input, shape index: {}]   ;;  %s11349_s2 = inlined_call_operand.hbm [shape: s32[4], index: 2, kind: input, shape index: {}]   ;;  %s11350_s3 = inlined_call_operand.hbm [shape: s32[4], index: 3, kind: input, shape index: {}]   ;;  %s11351_s4 = inlined_call_operand.hbm [shape: f32[4], index: 4, kind: input, shape index: {}]  }
   0x1   :  { %s16_s15 = sshll.u32 %s11341_s0, 4  ;;  %s21_s18 = sshll.u32 %s11348_s1, 4  ;;  %s17_s15 = int_to_ptr.hbm [resolvable:$true] %s16_s15  ;;  %s22_s18 = int_to_ptr.hbm [resolvable:$true] %s21_s18 }
   0x2   :  { %19 = dma.hbm_to_smem %s17_s15, 16, %s6510_s19, [#allocation3] }
   0x3   :  { %24 = dma.hbm_to_smem %s22_s18, 16, %s6511_s20, [#allocation3] }
   0x4   :  { %s26_s23 = sshll.u32 %s11349_s2, 4  ;;  %s31_s26 = sshll.u32 %s11350_s3, 4  ;;  %s27_s23 = int_to_ptr.hbm [resolvable:$true] %s26_s23  ;;  %s32_s26 = int_to_ptr.hbm [resolvable:$true] %s31_s26 }
   0x5   :  { %s6512_s0 = smov [#allocation6]   ;;  %s6513_s27 = smov [#allocation7]  }
   0x6   :  { %29 = dma.hbm_to_smem %s27_s23, 16, %s6512_s0, [#allocation3] }
   0x7   :  { %34 = dma.hbm_to_smem %s32_s26, 16, %s6513_s27, [#allocation3] }
   0x8   :  { %s36_s29 = sshll.u32 %s11351_s4, 4  ;;  %s6514_s30 = smov [#allocation8]   ;;  %s37_s29 = int_to_ptr.hbm [resolvable:$true] %s36_s29 }
   0x9   :  { %39 = dma.hbm_to_smem %s37_s29, 16, %s6514_s30, [#allocation3] }
   0xa   :  { %6404 = dma.done.wait [#allocation3], 80 }
   0xb   :  { %6405 = vsyncadd [#allocation3], 4294967216 }
   0xc   :  { %42 = sfence }
   0xd   :  { %43 = vsyncpa [#allocation10], 0 }
   0xe   :  { %44 = vsyncpa [#allocation13], 0 }
   0xf   :  { %45 = vsyncpa [#allocation16], 0  ;;  %s62_s11 = sshll.u32 %s11343_s6, 4  ;;  %s63_s11 = int_to_ptr.hbm [resolvable:$true] %s62_s11 }
  0x10   :  { %46 = vsyncpa [#allocation11], 0  ;;  %s6515_s12 = smov [#allocation12]   ;;  %s52_s15 = sshll.u32 %s11342_s5, 4  ;;  %s53_s15 = int_to_ptr.hbm [resolvable:$true] %s52_s15 }
  0x11   :  { %s64_s13 = sshll.u32 %s6515_s12, 4  ;;  %s6516_s16 = smov 128   ;;  %s65_s13 = int_to_ptr.vmem [resolvable:$true] %s64_s13 }
  0x12   :  { %s6517_s17 = smov 8   ;;  %s6518_s18 = smov [#allocation9]  }
  0x13   :  { %70 = dma.hbm_to_vmem [thread:$0]  %s63_s11, 2048, %s65_s13, [#allocation13], %s6516_s16, %s6516_s16, %s6517_s17  }
  0x14   :  { %s54_s19 = sshll.u32 %s6518_s18, 4  ;;  %s76_s21 = sshll.u32 %s11344_s7, 4  ;;  %s55_s19 = int_to_ptr.vmem [resolvable:$true] %s54_s19  ;;  %s77_s21 = int_to_ptr.hbm [resolvable:$true] %s76_s21 }
  0x15   :  { %57 = dma.hbm_to_vmem [thread:$0]  %s53_s15, 128, %s55_s19, [#allocation10]  }
  0x16   :  { %s86_s5 = sshll.u32 %s11345_s8, 4  ;;  %s6519_s24 = smov [#allocation14]   ;;  %s87_s5 = int_to_ptr.hbm [resolvable:$true] %s86_s5 }
  0x17   :  { %s78_s25 = sshll.u32 %s6519_s24, 4  ;;  %s6520_s26 = smov [#allocation15]   ;;  %s79_s25 = int_to_ptr.vmem [resolvable:$true] %s78_s25 }
  0x18   :  { %81 = dma.hbm_to_vmem [thread:$0]  %s77_s21, 128, %s79_s25, [#allocation13]  }
  0x19   :  { %s88_s0 = sshll.u32 %s6520_s26, 4  ;;  %s89_s0 = int_to_ptr.vmem [resolvable:$true] %s88_s0 }
  0x1a   :  { %94 = dma.hbm_to_vmem [thread:$0]  %s87_s5, 2048, %s89_s0, [#allocation16], %s6516_s16, %s6516_s16, %s6517_s17  }
  0x1b   :  { %6406 = dma.done.wait [#allocation10], 128  }
  0x1c   :  { %6407 = vsyncadd [#allocation10], 4294967168 }
  0x1d   :  { %6408 = dma.done.wait [#allocation13], 2176  }
  0x1e   :  { %6409 = vsyncadd [#allocation13], 4294965120 }
  0x1f   :  { %6410 = dma.done.wait [#allocation16], 2048  }
  0x20   :  { %6411 = vsyncadd [#allocation16], 4294965248  ;;  %s6610_s7 = sld [smem:[#allocation5]]   ;;  %v6612_v0 = vld [vmem:[#allocation12] sm:$0xff]  ;;  %v6614_v1 = vld [vmem:[#allocation12 + $0x8] sm:$0xff] }
  0x21   :  { %11630 = vst [vmem:[#allocation23_spill] sm:$0xff] %v6612_v0  ;;  %v6616_v2 = vld [vmem:[#allocation12 + $0x10] sm:$0xff]  ;;  %v6618_v3 = vld [vmem:[#allocation12 + $0x18] sm:$0xff]  ;;  %v6620_v4 = vld [vmem:[#allocation12 + $0x20] sm:$0xff] }
  0x22   :  { %11631 = vst [vmem:[#allocation24_spill] sm:$0xff] %v6614_v1  ;;  %v6622_v5 = vld [vmem:[#allocation12 + $0x28] sm:$0xff]  ;;  %v6624_v6 = vld [vmem:[#allocation12 + $0x30] sm:$0xff]  ;;  %v6626_v7 = vld [vmem:[#allocation12 + $0x38] sm:$0xff] }
  0x23   :  { %11632 = vst [vmem:[#allocation25_spill] sm:$0xff] %v6616_v2  ;;  %v6628_v8 = vld [vmem:[#allocation12 + $0x40] sm:$0xff]  ;;  %v6630_v9 = vld [vmem:[#allocation12 + $0x48] sm:$0xff]  ;;  %v6632_v10 = vld [vmem:[#allocation12 + $0x50] sm:$0xff] }
  0x24   :  { %11633 = vst [vmem:[#allocation26_spill] sm:$0xff] %v6618_v3  ;;  %v6634_v11 = vld [vmem:[#allocation12 + $0x58] sm:$0xff]  ;;  %v6636_v12 = vld [vmem:[#allocation12 + $0x60] sm:$0xff]  ;;  %v6638_v13 = vld [vmem:[#allocation12 + $0x68] sm:$0xff] }
  0x25   :  { %11634 = vst [vmem:[#allocation27_spill] sm:$0xff] %v6620_v4  ;;  %v6640_v14 = vld [vmem:[#allocation12 + $0x70] sm:$0xff]  ;;  %v6642_v15 = vld [vmem:[#allocation12 + $0x78] sm:$0xff]  ;;  %v6644_v16 = vld [vmem:[#allocation14] sm:$0xff] }
  0x26   :  { %11635 = vst [vmem:[#allocation28_spill] sm:$0xff] %v6622_v5  ;;  %v6646_v17 = vld [vmem:[#allocation15] sm:$0xff]  ;;  %v6648_v18 = vld [vmem:[#allocation15 + $0x8] sm:$0xff]  ;;  %v6650_v19 = vld [vmem:[#allocation15 + $0x10] sm:$0xff]  ;;  %p5883_p0 = scmp.le.s32.totalorder %s6610_s7, 0 }
  0x27   :  { %11636 = vst [vmem:[#allocation29_spill] sm:$0xff] %v6624_v6  ;;  %v6652_v20 = vld [vmem:[#allocation15 + $0x18] sm:$0xff]  ;;  %v6654_v21 = vld [vmem:[#allocation15 + $0x20] sm:$0xff]  ;;  %v6656_v22 = vld [vmem:[#allocation15 + $0x28] sm:$0xff]  ;;  %s6688_s1 = smov (!%p5883_p0), 0  }
  0x28   :  { %11637 = vst [vmem:[#allocation30_spill] sm:$0xff] %v6626_v7  ;;  %v6658_v23 = vld [vmem:[#allocation15 + $0x30] sm:$0xff]  ;;  %v6660_v24 = vld [vmem:[#allocation15 + $0x38] sm:$0xff]  ;;  %v6662_v25 = vld [vmem:[#allocation15 + $0x40] sm:$0xff] }
  0x29   :  { %11638 = vst [vmem:[#allocation31_spill] sm:$0xff] %v6628_v8  ;;  %v6664_v26 = vld [vmem:[#allocation15 + $0x48] sm:$0xff]  ;;  %v6666_v27 = vld [vmem:[#allocation15 + $0x50] sm:$0xff]  ;;  %v6668_v28 = vld [vmem:[#allocation15 + $0x58] sm:$0xff] }
  0x2a   :  { %11639 = vst [vmem:[#allocation32_spill] sm:$0xff] %v6630_v9  ;;  %v6670_v29 = vld [vmem:[#allocation15 + $0x60] sm:$0xff]  ;;  %v6672_v30 = vld [vmem:[#allocation15 + $0x68] sm:$0xff]  ;;  %v6674_v31 = vld [vmem:[#allocation15 + $0x70] sm:$0xff] }
  0x2b   :  { %11640 = vst [vmem:[#allocation33_spill] sm:$0xff] %v6632_v10  ;;  %v6676_v32 = vld [vmem:[#allocation15 + $0x78] sm:$0xff]  ;;  %v6681_v33 = vld [vmem:[%s11346_s9] sm:$0xff] }
  0x2c   :  { %11641 = vst [vmem:[#allocation34_spill] sm:$0xff] %v6634_v11  ;;  %v147_v34 = vld [vmem:[#allocation9] sm:$0xff]  }
  0x2d   :  { %11642 = vst [vmem:[#allocation35_spill] sm:$0xff] %v6636_v12  ;;  %v11651_v35 = vmov %v147_v34 }
  0x2e   :  { %11643 = vst [vmem:[#allocation36_spill] sm:$0xff] %v6638_v13 }
  0x2f   :  { %11644 = vst [vmem:[#allocation37_spill] sm:$0xff] %v6640_v14 }
  0x30   :  { %11645 = vst [vmem:[#allocation38_spill] sm:$0xff] %v6642_v15 }
  0x31   :  { %11646 = vst [vmem:[#allocation39_spill] sm:$0xff] %v6660_v24  ;;  %5822 = sbr.rel (%p5883_p0) target bundleno = 423 (0x1a7), region = 124 }
  0x32   :  { %11647 = vst [vmem:[#allocation40_spill] sm:$0xff] %v6664_v26 }
  0x33   :  { %11648 = vst [vmem:[#allocation41_spill] sm:$0xff] %v6666_v27 }
  0x34   :  { %11649 = vst [vmem:[#allocation42_spill] sm:$0xff] %v6668_v28 }
  0x35   :  { %11650 = vst [vmem:[#allocation43_spill] sm:$0xff] %v6681_v33 }
  0x36 LB: > { %v11655_v0 = vld [vmem:[#allocation23_spill] sm:$0xff]  ;;  %v11657_v14 = vld [vmem:[#allocation37_spill] sm:$0xff]  ;;  %v11658_v1 = vld [vmem:[#allocation24_spill] sm:$0xff]  ;;  %11671 = vst [vmem:[#allocation44_spill] sm:$0xff] %v6416_v34  ;;  %s839_s9 = sld [smem:[#allocation4 + %s6420_s1]]  ;;  %s152_s1 = sadd.s32 1, %s6420_s1   ;;  %v6416_v34 = vphi %v147_v34, %v11717_v34   ;;  %s6420_s1 = sphi %s6688_s1, %s152_s1  }
  0x37   : > { %v11656_v15 = vld [vmem:[#allocation38_spill] sm:$0xff]  ;;  %v11659_v13 = vld [vmem:[#allocation36_spill] sm:$0xff]  ;;  %v11660_v12 = vld [vmem:[#allocation35_spill] sm:$0xff]  ;;  %v6700_v37 = vand.u32 4294901760, %v11657_v14  ;;  %p151_p1 = scmp.ge.s32.totalorder %s152_s1, %s6610_s7 }
  0x38   : > { %v11652_v24 = vld [vmem:[#allocation39_spill] sm:$0xff]  ;;  %v11661_v2 = vld [vmem:[#allocation25_spill] sm:$0xff]  ;;  %v11662_v3 = vld [vmem:[#allocation26_spill] sm:$0xff]  ;;  %v6697_v36 = vand.u32 4294901760, %v11656_v15  ;;  %v6703_v38 = vand.u32 4294901760, %v11659_v13  ;;  %v6706_v39 = vand.u32 4294901760, %v11660_v12 }
  0x39   : > { %v11654_v26 = vld [vmem:[#allocation40_spill] sm:$0xff]  ;;  %v11663_v11 = vld [vmem:[#allocation34_spill] sm:$0xff]  ;;  %v11664_v4 = vld [vmem:[#allocation27_spill] sm:$0xff]  ;;  %v6724_v44 = vsub.f32 %v11657_v14, %v6700_v37 }
  0x3a   : > { %v11653_v27 = vld [vmem:[#allocation41_spill] sm:$0xff]  ;;  %v11665_v5 = vld [vmem:[#allocation28_spill] sm:$0xff]  ;;  %v11669_v8 = vld [vmem:[#allocation31_spill] sm:$0xff]  ;;  %v6709_v40 = vand.u32 4294901760, %v11663_v11  ;;  %157 = vmatpush.msra.mxu0 %v6697_v36  ;;  %v6720_v43 = vsub.f32 %v11656_v15, %v6697_v36  ;;  %v6728_v45 = vsub.f32 %v11659_v13, %v6703_v38  ;;  %v6732_v46 = vsub.f32 %v11660_v12, %v6706_v39  ;;  %353 = vmatpush.msra.mxu3 %v6697_v36 }
  0x3b   : > { %v11666_v10 = vld [vmem:[#allocation33_spill] sm:$0xff]  ;;  %v11667_v9 = vld [vmem:[#allocation32_spill] sm:$0xff]  ;;  %v11670_v7 = vld [vmem:[#allocation30_spill] sm:$0xff]  ;;  %v6743_v49 = vand.u32 4294901760, %v11669_v8  ;;  %v11353_v51 = vand.u32 4294901760, %v6724_v44  ;;  %v11681_v33 = vand.u32 4294901760, %v6724_v44 }
  0x3c   : > { %v11668_v6 = vld [vmem:[#allocation29_spill] sm:$0xff]  ;;  %v6712_v41 = vand.u32 4294901760, %v11666_v10  ;;  %v6715_v42 = vand.u32 4294901760, %v11667_v9  ;;  %v6736_v47 = vsub.f32 %v11663_v11, %v6709_v40  ;;  %159 = vmatpush.msra.mxu0 %v6700_v37  ;;  %v11355_v50 = vand.u32 4294901760, %v6720_v43  ;;  %300 = vmatpush.msra.mxu2 %v6720_v43 }
  0x3d   : > { %v11352_v52 = vand.u32 4294901760, %v6728_v45  ;;  %v11354_v53 = vand.u32 4294901760, %v6732_v46  ;;  %355 = vmatpush.msra.mxu3 %v6700_v37  ;;  %v206_v57 = vsub.f32 %v6724_v44, %v11353_v51  ;;  %v6769_v59 = vand.u32 4294901760, %v11670_v7 }
  0x3e   : > { %v6740_v48 = vsub.f32 %v11666_v10, %v6712_v41  ;;  %v11356_v54 = vand.u32 4294901760, %v6736_v47  ;;  %v6755_v55 = vsub.f32 %v11667_v9, %v6715_v42  ;;  %v200_v56 = vsub.f32 %v6720_v43, %v11355_v50  ;;  %161 = vmatpush.msra.mxu0 %v6703_v38  ;;  %303 = vmatpush.msra.mxu2 %v6724_v44 }
  0x3f   : > { %v212_v58 = vsub.f32 %v6728_v45, %v11352_v52  ;;  %v6773_v60 = vsub.f32 %v11669_v8, %v6743_v49  ;;  %357 = vmatpush.msra.mxu3 %v6703_v38  ;;  %v207_v62 = vand.u32 4294901760, %v206_v57  ;;  %v218_v63 = vsub.f32 %v6732_v46, %v11354_v53 }
  0x40   : > { %v201_v61 = vand.u32 4294901760, %v200_v56  ;;  %163 = vmatpush.msra.mxu0 %v6706_v39  ;;  %v11373_v35 = vand.u32 4294901760, %v6740_v48  ;;  %v224_v52 = vsub.f32 %v6736_v47, %v11356_v54  ;;  %306 = vmatpush.msra.mxu2 %v6728_v45  ;;  %v6790_v57 = vand.u32 4294901760, %v11668_v6 }
  0x41   : > { %359 = vmatpush.msra.mxu3 %v6706_v39  ;;  %v213_v56 = vand.u32 4294901760, %v212_v58  ;;  %v6794_v53 = vsub.f32 %v11670_v7, %v6769_v59  ;;  %v6797_v50 = vand.u32 4294901760, %v11665_v5  ;;  %v219_v58 = vand.u32 4294901760, %v218_v63 }
  0x42   : > { %202 = vmatpush.msra.mxu1 %v201_v61  ;;  %165 = vmatpush.msra.mxu0 %v6709_v40  ;;  %v230_v61 = vsub.f32 %v6740_v48, %v11373_v35  ;;  %v6808_v51 = vsub.f32 %v11668_v6, %v6790_v57  ;;  %v6811_v7 = vand.u32 4294901760, %v11664_v4  ;;  %v11672_v54 = vand.u32 4294901760, %v6755_v55 }
  0x43   : > { %309 = vmatpush.msra.mxu2 %v6732_v46  ;;  %361 = vmatpush.msra.mxu3 %v6709_v40  ;;  %v6822_v35 = vsub.f32 %v11665_v5, %v6797_v50  ;;  %v6825_v6 = vand.u32 4294901760, %v11662_v3  ;;  %v11673_v9 = vand.u32 4294901760, %v6773_v60  ;;  %v6831_v10 = vand.u32 4294901760, %v11661_v2 }
  0x44   : > { %208 = vmatpush.msra.mxu1 %v207_v62  ;;  %167 = vmatpush.msra.mxu0 %v6712_v41  ;;  %v236_v8 = vsub.f32 %v6755_v55, %v11672_v54  ;;  %v225_v62 = vand.u32 4294901760, %v224_v52  ;;  %v231_v52 = vand.u32 4294901760, %v230_v61  ;;  %v6839_v63 = vsub.f32 %v11664_v4, %v6811_v7 }
  0x45   : > { %312 = vmatpush.msra.mxu2 %v6736_v47  ;;  %363 = vmatpush.msra.mxu3 %v6712_v41  ;;  %v242_v54 = vsub.f32 %v6773_v60, %v11673_v9  ;;  %v6842_v9 = vand.u32 4294901760, %v11658_v1  ;;  %v6853_v4 = vsub.f32 %v11662_v3, %v6825_v6  ;;  %v6857_v11 = vsub.f32 %v11661_v2, %v6831_v10 }
  0x46   : > { %214 = vmatpush.msra.mxu1 %v213_v56  ;;  %169 = vmatpush.msra.mxu0 %v6715_v42  ;;  %v237_v5 = vand.u32 4294901760, %v236_v8  ;;  %v6867_v3 = vand.u32 4294901760, %v11655_v0  ;;  %v11676_v2 = vand.u32 4294901760, %v6822_v35  ;;  %v11677_v13 = vand.u32 4294901760, %v6839_v63 }
  0x47   : > { %315 = vmatpush.msra.mxu2 %v6740_v48  ;;  %365 = vmatpush.msra.mxu3 %v6715_v42  ;;  %v243_v8 = vand.u32 4294901760, %v242_v54  ;;  %v6872_v54 = vand.u32 4294901760, %v6416_v34  ;;  %v6881_v12 = vsub.f32 %v11658_v1, %v6842_v9  ;;  %v6940_v44 = vand.u32 4294901760, %v6672_v30 }
  0x48   : > { %220 = vmatpush.msra.mxu1 %v219_v58  ;;  %171 = vmatpush.msra.mxu0 %v6743_v49  ;;  %v11674_v58 = vand.u32 4294901760, %v6794_v53  ;;  %v6894_v1 = vsub.f32 %v11655_v0, %v6867_v3 }
  0x49   : > { %318 = vmatpush.msra.mxu2 %v6755_v55  ;;  %367 = vmatpush.msra.mxu3 %v6743_v49 }
  0x4a   : > { %226 = vmatpush.msra.mxu1 %v225_v62  ;;  %173 = vmatpush.msra.mxu0 %v6769_v59  ;;  %v248_v61 = vsub.f32 %v6794_v53, %v11674_v58  ;;  %v11675_v62 = vand.u32 4294901760, %v6808_v51  ;;  %v11488_v0 = vand.u32 4294901760, %v6894_v1 }
  0x4b   : > { %321 = vmatpush.msra.mxu2 %v6773_v60  ;;  %369 = vmatpush.msra.mxu3 %v6769_v59 }
  0x4c   : > { %232 = vmatpush.msra.mxu1 %v231_v52  ;;  %175 = vmatpush.msra.mxu0 %v6790_v57  ;;  %v254_v58 = vsub.f32 %v6808_v51, %v11675_v62  ;;  %v249_v52 = vand.u32 4294901760, %v248_v61  ;;  %v260_v62 = vsub.f32 %v6822_v35, %v11676_v2  ;;  %v266_v2 = vsub.f32 %v6839_v63, %v11677_v13 }
  0x4d   : > { %324 = vmatpush.msra.mxu2 %v6794_v53  ;;  %371 = vmatpush.msra.mxu3 %v6790_v57  ;;  %v11486_v13 = vand.u32 4294901760, %v6881_v12 }
  0x4e   : > { %238 = vmatpush.msra.mxu1 %v237_v5  ;;  %177 = vmatpush.msra.mxu0 %v6797_v50  ;;  %v189_v5 = vsub.f32 %v6416_v34, %v6872_v54  ;;  %v255_v61 = vand.u32 4294901760, %v254_v58  ;;  %v261_v14 = vand.u32 4294901760, %v260_v62  ;;  %v267_v56 = vand.u32 4294901760, %v266_v2 }
  0x4f   : > { %327 = vmatpush.msra.mxu2 %v6808_v51  ;;  %373 = vmatpush.msra.mxu3 %v6797_v50 }
  0x50   : > { %244 = vmatpush.msra.mxu1 %v243_v8  ;;  %179 = vmatpush.msra.mxu0 %v6811_v7  ;;  %v11678_v8 = vand.u32 4294901760, %v6853_v4  ;;  %v190_v15 = vand.u32 4294901760, %v189_v5 }
  0x51   : > { %330 = vmatpush.msra.mxu2 %v6822_v35  ;;  %375 = vmatpush.msra.mxu3 %v6811_v7 }
  0x52   : > { %250 = vmatpush.msra.mxu1 %v249_v52  ;;  %181 = vmatpush.msra.mxu0 %v6825_v6  ;;  %v272_v58 = vsub.f32 %v6853_v4, %v11678_v8  ;;  %v11679_v52 = vand.u32 4294901760, %v6857_v11  ;;  %v191_v2 = vsub.f32 %v189_v5, %v190_v15 }
  0x53   : > { %333 = vmatpush.msra.mxu2 %v6839_v63  ;;  %377 = vmatpush.msra.mxu3 %v6825_v6 }
  0x54   : > { %256 = vmatpush.msra.mxu1 %v255_v61  ;;  %183 = vmatpush.msra.mxu0 %v6831_v10  ;;  %v278_v62 = vsub.f32 %v6857_v11, %v11679_v52  ;;  %v273_v8 = vand.u32 4294901760, %v272_v58  ;;  %v284_v61 = vsub.f32 %v6881_v12, %v11486_v13  ;;  %v11680_v58 = vand.u32 4294901760, %v6720_v43 }
  0x55   : > { %336 = vmatpush.msra.mxu2 %v6853_v4  ;;  %379 = vmatpush.msra.mxu3 %v6831_v10  ;;  %v192_v34 = vand.u32 4294901760, %v191_v2  ;;  %v11683_v43 = vand.u32 4294901760, %v6732_v46  ;;  %v6955_v46 = vand.u32 4294901760, %v11654_v26  ;;  %v11685_v2 = vand.u32 4294901760, %v6740_v48 }
  0x56   : > { %262 = vmatpush.msra.mxu1 %v261_v14  ;;  %185 = vmatpush.msra.mxu0 %v6842_v9  ;;  %v279_v52 = vand.u32 4294901760, %v278_v62  ;;  %v290_v14 = vsub.f32 %v6894_v1, %v11488_v0  ;;  %v285_v13 = vand.u32 4294901760, %v284_v61  ;;  %v11682_v62 = vand.u32 4294901760, %v6728_v45 }
  0x57   : > { %339 = vmatpush.msra.mxu2 %v6857_v11  ;;  %381 = vmatpush.msra.mxu3 %v6842_v9  ;;  %v6952_v45 = vand.u32 4294901760, %v11653_v27 }
  0x58   : > { %268 = vmatpush.msra.mxu1 %v267_v56  ;;  %187 = vmatpush.msra.mxu0 %v6867_v3  ;;  %v291_v56 = vand.u32 4294901760, %v290_v14 }
  0x59   : > { %342 = vmatpush.msra.mxu2 %v6881_v12  ;;  %383 = vmatpush.msra.mxu3 %v6867_v3  ;;  %v6983_v14 = vsub.f32 %v11653_v27, %v6952_v45  ;;  %v7039_v27 = vand.u32 4294901760, %v6658_v23 }
  0x5a   : > { %394 = vmatpush.msrb.mxu0 %v11680_v58  ;;  %274 = vmatpush.msra.mxu1 %v273_v8  ;;  %v6934_v8 = vand.u32 4294901760, %v6676_v32  ;;  %v6986_v58 = vand.u32 4294901760, %v6662_v25 }
  0x5b   : > { %345 = vmatpush.msra.mxu2 %v6894_v1  ;;  %387 = vmatmul.f32.vlgmr.msra.gmra.mxu3 %v190_v15  ;;  %v11684_v15 = vand.u32 4294901760, %v6736_v47  ;;  %v6968_v47 = vsub.f32 %v6672_v30, %v6940_v44 }
  0x5c   : > { %398 = vmatpush.msrb.mxu0 %v11681_v33  ;;  %280 = vmatpush.msra.mxu1 %v279_v52  ;;  %v6937_v33 = vand.u32 4294901760, %v6674_v31 }
  0x5d   : > { %348 = vmatmul.f32.vlgmr.msra.gmra.mxu2 %v189_v5  ;;  %193 = vmatmul.f32.vlgmr.msra.gmra.mxu0 %v192_v34  ;;  %v6943_v5 = vand.u32 4294901760, %v6670_v29  ;;  %v6949_v34 = vand.u32 4294901760, %v6668_v28 }
  0x5e   : > { %402 = vmatpush.msrb.mxu0 %v11682_v62  ;;  %286 = vmatpush.msra.mxu1 %v285_v13  ;;  %v6960_v13 = vsub.f32 %v6676_v32, %v6934_v8 }
  0x5f   : > { %v6972_v61 = vsub.f32 %v6670_v29, %v6943_v5  ;;  %v6979_v52 = vsub.f32 %v6668_v28, %v6949_v34  ;;  %499 = vmatpush.msrb.mxu2 %v6934_v8 }
  0x60   : > { %406 = vmatpush.msrb.mxu0 %v11683_v43  ;;  %292 = vmatpush.msra.mxu1 %v291_v56  ;;  %v11489_v56 = vand.u32 4294901760, %v6960_v13  ;;  %v11686_v43 = vand.u32 4294901760, %v6755_v55  ;;  %v7012_v55 = vand.u32 4294901760, %v11652_v24 }
  0x61   : > { %294 = vmatmul.f32.vlgmr.msra.gmra.mxu1 %v6872_v54  ;;  %501 = vmatpush.msrb.mxu2 %v6937_v33 }
  0x62   : > { %461 = vmatpush.msrb.mxu1 %v6697_v36  ;;  %410 = vmatpush.msrb.mxu0 %v11684_v15  ;;  %v6964_v36 = vsub.f32 %v6674_v31, %v6937_v33  ;;  %v542_v0 = vsub.f32 %v6960_v13, %v11489_v56  ;;  %v7019_v56 = vsub.f32 %v6662_v25, %v6986_v58 }
  0x63   : > { %503 = vmatpush.msrb.mxu2 %v6940_v44 }
  0x64   : > { %463 = vmatpush.msrb.mxu1 %v6700_v37  ;;  %414 = vmatpush.msrb.mxu0 %v11685_v2  ;;  %v11490_v62 = vand.u32 4294901760, %v6964_v36  ;;  %v11499_v37 = vand.u32 4294901760, %v6968_v47  ;;  %v6999_v2 = vsub.f32 %v11654_v26, %v6955_v46  ;;  %v543_v15 = vand.u32 4294901760, %v542_v0 }
  0x65   : > { %v11688_v26 = vand.u32 4294901760, %v6972_v61  ;;  %505 = vmatpush.msrb.mxu2 %v6943_v5  ;;  %v7054_v0 = vsub.f32 %v6658_v23, %v7039_v27 }
  0x66   : > { %465 = vmatpush.msrb.mxu1 %v6703_v38  ;;  %418 = vmatpush.msrb.mxu0 %v11686_v43  ;;  %v548_v48 = vsub.f32 %v6964_v36, %v11490_v62  ;;  %v554_v38 = vsub.f32 %v6968_v47, %v11499_v37  ;;  %v11687_v43 = vand.u32 4294901760, %v6773_v60  ;;  %v11690_v60 = vand.u32 4294901760, %v6979_v52 }
  0x67   : > { %v560_v37 = vsub.f32 %v6972_v61, %v11688_v26  ;;  %544 = vmatpush.msrb.mxu3 %v543_v15  ;;  %v7036_v26 = vsub.f32 %v11652_v24, %v7012_v55  ;;  %507 = vmatpush.msrb.mxu2 %v6949_v34  ;;  %v7057_v24 = vand.u32 4294901760, %v6654_v21  ;;  %v7072_v15 = vand.u32 4294901760, %v6652_v20 }
  0x68   : > { %467 = vmatpush.msrb.mxu1 %v6706_v39  ;;  %422 = vmatpush.msrb.mxu0 %v11687_v43  ;;  %v549_v62 = vand.u32 4294901760, %v548_v48  ;;  %v11689_v39 = vand.u32 4294901760, %v6794_v53  ;;  %v566_v43 = vsub.f32 %v6979_v52, %v11690_v60  ;;  %v555_v48 = vand.u32 4294901760, %v554_v38 }
  0x69   : > { %v11691_v53 = vand.u32 4294901760, %v6808_v51  ;;  %v561_v38 = vand.u32 4294901760, %v560_v37  ;;  %v11694_v51 = vand.u32 4294901760, %v6999_v2  ;;  %509 = vmatpush.msrb.mxu2 %v6952_v45 }
  0x6a   : > { %469 = vmatpush.msrb.mxu1 %v6709_v40  ;;  %426 = vmatpush.msrb.mxu0 %v11689_v39  ;;  %v7042_v40 = vand.u32 4294901760, %v6656_v22  ;;  %v11692_v39 = vand.u32 4294901760, %v6983_v14  ;;  %v567_v37 = vand.u32 4294901760, %v566_v43 }
  0x6b   : > { %550 = vmatpush.msrb.mxu3 %v549_v62  ;;  %v578_v62 = vsub.f32 %v6999_v2, %v11694_v51  ;;  %511 = vmatpush.msrb.mxu2 %v6955_v46  ;;  %v7084_v51 = vsub.f32 %v6654_v21, %v7057_v24 }
  0x6c   : > { %471 = vmatpush.msrb.mxu1 %v6712_v41  ;;  %430 = vmatpush.msrb.mxu0 %v11691_v53  ;;  %v572_v60 = vsub.f32 %v6983_v14, %v11692_v39  ;;  %v11693_v41 = vand.u32 4294901760, %v6822_v35  ;;  %v7069_v39 = vsub.f32 %v6656_v22, %v7042_v40  ;;  %v11696_v35 = vand.u32 4294901760, %v7019_v56 }
  0x6d   : > { %556 = vmatpush.msrb.mxu3 %v555_v48  ;;  %v7087_v53 = vand.u32 4294901760, %v6650_v19  ;;  %513 = vmatpush.msrb.mxu2 %v6986_v58 }
  0x6e   : > { %473 = vmatpush.msrb.mxu1 %v6715_v42  ;;  %434 = vmatpush.msrb.mxu0 %v11693_v41  ;;  %v11695_v42 = vand.u32 4294901760, %v6839_v63  ;;  %v584_v43 = vsub.f32 %v7019_v56, %v11696_v35  ;;  %v573_v48 = vand.u32 4294901760, %v572_v60  ;;  %v579_v63 = vand.u32 4294901760, %v578_v62 }
  0x6f   : > { %562 = vmatpush.msrb.mxu3 %v561_v38  ;;  %v11698_v38 = vand.u32 4294901760, %v7036_v26  ;;  %v7099_v35 = vsub.f32 %v6652_v20, %v7072_v15  ;;  %v7102_v41 = vand.u32 4294901760, %v6648_v18  ;;  %v11700_v62 = vand.u32 4294901760, %v7054_v0  ;;  %515 = vmatpush.msrb.mxu2 %v7012_v55 }
  0x70   : > { %475 = vmatpush.msrb.mxu1 %v6743_v49  ;;  %438 = vmatpush.msrb.mxu0 %v11695_v42  ;;  %v11697_v49 = vand.u32 4294901760, %v6853_v4  ;;  %v11699_v4 = vand.u32 4294901760, %v6857_v11  ;;  %v7117_v42 = vand.u32 4294901760, %v6646_v17  ;;  %v11701_v11 = vand.u32 4294901760, %v6881_v12 }
  0x71   : > { %568 = vmatpush.msrb.mxu3 %v567_v37  ;;  %v590_v60 = vsub.f32 %v7036_v26, %v11698_v38  ;;  %v596_v37 = vsub.f32 %v7054_v0, %v11700_v62  ;;  %v7114_v38 = vsub.f32 %v6650_v19, %v7087_v53  ;;  %517 = vmatpush.msrb.mxu2 %v7039_v27 }
  0x72   : > { %477 = vmatpush.msrb.mxu1 %v6769_v59  ;;  %442 = vmatpush.msrb.mxu0 %v11697_v49  ;;  %v585_v59 = vand.u32 4294901760, %v584_v43  ;;  %v607_v49 = vand.u32 4294901760, %v7084_v51  ;;  %v11702_v43 = vand.u32 4294901760, %v7069_v39  ;;  %v7129_v62 = vsub.f32 %v6648_v18, %v7102_v41 }
  0x73   : > { %574 = vmatpush.msrb.mxu3 %v573_v48  ;;  %v597_v12 = vand.u32 4294901760, %v596_v37  ;;  %519 = vmatpush.msrb.mxu2 %v7042_v40 }
  0x74   : > { %479 = vmatpush.msrb.mxu1 %v6790_v57  ;;  %446 = vmatpush.msrb.mxu0 %v11699_v4  ;;  %v591_v57 = vand.u32 4294901760, %v590_v60  ;;  %v602_v48 = vsub.f32 %v7069_v39, %v11702_v43  ;;  %v613_v4 = vand.u32 4294901760, %v7099_v35  ;;  %v619_v60 = vand.u32 4294901760, %v7114_v38 }
  0x75   : > { %580 = vmatpush.msrb.mxu3 %v579_v63  ;;  %v608_v63 = vsub.f32 %v7084_v51, %v607_v49  ;;  %521 = vmatpush.msrb.mxu2 %v7057_v24 }
  0x76   : > { %481 = vmatpush.msrb.mxu1 %v6797_v50  ;;  %450 = vmatpush.msrb.mxu0 %v11701_v11  ;;  %v11703_v50 = vand.u32 4294901760, %v6894_v1  ;;  %v7141_v11 = vsub.f32 %v6646_v17, %v7117_v42  ;;  %v603_v1 = vand.u32 4294901760, %v602_v48 }
  0x77   : > { %586 = vmatpush.msrb.mxu3 %v585_v59  ;;  %v625_v59 = vand.u32 4294901760, %v7129_v62  ;;  %v609_v37 = vand.u32 4294901760, %v608_v63  ;;  %523 = vmatpush.msrb.mxu2 %v7072_v15  ;;  %v11706_v63 = vand.u32 4294901760, %v6968_v47 }
  0x78   : > { %483 = vmatpush.msrb.mxu1 %v6811_v7  ;;  %454 = vmatpush.msrb.mxu0 %v11703_v50  ;;  %v614_v7 = vsub.f32 %v7099_v35, %v613_v4 }
  0x79   : > { %456 = vmatmul.f32.vlgmr.msrb.gmra.mxu0 %v6872_v54  ;;  %592 = vmatpush.msrb.mxu3 %v591_v57  ;;  %v631_v57 = vand.u32 4294901760, %v7141_v11 }
  0x7a   : > { %485 = vmatpush.msrb.mxu1 %v6825_v6  ;;  %642 = vmatpush.msra.mxu0 %v6960_v13  ;;  %v620_v6 = vsub.f32 %v7114_v38, %v619_v60  ;;  %v615_v43 = vand.u32 4294901760, %v614_v7 }
  0x7b   : > { %598 = vmatpush.msrb.mxu3 %v597_v12  ;;  %525 = vmatpush.msrb.mxu2 %v7087_v53  ;;  %v11705_v12 = vand.u32 4294901760, %v6964_v36 }
  0x7c   : > { %487 = vmatpush.msrb.mxu1 %v6831_v10  ;;  %645 = vmatpush.msra.mxu0 %v6964_v36  ;;  %v626_v10 = vsub.f32 %v7129_v62, %v625_v59  ;;  %v621_v48 = vand.u32 4294901760, %v620_v6 }
  0x7d   : > { %604 = vmatpush.msrb.mxu3 %v603_v1  ;;  %527 = vmatpush.msrb.mxu2 %v7102_v41 }
  0x7e   : > { %489 = vmatpush.msrb.mxu1 %v6842_v9  ;;  %648 = vmatpush.msra.mxu0 %v6968_v47  ;;  %v632_v9 = vsub.f32 %v7141_v11, %v631_v57  ;;  %v627_v50 = vand.u32 4294901760, %v626_v10 }
  0x7f   : > { %610 = vmatpush.msrb.mxu3 %v609_v37  ;;  %529 = vmatpush.msrb.mxu2 %v7117_v42  ;;  %v840_v37 = vstv %s839_s9 }
  0x80   : > { %491 = vmatpush.msrb.mxu1 %v6867_v3  ;;  %651 = vmatpush.msra.mxu0 %v6972_v61  ;;  %v633_v3 = vand.u32 4294901760, %v632_v9 }
  0x81   : > { %493 = vmatmul.f32.vlgmr.msrb.gmra.mxu1 %v6872_v54  ;;  %616 = vmatpush.msrb.mxu3 %v615_v43  ;;  %v11704_v54 = vand.u32 4294901760, %v6960_v13  ;;  %v11714_v13 = vand.u32 4294901760, %v7069_v39  ;;  %v11716_v43 = vld [vmem:[#allocation44_spill] sm:$0xff] }
  0x82   : > { %695 = vmatpush.msra.mxu1 %v6934_v8  ;;  %654 = vmatpush.msra.mxu0 %v6979_v52 }
  0x83   : > { %622 = vmatpush.msrb.mxu3 %v621_v48  ;;  %736 = vmatpush.msra.mxu2 %v11704_v54 }
  0x84   : > { %697 = vmatpush.msra.mxu1 %v6937_v33  ;;  %657 = vmatpush.msra.mxu0 %v6983_v14 }
  0x85   : > { %628 = vmatpush.msrb.mxu3 %v627_v50  ;;  %740 = vmatpush.msra.mxu2 %v11705_v12 }
  0x86   : > { %699 = vmatpush.msra.mxu1 %v6940_v44  ;;  %660 = vmatpush.msra.mxu0 %v6999_v2 }
  0x87   : > { %634 = vmatpush.msrb.mxu3 %v633_v3  ;;  %744 = vmatpush.msra.mxu2 %v11706_v63 }
  0x88   : > { %701 = vmatpush.msra.mxu1 %v6943_v5  ;;  %663 = vmatpush.msra.mxu0 %v7019_v56 }
  0x89   : > { %803 = vmatpush.msra.mxu3 %v6934_v8  ;;  %v11707_v8 = vand.u32 4294901760, %v6972_v61 }
  0x8a   : > { %703 = vmatpush.msra.mxu1 %v6949_v34  ;;  %666 = vmatpush.msra.mxu0 %v7036_v26 }
  0x8b   : > { %805 = vmatpush.msra.mxu3 %v6937_v33  ;;  %748 = vmatpush.msra.mxu2 %v11707_v8  ;;  %v11708_v33 = vand.u32 4294901760, %v6979_v52 }
  0x8c   : > { %705 = vmatpush.msra.mxu1 %v6952_v45  ;;  %669 = vmatpush.msra.mxu0 %v7054_v0 }
  0x8d   : > { %807 = vmatpush.msra.mxu3 %v6940_v44  ;;  %752 = vmatpush.msra.mxu2 %v11708_v33  ;;  %v11709_v44 = vand.u32 4294901760, %v6983_v14 }
  0x8e   : > { %707 = vmatpush.msra.mxu1 %v6955_v46  ;;  %672 = vmatpush.msra.mxu0 %v7069_v39 }
  0x8f   : > { %809 = vmatpush.msra.mxu3 %v6943_v5  ;;  %756 = vmatpush.msra.mxu2 %v11709_v44  ;;  %v11710_v5 = vand.u32 4294901760, %v6999_v2 }
  0x90   : > { %709 = vmatpush.msra.mxu1 %v6986_v58  ;;  %675 = vmatpush.msra.mxu0 %v7084_v51 }
  0x91   : > { %811 = vmatpush.msra.mxu3 %v6949_v34  ;;  %760 = vmatpush.msra.mxu2 %v11710_v5  ;;  %v11711_v34 = vand.u32 4294901760, %v7019_v56 }
  0x92   : > { %711 = vmatpush.msra.mxu1 %v7012_v55  ;;  %678 = vmatpush.msra.mxu0 %v7099_v35  ;;  %v11715_v35 = vld [vmem:[#allocation43_spill] sm:$0xff] }
  0x93   : > { %813 = vmatpush.msra.mxu3 %v6952_v45  ;;  %764 = vmatpush.msra.mxu2 %v11711_v34  ;;  %v11712_v45 = vand.u32 4294901760, %v7036_v26 }
  0x94   : > { %713 = vmatpush.msra.mxu1 %v7039_v27  ;;  %681 = vmatpush.msra.mxu0 %v7114_v38 }
  0x95   : > { %815 = vmatpush.msra.mxu3 %v6955_v46  ;;  %768 = vmatpush.msra.mxu2 %v11712_v45  ;;  %v11713_v46 = vand.u32 4294901760, %v7054_v0 }
  0x96   : > { %715 = vmatpush.msra.mxu1 %v7042_v40  ;;  %684 = vmatpush.msra.mxu0 %v7129_v62 }
  0x97   : > { %817 = vmatpush.msra.mxu3 %v6986_v58  ;;  %772 = vmatpush.msra.mxu2 %v11713_v46 }
  0x98   : > { %717 = vmatpush.msra.mxu1 %v7057_v24  ;;  %687 = vmatpush.msra.mxu0 %v7141_v11 }
  0x99   : > { %819 = vmatpush.msra.mxu3 %v7012_v55  ;;  %776 = vmatpush.msra.mxu2 %v11714_v13 }
  0x9a   : > { %719 = vmatpush.msra.mxu1 %v7072_v15 }
  0x9b   : > { %821 = vmatpush.msra.mxu3 %v7039_v27  ;;  %780 = vmatpush.msra.mxu2 %v607_v49 }
  0x9c   : > { %721 = vmatpush.msra.mxu1 %v7087_v53 }
  0x9d   : > { %823 = vmatpush.msra.mxu3 %v7042_v40  ;;  %784 = vmatpush.msra.mxu2 %v613_v4 }
  0x9e   : > { %723 = vmatpush.msra.mxu1 %v7102_v41 }
  0x9f   : > { %825 = vmatpush.msra.mxu3 %v7057_v24  ;;  %788 = vmatpush.msra.mxu2 %v619_v60 }
  0xa0   : > { %725 = vmatpush.msra.mxu1 %v7117_v42 }
  0xa1   : > { %827 = vmatpush.msra.mxu3 %v7072_v15  ;;  %792 = vmatpush.msra.mxu2 %v625_v59 }
  0xa3   : > { %829 = vmatpush.msra.mxu3 %v7087_v53  ;;  %796 = vmatpush.msra.mxu2 %v631_v57 }
  0xa5   : > { %831 = vmatpush.msra.mxu3 %v7102_v41 }
  0xa7   : > { %833 = vmatpush.msra.mxu3 %v7117_v42 }
  0xda   : > { %v194_v24 = vpop.f32.mrf.mxu0 }
  0xdb   : > { %v195_v27 = vadd.f32 %v194_v24, %v6644_v16 }
  0xde   : > { %v295_v36 = vpop.f32.mrf.mxu1  ;;  %v388_v14 = vpop.f32.mrf.mxu3 }
  0xdf   : > { %v296_v47 = vadd.f32 %v295_v36, %v195_v27 }
  0xe0   : > { %v349_v61 = vpop.f32.mrf.mxu2 }
  0xe1   : > { %v350_v52 = vadd.f32 %v349_v61, %v296_v47 }
  0xe3   : > { %v389_v58 = vadd.f32 %v388_v14, %v350_v52 }
  0xf6   : > { %v457_v56 = vpop.f32.mrf.mxu0 }
  0xf7   : > { %v458_v2 = vadd.f32 %v457_v56, %v389_v58 }
  0xfe   : > { %v494_v55 = vpop.f32.mrf.mxu1 }
  0xff   : > { %v495_v0 = vadd.f32 %v494_v55, %v458_v2 }
 0x101   : > { %6112 = vtanh.f32 %v495_v0 }
 0x107   : > { %v6113_v26 = vpop.eup %6112 }
 0x108   : > { %v530_v40 = vand.u32 4294901760, %v6113_v26 }
 0x10a   : > { %636 = vmatmul.f32.vlgmr.msrb.gmra.mxu3 %v530_v40  ;;  %v531_v15 = vsub.f32 %v6113_v26, %v530_v40 }
 0x10c   : > { %690 = vmatmul.f32.vlgmr.msra.gmra.mxu0 %v531_v15  ;;  %v532_v53 = vand.u32 4294901760, %v531_v15 }
 0x10e   : > { %729 = vmatmul.f32.vlgmr.msra.gmra.mxu1 %v532_v53  ;;  %v533_v39 = vsub.f32 %v531_v15, %v532_v53 }
 0x110   : > { %v534_v41 = vand.u32 4294901760, %v533_v39 }
 0x112   : > { %535 = vmatmul.f32.vlgmr.msrb.gmra.mxu2 %v534_v41  ;;  %835 = vmatmul.f32.vlgmr.msra.gmra.mxu3 %v530_v40 }
 0x11a   : > { %798 = vmatmul.f32.vlgmr.msra.gmra.mxu2 %v530_v40 }
 0x189   : > { %v691_v4 = vpop.f32.mrf.mxu0 }
 0x18b   : > { %v730_v60 = vpop.f32.mrf.mxu1 }
 0x18d   : > { %v637_v51 = vpop.f32.mrf.mxu3 }
 0x195   : > { %v536_v42 = vpop.f32.mrf.mxu2  ;;  %v836_v59 = vpop.f32.mrf.mxu3 }
 0x196   : > { %v537_v49 = vadd.f32 %v536_v42, %v11715_v35 }
 0x198   : > { %v638_v38 = vadd.f32 %v637_v51, %v537_v49 }
 0x19a   : > { %v692_v62 = vadd.f32 %v691_v4, %v638_v38 }
 0x19c   : > { %v731_v11 = vadd.f32 %v730_v60, %v692_v62 }
 0x19d   : > { %v799_v1 = vpop.f32.mrf.mxu2 }
 0x19e   : > { %v800_v7 = vadd.f32 %v799_v1, %v731_v11 }
 0x1a0   : > { %v837_v6 = vadd.f32 %v836_v59, %v800_v7 }
 0x1a2   : > { %v841_v57 = vmul.f32 %v840_v37, %v837_v6  ;;  %154 = sbr.rel (!%p151_p1) target bundleno = 54 (0x36), region = 130 }
 0x1a4   : > { %v842_v10 = vadd.f32 %v11716_v43, %v841_v57  }
 0x1a6   : > { %v11717_v34 = vmov %v842_v10  ;;  %v11718_v35 = vmov (%p151_p1), %v842_v10 }
 0x1a7 PF:  { %843 = vst [vmem:[#allocation2] sm:$0xff] %v6424_v35  ;;  %s7261_s28 = sld [smem:[#allocation5 + $0x1]]   ;;  %v11719_v48 = vmov %v6424_v35  ;;  %v6424_v35 = vphi %v11651_v35, %v11718_v35  }
 0x1ad   :  { %p5828_p2 = scmp.ge.s32.totalorder %s6610_s7, %s7261_s28 }
 0x1af   :  { %5830 = sbr.rel (%p5828_p2) target bundleno = 805 (0x325), region = 135 }
 0x1b4 LB: > { %v11720_v28 = vld [vmem:[#allocation42_spill] sm:$0xff]  ;;  %v11722_v3 = vld [vmem:[#allocation37_spill] sm:$0xff]  ;;  %v11723_v12 = vld [vmem:[#allocation36_spill] sm:$0xff]  ;;  %s1535_s29 = sld [smem:[#allocation4 + %s6432_s7]]  ;;  %s848_s7 = sadd.s32 1, %s6432_s7   ;;  %v6428_v35 = vphi %v6424_v35, %v11771_v35   ;;  %s6432_s7 = sphi %s6610_s7, %s848_s7  }
 0x1b5   : > { %v11721_v9 = vld [vmem:[#allocation38_spill] sm:$0xff]  ;;  %v7282_v54 = vand.u32 4294901760, %v11722_v3  ;;  %v7285_v63 = vand.u32 4294901760, %v11723_v12  ;;  %v11724_v8 = vld [vmem:[#allocation35_spill] sm:$0xff]  ;;  %v11726_v34 = vld [vmem:[#allocation33_spill] sm:$0xff]  ;;  %p847_p3 = scmp.ge.s32.totalorder %s848_s7, %s7261_s28 }
 0x1b6   : > { %v7279_v50 = vand.u32 4294901760, %v11721_v9  ;;  %v7288_v33 = vand.u32 4294901760, %v11724_v8  ;;  %v11725_v44 = vld [vmem:[#allocation34_spill] sm:$0xff]  ;;  %v7294_v45 = vand.u32 4294901760, %v11726_v34  ;;  %v11727_v46 = vld [vmem:[#allocation32_spill] sm:$0xff]  ;;  %v11728_v14 = vld [vmem:[#allocation31_spill] sm:$0xff] }
 0x1b7   : > { %v7291_v5 = vand.u32 4294901760, %v11725_v44  ;;  %v7297_v13 = vand.u32 4294901760, %v11727_v46  ;;  %v7306_v27 = vsub.f32 %v11722_v3, %v7282_v54  ;;  %v7310_v36 = vsub.f32 %v11723_v12, %v7285_v63  ;;  %v11729_v41 = vld [vmem:[#allocation30_spill] sm:$0xff]  ;;  %v11730_v7 = vld [vmem:[#allocation29_spill] sm:$0xff]  ;;  %v11731_v6 = vld [vmem:[#allocation28_spill] sm:$0xff] }
 0x1b8   : > { %853 = vmatpush.msra.mxu0 %v7279_v50  ;;  %v7302_v24 = vsub.f32 %v11721_v9, %v7279_v50  ;;  %v7314_v47 = vsub.f32 %v11724_v8, %v7288_v33  ;;  %v7322_v52 = vsub.f32 %v11726_v34, %v7294_v45  ;;  %v7325_v58 = vand.u32 4294901760, %v11728_v14  ;;  %1049 = vmatpush.msra.mxu3 %v7279_v50  ;;  %v11732_v3 = vld [vmem:[#allocation27_spill] sm:$0xff] }
 0x1b9   : > { %v7318_v61 = vsub.f32 %v11725_v44, %v7291_v5  ;;  %v901_v2 = vand.u32 4294901760, %v7306_v27  ;;  %v907_v55 = vand.u32 4294901760, %v7310_v36  ;;  %v7337_v40 = vsub.f32 %v11727_v46, %v7297_v13 }
 0x1ba   : > { %855 = vmatpush.msra.mxu0 %v7282_v54  ;;  %v895_v56 = vand.u32 4294901760, %v7302_v24  ;;  %v913_v0 = vand.u32 4294901760, %v7314_v47  ;;  %996 = vmatpush.msra.mxu2 %v7302_v24  ;;  %v7351_v51 = vand.u32 4294901760, %v11729_v41  ;;  %v7355_v42 = vsub.f32 %v11728_v14, %v7325_v58  ;;  %v11733_v14 = vld [vmem:[#allocation26_spill] sm:$0xff] }
 0x1bb   : > { %v11522_v26 = vand.u32 4294901760, %v7318_v61  ;;  %1051 = vmatpush.msra.mxu3 %v7282_v54  ;;  %v902_v53 = vsub.f32 %v7306_v27, %v901_v2  ;;  %v908_v39 = vsub.f32 %v7310_v36, %v907_v55  ;;  %v11521_v62 = vand.u32 4294901760, %v7322_v52 }
 0x1bc   : > { %v896_v15 = vsub.f32 %v7302_v24, %v895_v56  ;;  %857 = vmatpush.msra.mxu0 %v7285_v63  ;;  %999 = vmatpush.msra.mxu2 %v7306_v27  ;;  %v914_v4 = vsub.f32 %v7314_v47, %v913_v0  ;;  %v11519_v11 = vand.u32 4294901760, %v7337_v40  ;;  %v7372_v59 = vand.u32 4294901760, %v11730_v7 }
 0x1bd   : > { %1053 = vmatpush.msra.mxu3 %v7285_v63  ;;  %v903_v38 = vand.u32 4294901760, %v902_v53  ;;  %v920_v60 = vsub.f32 %v7318_v61, %v11522_v26  ;;  %v909_v1 = vand.u32 4294901760, %v908_v39  ;;  %v7376_v37 = vsub.f32 %v11729_v41, %v7351_v51  ;;  %v11734_v39 = vld [vmem:[#allocation25_spill] sm:$0xff] }
 0x1be   : > { %v897_v49 = vand.u32 4294901760, %v896_v15  ;;  %859 = vmatpush.msra.mxu0 %v7288_v33  ;;  %1002 = vmatpush.msra.mxu2 %v7310_v36  ;;  %v7379_v57 = vand.u32 4294901760, %v11731_v6  ;;  %v11517_v43 = vand.u32 4294901760, %v7355_v42  ;;  %v915_v10 = vand.u32 4294901760, %v914_v4 }
 0x1bf   : > { %1055 = vmatpush.msra.mxu3 %v7288_v33  ;;  %v926_v48 = vsub.f32 %v7322_v52, %v11521_v62  ;;  %v7390_v9 = vsub.f32 %v11730_v7, %v7372_v59  ;;  %v7393_v12 = vand.u32 4294901760, %v11732_v3  ;;  %v932_v8 = vsub.f32 %v7337_v40, %v11519_v11 }
 0x1c0   : > { %898 = vmatpush.msra.mxu1 %v897_v49  ;;  %861 = vmatpush.msra.mxu0 %v7291_v5  ;;  %v921_v44 = vand.u32 4294901760, %v920_v60  ;;  %v11516_v34 = vand.u32 4294901760, %v7376_v37  ;;  %v7404_v46 = vsub.f32 %v11731_v6, %v7379_v57  ;;  %v7407_v15 = vand.u32 4294901760, %v11733_v14 }
 0x1c1   : > { %1005 = vmatpush.msra.mxu2 %v7314_v47  ;;  %1057 = vmatpush.msra.mxu3 %v7291_v5  ;;  %v938_v53 = vsub.f32 %v7355_v42, %v11517_v43  ;;  %v7413_v41 = vand.u32 4294901760, %v11734_v39  ;;  %v927_v49 = vand.u32 4294901760, %v926_v48  ;;  %v7421_v4 = vsub.f32 %v11732_v3, %v7393_v12 }
 0x1c2   : > { %904 = vmatpush.msra.mxu1 %v903_v38  ;;  %863 = vmatpush.msra.mxu0 %v7294_v45  ;;  %v11518_v38 = vand.u32 4294901760, %v7390_v9  ;;  %v933_v60 = vand.u32 4294901760, %v932_v8  ;;  %v944_v6 = vsub.f32 %v7376_v37, %v11516_v34  ;;  %v7435_v48 = vsub.f32 %v11733_v14, %v7407_v15  ;;  %v11736_v14 = vld [vmem:[#allocation23_spill] sm:$0xff] }
 0x1c3   : > { %1008 = vmatpush.msra.mxu2 %v7318_v61  ;;  %1059 = vmatpush.msra.mxu3 %v7294_v45  ;;  %v939_v3 = vand.u32 4294901760, %v938_v53  ;;  %v7439_v8 = vsub.f32 %v11734_v39, %v7413_v41  ;;  %v11523_v34 = vand.u32 4294901760, %v7421_v4  ;;  %v7449_v43 = vand.u32 4294901760, %v11736_v14 }
 0x1c4   : > { %910 = vmatpush.msra.mxu1 %v909_v1  ;;  %865 = vmatpush.msra.mxu0 %v7297_v13  ;;  %v11735_v1 = vld [vmem:[#allocation24_spill] sm:$0xff]  ;;  %v7454_v53 = vand.u32 4294901760, %v6428_v35  ;;  %v945_v39 = vand.u32 4294901760, %v944_v6  ;;  %v7516_v24 = vand.u32 4294901760, %v6676_v32  ;;  %v7519_v27 = vand.u32 4294901760, %v6674_v31 }
 0x1c5   : > { %1011 = vmatpush.msra.mxu2 %v7322_v52  ;;  %1061 = vmatpush.msra.mxu3 %v7297_v13  ;;  %v7424_v7 = vand.u32 4294901760, %v11735_v1  ;;  %v11525_v62 = vand.u32 4294901760, %v7439_v8  ;;  %v11737_v36 = vand.u32 4294901760, %v7318_v61  ;;  %v7531_v47 = vand.u32 4294901760, %v11720_v28 }
 0x1c6   : > { %916 = vmatpush.msra.mxu1 %v915_v10  ;;  %867 = vmatpush.msra.mxu0 %v7325_v58  ;;  %v11520_v10 = vand.u32 4294901760, %v7404_v46 }
 0x1c7   : > { %1014 = vmatpush.msra.mxu2 %v7337_v40  ;;  %1063 = vmatpush.msra.mxu3 %v7325_v58  ;;  %v7463_v11 = vsub.f32 %v11735_v1, %v7424_v7  ;;  %v7476_v1 = vsub.f32 %v11736_v14, %v7449_v43 }
 0x1c8   : > { %922 = vmatpush.msra.mxu1 %v921_v44  ;;  %869 = vmatpush.msra.mxu0 %v7351_v51  ;;  %v950_v44 = vsub.f32 %v7390_v9, %v11518_v38  ;;  %v11524_v38 = vand.u32 4294901760, %v7435_v48 }
 0x1c9   : > { %1017 = vmatpush.msra.mxu2 %v7355_v42  ;;  %1065 = vmatpush.msra.mxu3 %v7351_v51 }
 0x1ca   : > { %928 = vmatpush.msra.mxu1 %v927_v49  ;;  %871 = vmatpush.msra.mxu0 %v7372_v59  ;;  %v956_v49 = vsub.f32 %v7404_v46, %v11520_v10  ;;  %v951_v6 = vand.u32 4294901760, %v950_v44  ;;  %v962_v10 = vsub.f32 %v7421_v4, %v11523_v34  ;;  %v11526_v44 = vand.u32 4294901760, %v7463_v11 }
 0x1cb   : > { %1020 = vmatpush.msra.mxu2 %v7376_v37  ;;  %1067 = vmatpush.msra.mxu3 %v7372_v59 }
 0x1cc   : > { %934 = vmatpush.msra.mxu1 %v933_v60  ;;  %873 = vmatpush.msra.mxu0 %v7379_v57  ;;  %v885_v60 = vsub.f32 %v6428_v35, %v7454_v53  ;;  %v957_v26 = vand.u32 4294901760, %v956_v49  ;;  %v963_v14 = vand.u32 4294901760, %v962_v10  ;;  %v11527_v49 = vand.u32 4294901760, %v7476_v1 }
 0x1cd   : > { %1023 = vmatpush.msra.mxu2 %v7390_v9  ;;  %1069 = vmatpush.msra.mxu3 %v7379_v57  ;;  %v980_v10 = vsub.f32 %v7463_v11, %v11526_v44 }
 0x1ce   : > { %940 = vmatpush.msra.mxu1 %v939_v3  ;;  %875 = vmatpush.msra.mxu0 %v7393_v12  ;;  %v968_v3 = vsub.f32 %v7435_v48, %v11524_v38  ;;  %v886_v34 = vand.u32 4294901760, %v885_v60 }
 0x1cf   : > { %1026 = vmatpush.msra.mxu2 %v7404_v46  ;;  %1071 = vmatpush.msra.mxu3 %v7393_v12 }
 0x1d0   : > { %946 = vmatpush.msra.mxu1 %v945_v39  ;;  %877 = vmatpush.msra.mxu0 %v7407_v15  ;;  %v974_v39 = vsub.f32 %v7439_v8, %v11525_v62  ;;  %v969_v38 = vand.u32 4294901760, %v968_v3  ;;  %v981_v3 = vand.u32 4294901760, %v980_v10 }
 0x1d1   : > { %1029 = vmatpush.msra.mxu2 %v7421_v4  ;;  %1073 = vmatpush.msra.mxu3 %v7407_v15 }
 0x1d2   : > { %952 = vmatpush.msra.mxu1 %v951_v6  ;;  %879 = vmatpush.msra.mxu0 %v7413_v41  ;;  %v887_v6 = vsub.f32 %v885_v60, %v886_v34  ;;  %v975_v62 = vand.u32 4294901760, %v974_v39  ;;  %v7561_v39 = vsub.f32 %v11720_v28, %v7531_v47  ;;  %v7621_v28 = vand.u32 4294901760, %v6658_v23 }
 0x1d3   : > { %1032 = vmatpush.msra.mxu2 %v7435_v48  ;;  %1075 = vmatpush.msra.mxu3 %v7413_v41 }
 0x1d4   : > { %958 = vmatpush.msra.mxu1 %v957_v26  ;;  %881 = vmatpush.msra.mxu0 %v7424_v7  ;;  %v986_v26 = vsub.f32 %v7476_v1, %v11527_v49  ;;  %v888_v44 = vand.u32 4294901760, %v887_v6  ;;  %v7568_v6 = vand.u32 4294901760, %v6662_v25 }
 0x1d5   : > { %1035 = vmatpush.msra.mxu2 %v7439_v8  ;;  %1077 = vmatpush.msra.mxu3 %v7424_v7 }
 0x1d6   : > { %964 = vmatpush.msra.mxu1 %v963_v14  ;;  %883 = vmatpush.msra.mxu0 %v7449_v43  ;;  %v987_v14 = vand.u32 4294901760, %v986_v26 }
 0x1d7   : > { %1038 = vmatpush.msra.mxu2 %v7463_v11  ;;  %1079 = vmatpush.msra.mxu3 %v7449_v43 }
 0x1d8   : > { %1090 = vmatpush.msrb.mxu0 %v895_v56  ;;  %970 = vmatpush.msra.mxu1 %v969_v38  ;;  %v7522_v56 = vand.u32 4294901760, %v6672_v30  ;;  %v7542_v38 = vsub.f32 %v6676_v32, %v7516_v24 }
 0x1d9   : > { %1041 = vmatpush.msra.mxu2 %v7476_v1  ;;  %1083 = vmatmul.f32.vlgmr.msra.gmra.mxu3 %v886_v34 }
 0x1da   : > { %1094 = vmatpush.msrb.mxu0 %v901_v2  ;;  %976 = vmatpush.msra.mxu1 %v975_v62  ;;  %v7525_v2 = vand.u32 4294901760, %v6670_v29  ;;  %v11739_v62 = vld [vmem:[#allocation40_spill] sm:$0xff]  ;;  %v7550_v61 = vsub.f32 %v6672_v30, %v7522_v56  ;;  %v11528_v26 = vand.u32 4294901760, %v7542_v38 }
 0x1db   : > { %1044 = vmatmul.f32.vlgmr.msra.gmra.mxu2 %v885_v60  ;;  %889 = vmatmul.f32.vlgmr.msra.gmra.mxu0 %v888_v44  ;;  %v7537_v34 = vand.u32 4294901760, %v11739_v62  ;;  %v11740_v44 = vand.u32 4294901760, %v7322_v52 }
 0x1dc   : > { %1098 = vmatpush.msrb.mxu0 %v907_v55  ;;  %982 = vmatpush.msra.mxu1 %v981_v3  ;;  %v11738_v55 = vld [vmem:[#allocation41_spill] sm:$0xff]  ;;  %v7554_v60 = vsub.f32 %v6670_v29, %v7525_v2 }
 0x1dd   : > { %1195 = vmatpush.msrb.mxu2 %v7516_v24 }
 0x1de   : > { %1102 = vmatpush.msrb.mxu0 %v913_v0  ;;  %988 = vmatpush.msra.mxu1 %v987_v14  ;;  %v7534_v0 = vand.u32 4294901760, %v11738_v55  ;;  %v11539_v52 = vand.u32 4294901760, %v7554_v60  ;;  %v11741_v14 = vand.u32 4294901760, %v7337_v40  ;;  %v11742_v40 = vld [vmem:[#allocation39_spill] sm:$0xff] }
 0x1df   : > { %990 = vmatmul.f32.vlgmr.msra.gmra.mxu1 %v7454_v53  ;;  %1197 = vmatpush.msrb.mxu2 %v7519_v27 }
 0x1e0   : > { %1157 = vmatpush.msrb.mxu1 %v7279_v50  ;;  %1106 = vmatpush.msrb.mxu0 %v11737_v36  ;;  %v7546_v50 = vsub.f32 %v6674_v31, %v7519_v27  ;;  %v7565_v10 = vsub.f32 %v11738_v55, %v7534_v0  ;;  %v7581_v55 = vsub.f32 %v11739_v62, %v7537_v34  ;;  %v11743_v62 = vand.u32 4294901760, %v7355_v42 }
 0x1e1   : > { %1199 = vmatpush.msrb.mxu2 %v7522_v56  ;;  %v11745_v42 = vand.u32 4294901760, %v7561_v39 }
 0x1e2   : > { %1159 = vmatpush.msrb.mxu1 %v7282_v54  ;;  %1110 = vmatpush.msrb.mxu0 %v11740_v44  ;;  %v11529_v3 = vand.u32 4294901760, %v7546_v50  ;;  %v11530_v54 = vand.u32 4294901760, %v7550_v61  ;;  %v1238_v44 = vsub.f32 %v7542_v38, %v11528_v26  ;;  %v7601_v26 = vsub.f32 %v6662_v25, %v7568_v6 }
 0x1e3   : > { %1201 = vmatpush.msrb.mxu2 %v7525_v2 }
 0x1e4   : > { %1161 = vmatpush.msrb.mxu1 %v7285_v63  ;;  %1114 = vmatpush.msrb.mxu0 %v11741_v14  ;;  %v1244_v49 = vsub.f32 %v7546_v50, %v11529_v3  ;;  %v1250_v63 = vsub.f32 %v7550_v61, %v11530_v54  ;;  %v7594_v14 = vand.u32 4294901760, %v11742_v40  ;;  %v1239_v36 = vand.u32 4294901760, %v1238_v44 }
 0x1e5   : > { %v1256_v54 = vsub.f32 %v7554_v60, %v11539_v52  ;;  %1203 = vmatpush.msrb.mxu2 %v7531_v47  ;;  %v7639_v44 = vand.u32 4294901760, %v6654_v21 }
 0x1e6   : > { %1163 = vmatpush.msrb.mxu1 %v7288_v33  ;;  %1118 = vmatpush.msrb.mxu0 %v11743_v62  ;;  %v1245_v3 = vand.u32 4294901760, %v1244_v49  ;;  %v11744_v33 = vand.u32 4294901760, %v7376_v37  ;;  %v1262_v62 = vsub.f32 %v7561_v39, %v11745_v42  ;;  %v1251_v49 = vand.u32 4294901760, %v1250_v63 }
 0x1e7   : > { %1240 = vmatpush.msrb.mxu3 %v1239_v36  ;;  %v7618_v52 = vsub.f32 %v11742_v40, %v7594_v14  ;;  %v11746_v37 = vand.u32 4294901760, %v7390_v9  ;;  %v1257_v63 = vand.u32 4294901760, %v1256_v54  ;;  %v7636_v42 = vsub.f32 %v6658_v23, %v7621_v28  ;;  %1205 = vmatpush.msrb.mxu2 %v7534_v0 }
 0x1e8   : > { %1165 = vmatpush.msrb.mxu1 %v7291_v5  ;;  %1122 = vmatpush.msrb.mxu0 %v11744_v33  ;;  %v7624_v5 = vand.u32 4294901760, %v6656_v22  ;;  %v11747_v33 = vand.u32 4294901760, %v7565_v10  ;;  %v11749_v9 = vand.u32 4294901760, %v7581_v55  ;;  %v1263_v54 = vand.u32 4294901760, %v1262_v62 }
 0x1e9   : > { %1246 = vmatpush.msrb.mxu3 %v1245_v3  ;;  %v7654_v36 = vand.u32 4294901760, %v6652_v20  ;;  %1207 = vmatpush.msrb.mxu2 %v7537_v34 }
 0x1ea   : > { %1167 = vmatpush.msrb.mxu1 %v7294_v45  ;;  %1126 = vmatpush.msrb.mxu0 %v11746_v37  ;;  %v1268_v40 = vsub.f32 %v7565_v10, %v11747_v33  ;;  %v11748_v45 = vand.u32 4294901760, %v7404_v46  ;;  %v1274_v3 = vsub.f32 %v7581_v55, %v11749_v9  ;;  %v7651_v33 = vsub.f32 %v6656_v22, %v7624_v5 }
 0x1eb   : > { %1252 = vmatpush.msrb.mxu3 %v1251_v49  ;;  %v11751_v46 = vand.u32 4294901760, %v7601_v26  ;;  %v7666_v9 = vsub.f32 %v6654_v21, %v7639_v44  ;;  %v7669_v37 = vand.u32 4294901760, %v6650_v19  ;;  %1209 = vmatpush.msrb.mxu2 %v7568_v6 }
 0x1ec   : > { %1169 = vmatpush.msrb.mxu1 %v7297_v13  ;;  %1130 = vmatpush.msrb.mxu0 %v11748_v45  ;;  %v11750_v13 = vand.u32 4294901760, %v7421_v4  ;;  %v1269_v49 = vand.u32 4294901760, %v1268_v40  ;;  %v1275_v4 = vand.u32 4294901760, %v1274_v3  ;;  %v7684_v45 = vand.u32 4294901760, %v6648_v18 }
 0x1ed   : > { %v1280_v62 = vsub.f32 %v7601_v26, %v11751_v46  ;;  %1258 = vmatpush.msrb.mxu3 %v1257_v63  ;;  %v11753_v63 = vand.u32 4294901760, %v7618_v52  ;;  %v7681_v46 = vsub.f32 %v6652_v20, %v7654_v36  ;;  %v11755_v3 = vand.u32 4294901760, %v7636_v42  ;;  %1211 = vmatpush.msrb.mxu2 %v7594_v14 }
 0x1ee   : > { %1171 = vmatpush.msrb.mxu1 %v7325_v58  ;;  %1134 = vmatpush.msrb.mxu0 %v11750_v13  ;;  %v11752_v58 = vand.u32 4294901760, %v7435_v48  ;;  %v7699_v13 = vand.u32 4294901760, %v6646_v17 }
 0x1ef   : > { %1264 = vmatpush.msrb.mxu3 %v1263_v54  ;;  %v1286_v40 = vsub.f32 %v7618_v52, %v11753_v63  ;;  %v1281_v48 = vand.u32 4294901760, %v1280_v62  ;;  %v1292_v54 = vsub.f32 %v7636_v42, %v11755_v3  ;;  %v7696_v63 = vsub.f32 %v6650_v19, %v7669_v37  ;;  %1213 = vmatpush.msrb.mxu2 %v7621_v28 }
 0x1f0   : > { %1173 = vmatpush.msrb.mxu1 %v7351_v51  ;;  %1138 = vmatpush.msrb.mxu0 %v11752_v58  ;;  %v11754_v51 = vand.u32 4294901760, %v7439_v8  ;;  %v1303_v58 = vand.u32 4294901760, %v7666_v9  ;;  %v11757_v62 = vand.u32 4294901760, %v7651_v33  ;;  %v7711_v3 = vsub.f32 %v6648_v18, %v7684_v45 }
 0x1f1   : > { %1270 = vmatpush.msrb.mxu3 %v1269_v49  ;;  %v1287_v8 = vand.u32 4294901760, %v1286_v40  ;;  %v1315_v40 = vand.u32 4294901760, %v7696_v63  ;;  %1215 = vmatpush.msrb.mxu2 %v7624_v5 }
 0x1f2   : > { %1175 = vmatpush.msrb.mxu1 %v7372_v59  ;;  %1142 = vmatpush.msrb.mxu0 %v11754_v51  ;;  %v11756_v59 = vand.u32 4294901760, %v7463_v11  ;;  %v1298_v49 = vsub.f32 %v7651_v33, %v11757_v62  ;;  %v1309_v51 = vand.u32 4294901760, %v7681_v46  ;;  %v1293_v11 = vand.u32 4294901760, %v1292_v54 }
 0x1f3   : > { %1276 = vmatpush.msrb.mxu3 %v1275_v4  ;;  %v1304_v4 = vsub.f32 %v7666_v9, %v1303_v58  ;;  %1217 = vmatpush.msrb.mxu2 %v7639_v44 }
 0x1f4   : > { %1177 = vmatpush.msrb.mxu1 %v7379_v57  ;;  %1146 = vmatpush.msrb.mxu0 %v11756_v59  ;;  %v11758_v57 = vand.u32 4294901760, %v7476_v1  ;;  %v7723_v59 = vsub.f32 %v6646_v17, %v7699_v13  ;;  %v1310_v1 = vsub.f32 %v7681_v46, %v1309_v51 }
 0x1f5   : > { %1282 = vmatpush.msrb.mxu3 %v1281_v48  ;;  %v1321_v48 = vand.u32 4294901760, %v7711_v3  ;;  %v1305_v54 = vand.u32 4294901760, %v1304_v4  ;;  %1219 = vmatpush.msrb.mxu2 %v7654_v36  ;;  %v11761_v4 = vand.u32 4294901760, %v7550_v61 }
 0x1f6   : > { %1179 = vmatpush.msrb.mxu1 %v7393_v12  ;;  %1150 = vmatpush.msrb.mxu0 %v11758_v57  ;;  %v1299_v12 = vand.u32 4294901760, %v1298_v49  ;;  %v1311_v62 = vand.u32 4294901760, %v1310_v1 }
 0x1f7   : > { %1152 = vmatmul.f32.vlgmr.msrb.gmra.mxu0 %v7454_v53  ;;  %1288 = vmatpush.msrb.mxu3 %v1287_v8  ;;  %v1327_v8 = vand.u32 4294901760, %v7723_v59 }
 0x1f8   : > { %1181 = vmatpush.msrb.mxu1 %v7407_v15  ;;  %1338 = vmatpush.msra.mxu0 %v7542_v38  ;;  %v1316_v15 = vsub.f32 %v7696_v63, %v1315_v40 }
 0x1f9   : > { %1294 = vmatpush.msrb.mxu3 %v1293_v11  ;;  %1221 = vmatpush.msrb.mxu2 %v7669_v37  ;;  %v11760_v11 = vand.u32 4294901760, %v7546_v50 }
 0x1fa   : > { %1183 = vmatpush.msrb.mxu1 %v7413_v41  ;;  %1341 = vmatpush.msra.mxu0 %v7546_v50  ;;  %v1322_v41 = vsub.f32 %v7711_v3, %v1321_v48  ;;  %v1317_v49 = vand.u32 4294901760, %v1316_v15 }
 0x1fb   : > { %1300 = vmatpush.msrb.mxu3 %v1299_v12  ;;  %1223 = vmatpush.msrb.mxu2 %v7684_v45 }
 0x1fc   : > { %1185 = vmatpush.msrb.mxu1 %v7424_v7  ;;  %1344 = vmatpush.msra.mxu0 %v7550_v61  ;;  %v1328_v7 = vsub.f32 %v7723_v59, %v1327_v8  ;;  %v1323_v57 = vand.u32 4294901760, %v1322_v41 }
 0x1fd   : > { %1306 = vmatpush.msrb.mxu3 %v1305_v54  ;;  %1225 = vmatpush.msrb.mxu2 %v7699_v13  ;;  %v1536_v54 = vstv %s1535_s29 }
 0x1fe   : > { %1187 = vmatpush.msrb.mxu1 %v7449_v43  ;;  %1347 = vmatpush.msra.mxu0 %v7554_v60  ;;  %v1329_v43 = vand.u32 4294901760, %v1328_v7 }
 0x1ff   : > { %1189 = vmatmul.f32.vlgmr.msrb.gmra.mxu1 %v7454_v53  ;;  %1312 = vmatpush.msrb.mxu3 %v1311_v62  ;;  %v11759_v53 = vand.u32 4294901760, %v7542_v38  ;;  %v11769_v38 = vand.u32 4294901760, %v7651_v33 }
 0x200   : > { %1391 = vmatpush.msra.mxu1 %v7516_v24  ;;  %1350 = vmatpush.msra.mxu0 %v7561_v39 }
 0x201   : > { %1318 = vmatpush.msrb.mxu3 %v1317_v49  ;;  %1432 = vmatpush.msra.mxu2 %v11759_v53 }
 0x202   : > { %1393 = vmatpush.msra.mxu1 %v7519_v27  ;;  %1353 = vmatpush.msra.mxu0 %v7565_v10 }
 0x203   : > { %1324 = vmatpush.msrb.mxu3 %v1323_v57  ;;  %1436 = vmatpush.msra.mxu2 %v11760_v11 }
 0x204   : > { %1395 = vmatpush.msra.mxu1 %v7522_v56  ;;  %1356 = vmatpush.msra.mxu0 %v7581_v55 }
 0x205   : > { %1330 = vmatpush.msrb.mxu3 %v1329_v43  ;;  %1440 = vmatpush.msra.mxu2 %v11761_v4 }
 0x206   : > { %1397 = vmatpush.msra.mxu1 %v7525_v2  ;;  %1359 = vmatpush.msra.mxu0 %v7601_v26 }
 0x207   : > { %1499 = vmatpush.msra.mxu3 %v7516_v24  ;;  %v11762_v24 = vand.u32 4294901760, %v7554_v60 }
 0x208   : > { %1399 = vmatpush.msra.mxu1 %v7531_v47  ;;  %1362 = vmatpush.msra.mxu0 %v7618_v52 }
 0x209   : > { %1501 = vmatpush.msra.mxu3 %v7519_v27  ;;  %1444 = vmatpush.msra.mxu2 %v11762_v24  ;;  %v11763_v27 = vand.u32 4294901760, %v7561_v39 }
 0x20a   : > { %1401 = vmatpush.msra.mxu1 %v7534_v0  ;;  %1365 = vmatpush.msra.mxu0 %v7636_v42 }
 0x20b   : > { %1503 = vmatpush.msra.mxu3 %v7522_v56  ;;  %1448 = vmatpush.msra.mxu2 %v11763_v27  ;;  %v11764_v56 = vand.u32 4294901760, %v7565_v10 }
 0x20c   : > { %1403 = vmatpush.msra.mxu1 %v7537_v34  ;;  %1368 = vmatpush.msra.mxu0 %v7651_v33 }
 0x20d   : > { %1505 = vmatpush.msra.mxu3 %v7525_v2  ;;  %1452 = vmatpush.msra.mxu2 %v11764_v56  ;;  %v11765_v2 = vand.u32 4294901760, %v7581_v55 }
 0x20e   : > { %1405 = vmatpush.msra.mxu1 %v7568_v6  ;;  %1371 = vmatpush.msra.mxu0 %v7666_v9 }
 0x20f   : > { %1507 = vmatpush.msra.mxu3 %v7531_v47  ;;  %1456 = vmatpush.msra.mxu2 %v11765_v2  ;;  %v11766_v47 = vand.u32 4294901760, %v7601_v26 }
 0x210   : > { %1407 = vmatpush.msra.mxu1 %v7594_v14  ;;  %1374 = vmatpush.msra.mxu0 %v7681_v46  ;;  %v11770_v46 = vld [vmem:[#allocation43_spill] sm:$0xff] }
 0x211   : > { %1509 = vmatpush.msra.mxu3 %v7534_v0  ;;  %1460 = vmatpush.msra.mxu2 %v11766_v47  ;;  %v11767_v0 = vand.u32 4294901760, %v7618_v52 }
 0x212   : > { %1409 = vmatpush.msra.mxu1 %v7621_v28  ;;  %1377 = vmatpush.msra.mxu0 %v7696_v63 }
 0x213   : > { %1511 = vmatpush.msra.mxu3 %v7537_v34  ;;  %1464 = vmatpush.msra.mxu2 %v11767_v0  ;;  %v11768_v34 = vand.u32 4294901760, %v7636_v42 }
 0x214   : > { %1411 = vmatpush.msra.mxu1 %v7624_v5  ;;  %1380 = vmatpush.msra.mxu0 %v7711_v3 }
 0x215   : > { %1513 = vmatpush.msra.mxu3 %v7568_v6  ;;  %1468 = vmatpush.msra.mxu2 %v11768_v34 }
 0x216   : > { %1413 = vmatpush.msra.mxu1 %v7639_v44  ;;  %1383 = vmatpush.msra.mxu0 %v7723_v59 }
 0x217   : > { %1515 = vmatpush.msra.mxu3 %v7594_v14  ;;  %1472 = vmatpush.msra.mxu2 %v11769_v38 }
 0x218   : > { %1415 = vmatpush.msra.mxu1 %v7654_v36 }
 0x219   : > { %1517 = vmatpush.msra.mxu3 %v7621_v28  ;;  %1476 = vmatpush.msra.mxu2 %v1303_v58 }
 0x21a   : > { %1417 = vmatpush.msra.mxu1 %v7669_v37 }
 0x21b   : > { %1519 = vmatpush.msra.mxu3 %v7624_v5  ;;  %1480 = vmatpush.msra.mxu2 %v1309_v51 }
 0x21c   : > { %1419 = vmatpush.msra.mxu1 %v7684_v45 }
 0x21d   : > { %1521 = vmatpush.msra.mxu3 %v7639_v44  ;;  %1484 = vmatpush.msra.mxu2 %v1315_v40 }
 0x21e   : > { %1421 = vmatpush.msra.mxu1 %v7699_v13 }
 0x21f   : > { %1523 = vmatpush.msra.mxu3 %v7654_v36  ;;  %1488 = vmatpush.msra.mxu2 %v1321_v48 }
 0x221   : > { %1525 = vmatpush.msra.mxu3 %v7669_v37  ;;  %1492 = vmatpush.msra.mxu2 %v1327_v8 }
 0x223   : > { %1527 = vmatpush.msra.mxu3 %v7684_v45 }
 0x225   : > { %1529 = vmatpush.msra.mxu3 %v7699_v13 }
 0x258   : > { %v890_v28 = vpop.f32.mrf.mxu0 }
 0x259   : > { %v891_v50 = vadd.f32 %v890_v28, %v6644_v16 }
 0x25c   : > { %v991_v61 = vpop.f32.mrf.mxu1  ;;  %v1084_v6 = vpop.f32.mrf.mxu3 }
 0x25d   : > { %v992_v60 = vadd.f32 %v991_v61, %v891_v50 }
 0x25e   : > { %v1045_v39 = vpop.f32.mrf.mxu2 }
 0x25f   : > { %v1046_v10 = vadd.f32 %v1045_v39, %v992_v60 }
 0x261   : > { %v1085_v26 = vadd.f32 %v1084_v6, %v1046_v10 }
 0x274   : > { %v1153_v52 = vpop.f32.mrf.mxu0 }
 0x275   : > { %v1154_v55 = vadd.f32 %v1153_v52, %v1085_v26 }
 0x27c   : > { %v1190_v14 = vpop.f32.mrf.mxu1 }
 0x27d   : > { %v1191_v44 = vadd.f32 %v1190_v14, %v1154_v55 }
 0x27f   : > { %6114 = vtanh.f32 %v1191_v44 }
 0x285   : > { %v6115_v5 = vpop.eup %6114 }
 0x286   : > { %v1226_v36 = vand.u32 4294901760, %v6115_v5 }
 0x288   : > { %1332 = vmatmul.f32.vlgmr.msrb.gmra.mxu3 %v1226_v36  ;;  %v1227_v42 = vsub.f32 %v6115_v5, %v1226_v36 }
 0x28a   : > { %1386 = vmatmul.f32.vlgmr.msra.gmra.mxu0 %v1227_v42  ;;  %v1228_v37 = vand.u32 4294901760, %v1227_v42 }
 0x28c   : > { %1425 = vmatmul.f32.vlgmr.msra.gmra.mxu1 %v1228_v37  ;;  %v1229_v33 = vsub.f32 %v1227_v42, %v1228_v37 }
 0x28e   : > { %v1230_v45 = vand.u32 4294901760, %v1229_v33 }
 0x290   : > { %1231 = vmatmul.f32.vlgmr.msrb.gmra.mxu2 %v1230_v45  ;;  %1531 = vmatmul.f32.vlgmr.msra.gmra.mxu3 %v1226_v36 }
 0x298   : > { %1494 = vmatmul.f32.vlgmr.msra.gmra.mxu2 %v1226_v36 }
 0x307   : > { %v1387_v51 = vpop.f32.mrf.mxu0 }
 0x309   : > { %v1426_v40 = vpop.f32.mrf.mxu1 }
 0x30b   : > { %v1333_v9 = vpop.f32.mrf.mxu3 }
 0x313   : > { %v1232_v13 = vpop.f32.mrf.mxu2  ;;  %v1532_v48 = vpop.f32.mrf.mxu3 }
 0x314   : > { %v1233_v58 = vadd.f32 %v1232_v13, %v11770_v46 }
 0x316   : > { %v1334_v63 = vadd.f32 %v1333_v9, %v1233_v58 }
 0x318   : > { %v1388_v3 = vadd.f32 %v1387_v51, %v1334_v63 }
 0x31a   : > { %v1427_v59 = vadd.f32 %v1426_v40, %v1388_v3 }
 0x31b   : > { %v1495_v12 = vpop.f32.mrf.mxu2 }
 0x31c   : > { %v1496_v1 = vadd.f32 %v1495_v12, %v1427_v59 }
 0x31e   : > { %v1533_v15 = vadd.f32 %v1532_v48, %v1496_v1 }
 0x320   : > { %v1537_v8 = vmul.f32 %v1536_v54, %v1533_v15  ;;  %850 = sbr.rel (!%p847_p3) target bundleno = 436 (0x1b4), region = 141 }
 0x322   : > { %v1538_v62 = vadd.f32 %v6428_v35, %v1537_v8  }
 0x324   : > { %v11771_v35 = vmov %v1538_v62  ;;  %v11772_v48 = vmov (%p847_p3), %v1538_v62 }
 0x325 PF:  { %1540 = vst [vmem:[#allocation2 + $0x8] sm:$0xff] %v6436_v48  ;;  %s7843_s30 = sld [smem:[#allocation5 + $0x2]]   ;;  %v11773_v35 = vmov %v6436_v48  ;;  %v6436_v48 = vphi %v11719_v48, %v11772_v48  }
 0x32b   :  { %p5836_p4 = scmp.ge.s32.totalorder %s7261_s28, %s7843_s30 }
 0x32d   :  { %5838 = sbr.rel (%p5836_p4) target bundleno = 1186 (0x4a2), region = 146 }
 0x332 LB: > { %v11774_v41 = vld [vmem:[#allocation38_spill] sm:$0xff]  ;;  %v11775_v7 = vld [vmem:[#allocation37_spill] sm:$0xff]  ;;  %v11776_v43 = vld [vmem:[#allocation36_spill] sm:$0xff]  ;;  %s2232_s2 = sld [smem:[#allocation4 + %s6444_s28]]  ;;  %s1545_s28 = sadd.s32 1, %s6444_s28   ;;  %s6444_s28 = sphi %s7261_s28, %s1545_s28   ;;  %v6440_v48 = vphi %v6436_v48, %v11824_v48  }
 0x333   : > { %v7861_v49 = vand.u32 4294901760, %v11774_v41  ;;  %v7864_v57 = vand.u32 4294901760, %v11775_v7  ;;  %v7867_v53 = vand.u32 4294901760, %v11776_v43  ;;  %v11777_v11 = vld [vmem:[#allocation35_spill] sm:$0xff]  ;;  %v11778_v24 = vld [vmem:[#allocation34_spill] sm:$0xff]  ;;  %v11779_v56 = vld [vmem:[#allocation33_spill] sm:$0xff]  ;;  %p1544_p5 = scmp.ge.s32.totalorder %s1545_s28, %s7843_s30 }
 0x334   : > { %v7870_v4 = vand.u32 4294901760, %v11777_v11  ;;  %v7873_v27 = vand.u32 4294901760, %v11778_v24  ;;  %v7876_v2 = vand.u32 4294901760, %v11779_v56  ;;  %v11780_v47 = vld [vmem:[#allocation32_spill] sm:$0xff]  ;;  %v11781_v39 = vld [vmem:[#allocation31_spill] sm:$0xff]  ;;  %v11782_v37 = vld [vmem:[#allocation30_spill] sm:$0xff] }
 0x335   : > { %v7879_v0 = vand.u32 4294901760, %v11780_v47  ;;  %1550 = vmatpush.msra.mxu0 %v7861_v49  ;;  %v7884_v34 = vsub.f32 %v11774_v41, %v7861_v49  ;;  %v7888_v38 = vsub.f32 %v11775_v7, %v7864_v57  ;;  %v7892_v28 = vsub.f32 %v11776_v43, %v7867_v53  ;;  %1746 = vmatpush.msra.mxu3 %v7861_v49  ;;  %v11783_v40 = vld [vmem:[#allocation29_spill] sm:$0xff]  ;;  %v11784_v1 = vld [vmem:[#allocation28_spill] sm:$0xff]  ;;  %v11785_v41 = vld [vmem:[#allocation27_spill] sm:$0xff] }
 0x336   : > { %v7896_v50 = vsub.f32 %v11777_v11, %v7870_v4  ;;  %v7900_v61 = vsub.f32 %v11778_v24, %v7873_v27  ;;  %v7904_v60 = vsub.f32 %v11779_v56, %v7876_v2  ;;  %v7907_v10 = vand.u32 4294901760, %v11781_v39 }
 0x337   : > { %1552 = vmatpush.msra.mxu0 %v7864_v57  ;;  %v1592_v6 = vand.u32 4294901760, %v7884_v34  ;;  %v1598_v26 = vand.u32 4294901760, %v7888_v38  ;;  %v1604_v52 = vand.u32 4294901760, %v7892_v28  ;;  %1693 = vmatpush.msra.mxu2 %v7884_v34  ;;  %v7919_v44 = vsub.f32 %v11780_v47, %v7879_v0  ;;  %v11786_v47 = vld [vmem:[#allocation26_spill] sm:$0xff] }
 0x338   : > { %v1610_v55 = vand.u32 4294901760, %v7896_v50  ;;  %v1616_v14 = vand.u32 4294901760, %v7900_v61  ;;  %1748 = vmatpush.msra.mxu3 %v7864_v57  ;;  %v7933_v33 = vand.u32 4294901760, %v11782_v37  ;;  %v7937_v45 = vsub.f32 %v11781_v39, %v7907_v10 }
 0x339   : > { %v1593_v5 = vsub.f32 %v7884_v34, %v1592_v6  ;;  %1554 = vmatpush.msra.mxu0 %v7867_v53  ;;  %v1599_v36 = vsub.f32 %v7888_v38, %v1598_v26  ;;  %v1605_v42 = vsub.f32 %v7892_v28, %v1604_v52  ;;  %1696 = vmatpush.msra.mxu2 %v7888_v38  ;;  %v11545_v58 = vand.u32 4294901760, %v7904_v60 }
 0x33a   : > { %1750 = vmatpush.msra.mxu3 %v7867_v53  ;;  %v1611_v46 = vsub.f32 %v7896_v50, %v1610_v55  ;;  %v1617_v63 = vsub.f32 %v7900_v61, %v1616_v14  ;;  %v11544_v51 = vand.u32 4294901760, %v7919_v44  ;;  %v7954_v59 = vand.u32 4294901760, %v11783_v40 }
 0x33b   : > { %v1594_v9 = vand.u32 4294901760, %v1593_v5  ;;  %v1600_v13 = vand.u32 4294901760, %v1599_v36  ;;  %1556 = vmatpush.msra.mxu0 %v7870_v4  ;;  %1699 = vmatpush.msra.mxu2 %v7892_v28  ;;  %v1606_v3 = vand.u32 4294901760, %v1605_v42  ;;  %v7958_v12 = vsub.f32 %v11782_v37, %v7933_v33  ;;  %v11787_v36 = vld [vmem:[#allocation25_spill] sm:$0xff]  ;;  %v11790_v28 = vld [vmem:[#allocation42_spill] sm:$0xff] }
 0x33c   : > { %1752 = vmatpush.msra.mxu3 %v7870_v4  ;;  %v7961_v54 = vand.u32 4294901760, %v11784_v1  ;;  %v11542_v15 = vand.u32 4294901760, %v7937_v45  ;;  %v1612_v8 = vand.u32 4294901760, %v1611_v46  ;;  %v1623_v62 = vsub.f32 %v7904_v60, %v11545_v58 }
 0x33d   : > { %1595 = vmatpush.msra.mxu1 %v1594_v9  ;;  %1558 = vmatpush.msra.mxu0 %v7873_v27  ;;  %v7972_v35 = vsub.f32 %v11783_v40, %v7954_v59  ;;  %v7975_v7 = vand.u32 4294901760, %v11785_v41  ;;  %v1629_v43 = vsub.f32 %v7919_v44, %v11544_v51  ;;  %v1618_v11 = vand.u32 4294901760, %v1617_v63  ;;  %v11788_v63 = vld [vmem:[#allocation24_spill] sm:$0xff] }
 0x33e   : > { %1702 = vmatpush.msra.mxu2 %v7896_v50  ;;  %1754 = vmatpush.msra.mxu3 %v7873_v27  ;;  %v11540_v24 = vand.u32 4294901760, %v7958_v12  ;;  %v7986_v56 = vsub.f32 %v11784_v1, %v7961_v54  ;;  %v7989_v39 = vand.u32 4294901760, %v11786_v47  ;;  %v1635_v5 = vsub.f32 %v7937_v45, %v11542_v15 }
 0x33f   : > { %1601 = vmatpush.msra.mxu1 %v1600_v13  ;;  %1560 = vmatpush.msra.mxu0 %v7876_v2  ;;  %v7995_v42 = vand.u32 4294901760, %v11787_v36  ;;  %v1624_v37 = vand.u32 4294901760, %v1623_v62  ;;  %v11541_v9 = vand.u32 4294901760, %v7972_v35  ;;  %v8003_v13 = vsub.f32 %v11785_v41, %v7975_v7 }
 0x340   : > { %1705 = vmatpush.msra.mxu2 %v7900_v61  ;;  %1756 = vmatpush.msra.mxu3 %v7876_v2  ;;  %v1630_v46 = vand.u32 4294901760, %v1629_v43  ;;  %v1641_v40 = vsub.f32 %v7958_v12, %v11540_v24  ;;  %v11543_v1 = vand.u32 4294901760, %v7986_v56  ;;  %v1636_v62 = vand.u32 4294901760, %v1635_v5 }
 0x341   : > { %1607 = vmatpush.msra.mxu1 %v1606_v3  ;;  %1562 = vmatpush.msra.mxu0 %v7879_v0  ;;  %v8006_v3 = vand.u32 4294901760, %v11788_v63  ;;  %v8021_v41 = vsub.f32 %v11787_v36, %v7995_v42  ;;  %v1647_v43 = vsub.f32 %v7972_v35, %v11541_v9  ;;  %v8036_v5 = vand.u32 4294901760, %v6440_v48 }
 0x342   : > { %1708 = vmatpush.msra.mxu2 %v7904_v60  ;;  %1758 = vmatpush.msra.mxu3 %v7879_v0  ;;  %v1642_v36 = vand.u32 4294901760, %v1641_v40  ;;  %v8098_v34 = vand.u32 4294901760, %v6676_v32  ;;  %v8101_v38 = vand.u32 4294901760, %v6674_v31  ;;  %v8113_v50 = vand.u32 4294901760, %v11790_v28 }
 0x343   : > { %1613 = vmatpush.msra.mxu1 %v1612_v8  ;;  %1564 = vmatpush.msra.mxu0 %v7907_v10  ;;  %v8017_v8 = vsub.f32 %v11786_v47, %v7989_v39  ;;  %v11789_v47 = vld [vmem:[#allocation23_spill] sm:$0xff]  ;;  %v8045_v15 = vsub.f32 %v11788_v63, %v8006_v3  ;;  %v1648_v40 = vand.u32 4294901760, %v1647_v43  ;;  %v11548_v51 = vand.u32 4294901760, %v8021_v41 }
 0x344   : > { %1711 = vmatpush.msra.mxu2 %v7919_v44  ;;  %1760 = vmatpush.msra.mxu3 %v7907_v10  ;;  %v8031_v24 = vand.u32 4294901760, %v11789_v47 }
 0x345   : > { %1619 = vmatpush.msra.mxu1 %v1618_v11  ;;  %1566 = vmatpush.msra.mxu0 %v7933_v33  ;;  %v11546_v11 = vand.u32 4294901760, %v8003_v13  ;;  %v11547_v9 = vand.u32 4294901760, %v8017_v8  ;;  %v11549_v43 = vand.u32 4294901760, %v8045_v15 }
 0x346   : > { %1714 = vmatpush.msra.mxu2 %v7937_v45  ;;  %1762 = vmatpush.msra.mxu3 %v7933_v33  ;;  %v8058_v63 = vsub.f32 %v11789_v47, %v8031_v24 }
 0x347   : > { %1625 = vmatpush.msra.mxu1 %v1624_v37  ;;  %1568 = vmatpush.msra.mxu0 %v7954_v59  ;;  %v1653_v37 = vsub.f32 %v7986_v56, %v11543_v1  ;;  %v1659_v1 = vsub.f32 %v8003_v13, %v11546_v11 }
 0x348   : > { %1717 = vmatpush.msra.mxu2 %v7958_v12  ;;  %1764 = vmatpush.msra.mxu3 %v7954_v59 }
 0x349   : > { %1631 = vmatpush.msra.mxu1 %v1630_v46  ;;  %1570 = vmatpush.msra.mxu0 %v7961_v54  ;;  %v1582_v46 = vsub.f32 %v6440_v48, %v8036_v5  ;;  %v1654_v58 = vand.u32 4294901760, %v1653_v37  ;;  %v1660_v47 = vand.u32 4294901760, %v1659_v1  ;;  %v11551_v37 = vand.u32 4294901760, %v8058_v63 }
 0x34a   : > { %1720 = vmatpush.msra.mxu2 %v7972_v35  ;;  %1766 = vmatpush.msra.mxu3 %v7961_v54  ;;  %v1677_v1 = vsub.f32 %v8045_v15, %v11549_v43 }
 0x34b   : > { %1637 = vmatpush.msra.mxu1 %v1636_v62  ;;  %1572 = vmatpush.msra.mxu0 %v7975_v7  ;;  %v1665_v62 = vsub.f32 %v8017_v8, %v11547_v9  ;;  %v1583_v11 = vand.u32 4294901760, %v1582_v46 }
 0x34c   : > { %1723 = vmatpush.msra.mxu2 %v7986_v56  ;;  %1768 = vmatpush.msra.mxu3 %v7975_v7 }
 0x34d   : > { %1643 = vmatpush.msra.mxu1 %v1642_v36  ;;  %1574 = vmatpush.msra.mxu0 %v7989_v39  ;;  %v1671_v36 = vsub.f32 %v8021_v41, %v11548_v51  ;;  %v1666_v9 = vand.u32 4294901760, %v1665_v62  ;;  %v1678_v62 = vand.u32 4294901760, %v1677_v1  ;;  %v8150_v1 = vand.u32 4294901760, %v6662_v25 }
 0x34e   : > { %1726 = vmatpush.msra.mxu2 %v8003_v13  ;;  %1770 = vmatpush.msra.mxu3 %v7989_v39 }
 0x34f   : > { %1649 = vmatpush.msra.mxu1 %v1648_v40  ;;  %1576 = vmatpush.msra.mxu0 %v7995_v42  ;;  %v1584_v40 = vsub.f32 %v1582_v46, %v1583_v11  ;;  %v1672_v51 = vand.u32 4294901760, %v1671_v36 }
 0x350   : > { %1729 = vmatpush.msra.mxu2 %v8017_v8  ;;  %1772 = vmatpush.msra.mxu3 %v7995_v42 }
 0x351   : > { %1655 = vmatpush.msra.mxu1 %v1654_v58  ;;  %1578 = vmatpush.msra.mxu0 %v8006_v3  ;;  %v1683_v58 = vsub.f32 %v8058_v63, %v11551_v37  ;;  %v1585_v43 = vand.u32 4294901760, %v1584_v40 }
 0x352   : > { %1732 = vmatpush.msra.mxu2 %v8021_v41  ;;  %1774 = vmatpush.msra.mxu3 %v8006_v3 }
 0x353   : > { %1661 = vmatpush.msra.mxu1 %v1660_v47  ;;  %1580 = vmatpush.msra.mxu0 %v8031_v24  ;;  %v1684_v47 = vand.u32 4294901760, %v1683_v58 }
 0x354   : > { %1735 = vmatpush.msra.mxu2 %v8045_v15  ;;  %1776 = vmatpush.msra.mxu3 %v8031_v24 }
 0x355   : > { %1787 = vmatpush.msrb.mxu0 %v1592_v6  ;;  %1667 = vmatpush.msra.mxu1 %v1666_v9  ;;  %v8104_v6 = vand.u32 4294901760, %v6672_v30 }
 0x356   : > { %1738 = vmatpush.msra.mxu2 %v8058_v63  ;;  %1780 = vmatmul.f32.vlgmr.msra.gmra.mxu3 %v1583_v11  ;;  %v8124_v11 = vsub.f32 %v6676_v32, %v8098_v34 }
 0x357   : > { %1791 = vmatpush.msrb.mxu0 %v1598_v26  ;;  %1673 = vmatpush.msra.mxu1 %v1672_v51  ;;  %v8107_v26 = vand.u32 4294901760, %v6670_v29  ;;  %v11792_v51 = vld [vmem:[#allocation40_spill] sm:$0xff]  ;;  %v8132_v61 = vsub.f32 %v6672_v30, %v8104_v6 }
 0x358   : > { %1741 = vmatmul.f32.vlgmr.msra.gmra.mxu2 %v1582_v46  ;;  %1586 = vmatmul.f32.vlgmr.msra.gmra.mxu0 %v1585_v43  ;;  %v8119_v9 = vand.u32 4294901760, %v11792_v51  ;;  %v11793_v46 = vand.u32 4294901760, %v7904_v60  ;;  %v8143_v43 = vsub.f32 %v11790_v28, %v8113_v50  ;;  %v11550_v40 = vand.u32 4294901760, %v8124_v11 }
 0x359   : > { %1795 = vmatpush.msrb.mxu0 %v1604_v52  ;;  %1679 = vmatpush.msra.mxu1 %v1678_v62  ;;  %v11791_v52 = vld [vmem:[#allocation41_spill] sm:$0xff]  ;;  %v11794_v62 = vand.u32 4294901760, %v7919_v44  ;;  %v11795_v44 = vld [vmem:[#allocation39_spill] sm:$0xff] }
 0x35a   : > { %1892 = vmatpush.msrb.mxu2 %v8098_v34  ;;  %v8163_v28 = vsub.f32 %v11792_v51, %v8119_v9  ;;  %v11796_v51 = vand.u32 4294901760, %v7937_v45  ;;  %v11798_v45 = vand.u32 4294901760, %v8143_v43 }
 0x35b   : > { %1799 = vmatpush.msrb.mxu0 %v1610_v55  ;;  %1685 = vmatpush.msra.mxu1 %v1684_v47  ;;  %v8116_v55 = vand.u32 4294901760, %v11791_v52  ;;  %v8203_v47 = vand.u32 4294901760, %v6658_v23 }
 0x35c   : > { %1687 = vmatmul.f32.vlgmr.msra.gmra.mxu1 %v8036_v5  ;;  %1894 = vmatpush.msrb.mxu2 %v8101_v38 }
 0x35d   : > { %1854 = vmatpush.msrb.mxu1 %v7861_v49  ;;  %1803 = vmatpush.msrb.mxu0 %v1616_v14  ;;  %v8128_v49 = vsub.f32 %v6674_v31, %v8101_v38  ;;  %v8136_v14 = vsub.f32 %v6670_v29, %v8107_v26  ;;  %v8147_v36 = vsub.f32 %v11791_v52, %v8116_v55 }
 0x35e   : > { %v1935_v52 = vsub.f32 %v8124_v11, %v11550_v40  ;;  %v8183_v40 = vsub.f32 %v6662_v25, %v8150_v1  ;;  %1896 = vmatpush.msrb.mxu2 %v8104_v6 }
 0x35f   : > { %1856 = vmatpush.msrb.mxu1 %v7864_v57  ;;  %1807 = vmatpush.msrb.mxu0 %v11793_v46  ;;  %v11552_v58 = vand.u32 4294901760, %v8128_v49  ;;  %v11553_v57 = vand.u32 4294901760, %v8132_v61  ;;  %v11554_v60 = vand.u32 4294901760, %v8136_v14 }
 0x360   : > { %v1936_v37 = vand.u32 4294901760, %v1935_v52  ;;  %1898 = vmatpush.msrb.mxu2 %v8107_v26  ;;  %v8221_v52 = vand.u32 4294901760, %v6654_v21 }
 0x361   : > { %1858 = vmatpush.msrb.mxu1 %v7867_v53  ;;  %1811 = vmatpush.msrb.mxu0 %v11794_v62  ;;  %v1941_v46 = vsub.f32 %v8128_v49, %v11552_v58  ;;  %v1947_v53 = vsub.f32 %v8132_v61, %v11553_v57  ;;  %v8176_v62 = vand.u32 4294901760, %v11795_v44  ;;  %v1953_v57 = vsub.f32 %v8136_v14, %v11554_v60 }
 0x362   : > { %1937 = vmatpush.msrb.mxu3 %v1936_v37  ;;  %1900 = vmatpush.msrb.mxu2 %v8113_v50  ;;  %v8236_v37 = vand.u32 4294901760, %v6652_v20 }
 0x363   : > { %1860 = vmatpush.msrb.mxu1 %v7870_v4  ;;  %1815 = vmatpush.msrb.mxu0 %v11796_v51  ;;  %v1942_v58 = vand.u32 4294901760, %v1941_v46  ;;  %v11797_v4 = vand.u32 4294901760, %v7958_v12  ;;  %v1959_v51 = vsub.f32 %v8143_v43, %v11798_v45  ;;  %v1948_v46 = vand.u32 4294901760, %v1947_v53 }
 0x364   : > { %v8200_v60 = vsub.f32 %v11795_v44, %v8176_v62  ;;  %v11799_v12 = vand.u32 4294901760, %v7972_v35  ;;  %v1954_v53 = vand.u32 4294901760, %v1953_v57  ;;  %v8218_v45 = vsub.f32 %v6658_v23, %v8203_v47  ;;  %1902 = vmatpush.msrb.mxu2 %v8116_v55 }
 0x365   : > { %1862 = vmatpush.msrb.mxu1 %v7873_v27  ;;  %1819 = vmatpush.msrb.mxu0 %v11797_v4  ;;  %v8206_v27 = vand.u32 4294901760, %v6656_v22  ;;  %v11800_v4 = vand.u32 4294901760, %v8147_v36  ;;  %v11802_v35 = vand.u32 4294901760, %v8163_v28  ;;  %v1960_v57 = vand.u32 4294901760, %v1959_v51 }
 0x366   : > { %1943 = vmatpush.msrb.mxu3 %v1942_v58  ;;  %1904 = vmatpush.msrb.mxu2 %v8119_v9 }
 0x367   : > { %1864 = vmatpush.msrb.mxu1 %v7876_v2  ;;  %1823 = vmatpush.msrb.mxu0 %v11799_v12  ;;  %v1965_v44 = vsub.f32 %v8147_v36, %v11800_v4  ;;  %v11801_v2 = vand.u32 4294901760, %v7986_v56  ;;  %v1971_v58 = vsub.f32 %v8163_v28, %v11802_v35  ;;  %v8233_v4 = vsub.f32 %v6656_v22, %v8206_v27 }
 0x368   : > { %1949 = vmatpush.msrb.mxu3 %v1948_v46  ;;  %v11804_v56 = vand.u32 4294901760, %v8183_v40  ;;  %v8248_v35 = vsub.f32 %v6654_v21, %v8221_v52  ;;  %v8251_v12 = vand.u32 4294901760, %v6650_v19  ;;  %1906 = vmatpush.msrb.mxu2 %v8150_v1 }
 0x369   : > { %1866 = vmatpush.msrb.mxu1 %v7879_v0  ;;  %1827 = vmatpush.msrb.mxu0 %v11801_v2  ;;  %v11803_v0 = vand.u32 4294901760, %v8003_v13  ;;  %v1966_v46 = vand.u32 4294901760, %v1965_v44  ;;  %v1972_v13 = vand.u32 4294901760, %v1971_v58  ;;  %v8266_v2 = vand.u32 4294901760, %v6648_v18 }
 0x36a   : > { %v1977_v51 = vsub.f32 %v8183_v40, %v11804_v56  ;;  %1955 = vmatpush.msrb.mxu3 %v1954_v53  ;;  %v11806_v53 = vand.u32 4294901760, %v8200_v60  ;;  %v8263_v56 = vsub.f32 %v6652_v20, %v8236_v37  ;;  %v11808_v58 = vand.u32 4294901760, %v8218_v45  ;;  %1908 = vmatpush.msrb.mxu2 %v8176_v62 }
 0x36b   : > { %1868 = vmatpush.msrb.mxu1 %v7907_v10  ;;  %1831 = vmatpush.msrb.mxu0 %v11803_v0  ;;  %v11805_v10 = vand.u32 4294901760, %v8017_v8  ;;  %v8281_v0 = vand.u32 4294901760, %v6646_v17 }
 0x36c   : > { %1961 = vmatpush.msrb.mxu3 %v1960_v57  ;;  %v1983_v44 = vsub.f32 %v8200_v60, %v11806_v53  ;;  %v1978_v8 = vand.u32 4294901760, %v1977_v51  ;;  %v1989_v57 = vsub.f32 %v8218_v45, %v11808_v58  ;;  %v8278_v53 = vsub.f32 %v6650_v19, %v8251_v12  ;;  %1910 = vmatpush.msrb.mxu2 %v8203_v47 }
 0x36d   : > { %1870 = vmatpush.msrb.mxu1 %v7933_v33  ;;  %1835 = vmatpush.msrb.mxu0 %v11805_v10  ;;  %v11807_v33 = vand.u32 4294901760, %v8021_v41  ;;  %v2000_v10 = vand.u32 4294901760, %v8248_v35  ;;  %v11810_v51 = vand.u32 4294901760, %v8233_v4  ;;  %v8293_v58 = vsub.f32 %v6648_v18, %v8266_v2 }
 0x36e   : > { %1967 = vmatpush.msrb.mxu3 %v1966_v46  ;;  %v1984_v41 = vand.u32 4294901760, %v1983_v44  ;;  %v2012_v44 = vand.u32 4294901760, %v8278_v53  ;;  %1912 = vmatpush.msrb.mxu2 %v8206_v27 }
 0x36f   : > { %1872 = vmatpush.msrb.mxu1 %v7954_v59  ;;  %1839 = vmatpush.msrb.mxu0 %v11807_v33  ;;  %v11809_v59 = vand.u32 4294901760, %v8045_v15  ;;  %v1995_v46 = vsub.f32 %v8233_v4, %v11810_v51  ;;  %v2006_v33 = vand.u32 4294901760, %v8263_v56  ;;  %v1990_v15 = vand.u32 4294901760, %v1989_v57 }
 0x370   : > { %1973 = vmatpush.msrb.mxu3 %v1972_v13  ;;  %v2001_v13 = vsub.f32 %v8248_v35, %v2000_v10  ;;  %1914 = vmatpush.msrb.mxu2 %v8221_v52 }
 0x371   : > { %1874 = vmatpush.msrb.mxu1 %v7961_v54  ;;  %1843 = vmatpush.msrb.mxu0 %v11809_v59  ;;  %v11811_v54 = vand.u32 4294901760, %v8058_v63  ;;  %v8305_v59 = vsub.f32 %v6646_v17, %v8281_v0  ;;  %v2007_v63 = vsub.f32 %v8263_v56, %v2006_v33 }
 0x372   : > { %1979 = vmatpush.msrb.mxu3 %v1978_v8  ;;  %v2018_v8 = vand.u32 4294901760, %v8293_v58  ;;  %v2002_v57 = vand.u32 4294901760, %v2001_v13  ;;  %1916 = vmatpush.msrb.mxu2 %v8236_v37  ;;  %v11814_v13 = vand.u32 4294901760, %v8132_v61 }
 0x373   : > { %1876 = vmatpush.msrb.mxu1 %v7975_v7  ;;  %1847 = vmatpush.msrb.mxu0 %v11811_v54  ;;  %v1996_v7 = vand.u32 4294901760, %v1995_v46  ;;  %v2008_v51 = vand.u32 4294901760, %v2007_v63 }
 0x374   : > { %1849 = vmatmul.f32.vlgmr.msrb.gmra.mxu0 %v8036_v5  ;;  %1985 = vmatpush.msrb.mxu3 %v1984_v41  ;;  %v2024_v41 = vand.u32 4294901760, %v8305_v59 }
 0x375   : > { %1878 = vmatpush.msrb.mxu1 %v7989_v39  ;;  %2035 = vmatpush.msra.mxu0 %v8124_v11  ;;  %v2013_v39 = vsub.f32 %v8278_v53, %v2012_v44 }
 0x376   : > { %1991 = vmatpush.msrb.mxu3 %v1990_v15  ;;  %1918 = vmatpush.msrb.mxu2 %v8251_v12  ;;  %v11813_v15 = vand.u32 4294901760, %v8128_v49 }
 0x377   : > { %1880 = vmatpush.msrb.mxu1 %v7995_v42  ;;  %2038 = vmatpush.msra.mxu0 %v8128_v49  ;;  %v2019_v42 = vsub.f32 %v8293_v58, %v2018_v8  ;;  %v2014_v46 = vand.u32 4294901760, %v2013_v39 }
 0x378   : > { %1997 = vmatpush.msrb.mxu3 %v1996_v7  ;;  %1920 = vmatpush.msrb.mxu2 %v8266_v2 }
 0x379   : > { %1882 = vmatpush.msrb.mxu1 %v8006_v3  ;;  %2041 = vmatpush.msra.mxu0 %v8132_v61  ;;  %v2025_v3 = vsub.f32 %v8305_v59, %v2024_v41  ;;  %v2020_v54 = vand.u32 4294901760, %v2019_v42 }
 0x37a   : > { %2003 = vmatpush.msrb.mxu3 %v2002_v57  ;;  %1922 = vmatpush.msrb.mxu2 %v8281_v0  ;;  %v2233_v57 = vstv %s2232_s2 }
 0x37b   : > { %1884 = vmatpush.msrb.mxu1 %v8031_v24  ;;  %2044 = vmatpush.msra.mxu0 %v8136_v14  ;;  %v2026_v24 = vand.u32 4294901760, %v2025_v3 }
 0x37c   : > { %1886 = vmatmul.f32.vlgmr.msrb.gmra.mxu1 %v8036_v5  ;;  %2009 = vmatpush.msrb.mxu3 %v2008_v51  ;;  %v11812_v5 = vand.u32 4294901760, %v8124_v11  ;;  %v11822_v11 = vand.u32 4294901760, %v8233_v4 }
 0x37d   : > { %2088 = vmatpush.msra.mxu1 %v8098_v34  ;;  %2047 = vmatpush.msra.mxu0 %v8143_v43 }
 0x37e   : > { %2015 = vmatpush.msrb.mxu3 %v2014_v46  ;;  %2129 = vmatpush.msra.mxu2 %v11812_v5 }
 0x37f   : > { %2090 = vmatpush.msra.mxu1 %v8101_v38  ;;  %2050 = vmatpush.msra.mxu0 %v8147_v36 }
 0x380   : > { %2021 = vmatpush.msrb.mxu3 %v2020_v54  ;;  %2133 = vmatpush.msra.mxu2 %v11813_v15 }
 0x381   : > { %2092 = vmatpush.msra.mxu1 %v8104_v6  ;;  %2053 = vmatpush.msra.mxu0 %v8163_v28 }
 0x382   : > { %2027 = vmatpush.msrb.mxu3 %v2026_v24  ;;  %2137 = vmatpush.msra.mxu2 %v11814_v13 }
 0x383   : > { %2094 = vmatpush.msra.mxu1 %v8107_v26  ;;  %2056 = vmatpush.msra.mxu0 %v8183_v40 }
 0x384   : > { %2196 = vmatpush.msra.mxu3 %v8098_v34  ;;  %v11815_v34 = vand.u32 4294901760, %v8136_v14 }
 0x385   : > { %2096 = vmatpush.msra.mxu1 %v8113_v50  ;;  %2059 = vmatpush.msra.mxu0 %v8200_v60 }
 0x386   : > { %2198 = vmatpush.msra.mxu3 %v8101_v38  ;;  %2141 = vmatpush.msra.mxu2 %v11815_v34  ;;  %v11816_v38 = vand.u32 4294901760, %v8143_v43 }
 0x387   : > { %2098 = vmatpush.msra.mxu1 %v8116_v55  ;;  %2062 = vmatpush.msra.mxu0 %v8218_v45 }
 0x388   : > { %2200 = vmatpush.msra.mxu3 %v8104_v6  ;;  %2145 = vmatpush.msra.mxu2 %v11816_v38  ;;  %v11817_v6 = vand.u32 4294901760, %v8147_v36 }
 0x389   : > { %2100 = vmatpush.msra.mxu1 %v8119_v9  ;;  %2065 = vmatpush.msra.mxu0 %v8233_v4 }
 0x38a   : > { %2202 = vmatpush.msra.mxu3 %v8107_v26  ;;  %2149 = vmatpush.msra.mxu2 %v11817_v6  ;;  %v11818_v26 = vand.u32 4294901760, %v8163_v28 }
 0x38b   : > { %2102 = vmatpush.msra.mxu1 %v8150_v1  ;;  %2068 = vmatpush.msra.mxu0 %v8248_v35 }
 0x38c   : > { %2204 = vmatpush.msra.mxu3 %v8113_v50  ;;  %2153 = vmatpush.msra.mxu2 %v11818_v26  ;;  %v11819_v50 = vand.u32 4294901760, %v8183_v40 }
 0x38d   : > { %2104 = vmatpush.msra.mxu1 %v8176_v62  ;;  %2071 = vmatpush.msra.mxu0 %v8263_v56  ;;  %v11823_v56 = vld [vmem:[#allocation43_spill] sm:$0xff] }
 0x38e   : > { %2206 = vmatpush.msra.mxu3 %v8116_v55  ;;  %2157 = vmatpush.msra.mxu2 %v11819_v50  ;;  %v11820_v55 = vand.u32 4294901760, %v8200_v60 }
 0x38f   : > { %2106 = vmatpush.msra.mxu1 %v8203_v47  ;;  %2074 = vmatpush.msra.mxu0 %v8278_v53 }
 0x390   : > { %2208 = vmatpush.msra.mxu3 %v8119_v9  ;;  %2161 = vmatpush.msra.mxu2 %v11820_v55  ;;  %v11821_v9 = vand.u32 4294901760, %v8218_v45 }
 0x391   : > { %2108 = vmatpush.msra.mxu1 %v8206_v27  ;;  %2077 = vmatpush.msra.mxu0 %v8293_v58 }
 0x392   : > { %2210 = vmatpush.msra.mxu3 %v8150_v1  ;;  %2165 = vmatpush.msra.mxu2 %v11821_v9 }
 0x393   : > { %2110 = vmatpush.msra.mxu1 %v8221_v52  ;;  %2080 = vmatpush.msra.mxu0 %v8305_v59 }
 0x394   : > { %2212 = vmatpush.msra.mxu3 %v8176_v62  ;;  %2169 = vmatpush.msra.mxu2 %v11822_v11 }
 0x395   : > { %2112 = vmatpush.msra.mxu1 %v8236_v37 }
 0x396   : > { %2214 = vmatpush.msra.mxu3 %v8203_v47  ;;  %2173 = vmatpush.msra.mxu2 %v2000_v10 }
 0x397   : > { %2114 = vmatpush.msra.mxu1 %v8251_v12 }
 0x398   : > { %2216 = vmatpush.msra.mxu3 %v8206_v27  ;;  %2177 = vmatpush.msra.mxu2 %v2006_v33 }
 0x399   : > { %2116 = vmatpush.msra.mxu1 %v8266_v2 }
 0x39a   : > { %2218 = vmatpush.msra.mxu3 %v8221_v52  ;;  %2181 = vmatpush.msra.mxu2 %v2012_v44 }
 0x39b   : > { %2118 = vmatpush.msra.mxu1 %v8281_v0 }
 0x39c   : > { %2220 = vmatpush.msra.mxu3 %v8236_v37  ;;  %2185 = vmatpush.msra.mxu2 %v2018_v8 }
 0x39e   : > { %2222 = vmatpush.msra.mxu3 %v8251_v12  ;;  %2189 = vmatpush.msra.mxu2 %v2024_v41 }
 0x3a0   : > { %2224 = vmatpush.msra.mxu3 %v8266_v2 }
 0x3a2   : > { %2226 = vmatpush.msra.mxu3 %v8281_v0 }
 0x3d5   : > { %v1587_v49 = vpop.f32.mrf.mxu0 }
 0x3d6   : > { %v1588_v61 = vadd.f32 %v1587_v49, %v6644_v16 }
 0x3d9   : > { %v1688_v14 = vpop.f32.mrf.mxu1  ;;  %v1781_v40 = vpop.f32.mrf.mxu3 }
 0x3da   : > { %v1689_v43 = vadd.f32 %v1688_v14, %v1588_v61 }
 0x3db   : > { %v1742_v36 = vpop.f32.mrf.mxu2 }
 0x3dc   : > { %v1743_v1 = vadd.f32 %v1742_v36, %v1689_v43 }
 0x3de   : > { %v1782_v60 = vadd.f32 %v1781_v40, %v1743_v1 }
 0x3f1   : > { %v1850_v47 = vpop.f32.mrf.mxu0 }
 0x3f2   : > { %v1851_v28 = vadd.f32 %v1850_v47, %v1782_v60 }
 0x3f9   : > { %v1887_v62 = vpop.f32.mrf.mxu1 }
 0x3fa   : > { %v1888_v52 = vadd.f32 %v1887_v62, %v1851_v28 }
 0x3fc   : > { %6116 = vtanh.f32 %v1888_v52 }
 0x402   : > { %v6117_v27 = vpop.eup %6116 }
 0x403   : > { %v1923_v37 = vand.u32 4294901760, %v6117_v27 }
 0x405   : > { %2029 = vmatmul.f32.vlgmr.msrb.gmra.mxu3 %v1923_v37  ;;  %v1924_v45 = vsub.f32 %v6117_v27, %v1923_v37 }
 0x407   : > { %2083 = vmatmul.f32.vlgmr.msra.gmra.mxu0 %v1924_v45  ;;  %v1925_v12 = vand.u32 4294901760, %v1924_v45 }
 0x409   : > { %2122 = vmatmul.f32.vlgmr.msra.gmra.mxu1 %v1925_v12  ;;  %v1926_v4 = vsub.f32 %v1924_v45, %v1925_v12 }
 0x40b   : > { %v1927_v2 = vand.u32 4294901760, %v1926_v4 }
 0x40d   : > { %1928 = vmatmul.f32.vlgmr.msrb.gmra.mxu2 %v1927_v2  ;;  %2228 = vmatmul.f32.vlgmr.msra.gmra.mxu3 %v1923_v37 }
 0x415   : > { %2191 = vmatmul.f32.vlgmr.msra.gmra.mxu2 %v1923_v37 }
 0x484   : > { %v2084_v33 = vpop.f32.mrf.mxu0 }
 0x486   : > { %v2123_v44 = vpop.f32.mrf.mxu1 }
 0x488   : > { %v2030_v35 = vpop.f32.mrf.mxu3 }
 0x490   : > { %v1929_v0 = vpop.f32.mrf.mxu2  ;;  %v2229_v8 = vpop.f32.mrf.mxu3 }
 0x491   : > { %v1930_v10 = vadd.f32 %v1929_v0, %v11823_v56 }
 0x493   : > { %v2031_v53 = vadd.f32 %v2030_v35, %v1930_v10 }
 0x495   : > { %v2085_v58 = vadd.f32 %v2084_v33, %v2031_v53 }
 0x497   : > { %v2124_v59 = vadd.f32 %v2123_v44, %v2085_v58 }
 0x498   : > { %v2192_v7 = vpop.f32.mrf.mxu2 }
 0x499   : > { %v2193_v63 = vadd.f32 %v2192_v7, %v2124_v59 }
 0x49b   : > { %v2230_v39 = vadd.f32 %v2229_v8, %v2193_v63 }
 0x49d   : > { %v2234_v41 = vmul.f32 %v2233_v57, %v2230_v39  ;;  %1547 = sbr.rel (!%p1544_p5) target bundleno = 818 (0x332), region = 152 }
 0x49f   : > { %v2235_v51 = vadd.f32 %v6440_v48, %v2234_v41  }
 0x4a1   : > { %v11824_v48 = vmov %v2235_v51  ;;  %v11825_v35 = vmov (%p1544_p5), %v2235_v51 }
 0x4a2 PF:  { %2237 = vst [vmem:[#allocation2 + $0x10] sm:$0xff] %v6448_v35  ;;  %s8425_s3 = sld [smem:[#allocation5 + $0x3]]   ;;  %v11826_v48 = vmov %v6448_v35  ;;  %v6448_v35 = vphi %v11773_v35, %v11825_v35  }
 0x4a8   :  { %p5844_p6 = scmp.ge.s32.totalorder %s7843_s30, %s8425_s3 }
 0x4aa   :  { %5846 = sbr.rel (%p5844_p6) target bundleno = 1567 (0x61f), region = 157 }
 0x4af LB: > { %v11827_v42 = vld [vmem:[#allocation38_spill] sm:$0xff]  ;;  %v11828_v3 = vld [vmem:[#allocation37_spill] sm:$0xff]  ;;  %v11829_v24 = vld [vmem:[#allocation36_spill] sm:$0xff]  ;;  %s2929_s11 = sld [smem:[#allocation4 + %s6456_s30]]  ;;  %s2242_s30 = sadd.s32 1, %s6456_s30   ;;  %s6456_s30 = sphi %s7843_s30, %s2242_s30   ;;  %v6452_v35 = vphi %v6448_v35, %v11877_v35  }
 0x4b0   : > { %v8443_v46 = vand.u32 4294901760, %v11827_v42  ;;  %v8446_v54 = vand.u32 4294901760, %v11828_v3  ;;  %v8449_v5 = vand.u32 4294901760, %v11829_v24  ;;  %v11830_v15 = vld [vmem:[#allocation35_spill] sm:$0xff]  ;;  %v11831_v34 = vld [vmem:[#allocation34_spill] sm:$0xff]  ;;  %v11832_v6 = vld [vmem:[#allocation33_spill] sm:$0xff]  ;;  %p2241_p7 = scmp.ge.s32.totalorder %s2242_s30, %s8425_s3 }
 0x4b1   : > { %v8452_v13 = vand.u32 4294901760, %v11830_v15  ;;  %v8455_v38 = vand.u32 4294901760, %v11831_v34  ;;  %v8458_v26 = vand.u32 4294901760, %v11832_v6  ;;  %v11833_v50 = vld [vmem:[#allocation32_spill] sm:$0xff]  ;;  %v11834_v36 = vld [vmem:[#allocation31_spill] sm:$0xff]  ;;  %v11835_v12 = vld [vmem:[#allocation30_spill] sm:$0xff] }
 0x4b2   : > { %v8461_v55 = vand.u32 4294901760, %v11833_v50  ;;  %2247 = vmatpush.msra.mxu0 %v8443_v46  ;;  %v8466_v9 = vsub.f32 %v11827_v42, %v8443_v46  ;;  %v8470_v11 = vsub.f32 %v11828_v3, %v8446_v54  ;;  %v8474_v49 = vsub.f32 %v11829_v24, %v8449_v5  ;;  %2443 = vmatpush.msra.mxu3 %v8443_v46  ;;  %v11836_v59 = vld [vmem:[#allocation29_spill] sm:$0xff]  ;;  %v11837_v8 = vld [vmem:[#allocation28_spill] sm:$0xff]  ;;  %v11838_v42 = vld [vmem:[#allocation27_spill] sm:$0xff] }
 0x4b3   : > { %v8478_v61 = vsub.f32 %v11830_v15, %v8452_v13  ;;  %v8482_v14 = vsub.f32 %v11831_v34, %v8455_v38  ;;  %v8486_v43 = vsub.f32 %v11832_v6, %v8458_v26  ;;  %v8489_v1 = vand.u32 4294901760, %v11834_v36 }
 0x4b4   : > { %2249 = vmatpush.msra.mxu0 %v8446_v54  ;;  %v2289_v40 = vand.u32 4294901760, %v8466_v9  ;;  %v2295_v60 = vand.u32 4294901760, %v8470_v11  ;;  %v2301_v47 = vand.u32 4294901760, %v8474_v49  ;;  %2390 = vmatpush.msra.mxu2 %v8466_v9  ;;  %v8501_v52 = vsub.f32 %v11833_v50, %v8461_v55  ;;  %v11839_v50 = vld [vmem:[#allocation26_spill] sm:$0xff] }
 0x4b5   : > { %v2307_v28 = vand.u32 4294901760, %v8478_v61  ;;  %v2313_v62 = vand.u32 4294901760, %v8482_v14  ;;  %2445 = vmatpush.msra.mxu3 %v8446_v54  ;;  %v8515_v4 = vand.u32 4294901760, %v11835_v12  ;;  %v8519_v2 = vsub.f32 %v11834_v36, %v8489_v1 }
 0x4b6   : > { %v2290_v27 = vsub.f32 %v8466_v9, %v2289_v40  ;;  %2251 = vmatpush.msra.mxu0 %v8449_v5  ;;  %v2296_v37 = vsub.f32 %v8470_v11, %v2295_v60  ;;  %v2302_v45 = vsub.f32 %v8474_v49, %v2301_v47  ;;  %2393 = vmatpush.msra.mxu2 %v8470_v11  ;;  %v11560_v53 = vand.u32 4294901760, %v8486_v43 }
 0x4b7   : > { %2447 = vmatpush.msra.mxu3 %v8449_v5  ;;  %v2308_v10 = vsub.f32 %v8478_v61, %v2307_v28  ;;  %v2314_v33 = vsub.f32 %v8482_v14, %v2313_v62  ;;  %v11559_v58 = vand.u32 4294901760, %v8501_v52  ;;  %v8536_v7 = vand.u32 4294901760, %v11836_v59 }
 0x4b8   : > { %v2291_v0 = vand.u32 4294901760, %v2290_v27  ;;  %v2297_v56 = vand.u32 4294901760, %v2296_v37  ;;  %2253 = vmatpush.msra.mxu0 %v8452_v13  ;;  %2396 = vmatpush.msra.mxu2 %v8474_v49  ;;  %v2303_v44 = vand.u32 4294901760, %v2302_v45  ;;  %v8540_v63 = vsub.f32 %v11835_v12, %v8515_v4  ;;  %v11840_v37 = vld [vmem:[#allocation25_spill] sm:$0xff]  ;;  %v11843_v49 = vld [vmem:[#allocation42_spill] sm:$0xff] }
 0x4b9   : > { %2449 = vmatpush.msra.mxu3 %v8452_v13  ;;  %v8543_v57 = vand.u32 4294901760, %v11837_v8  ;;  %v11557_v39 = vand.u32 4294901760, %v8519_v2  ;;  %v2309_v41 = vand.u32 4294901760, %v2308_v10  ;;  %v2320_v51 = vsub.f32 %v8486_v43, %v11560_v53 }
 0x4ba   : > { %2292 = vmatpush.msra.mxu1 %v2291_v0  ;;  %2255 = vmatpush.msra.mxu0 %v8455_v38  ;;  %v8554_v48 = vsub.f32 %v11836_v59, %v8536_v7  ;;  %v8557_v3 = vand.u32 4294901760, %v11838_v42  ;;  %v2326_v24 = vsub.f32 %v8501_v52, %v11559_v58  ;;  %v2315_v15 = vand.u32 4294901760, %v2314_v33  ;;  %v11841_v33 = vld [vmem:[#allocation24_spill] sm:$0xff] }
 0x4bb   : > { %2399 = vmatpush.msra.mxu2 %v8478_v61  ;;  %2451 = vmatpush.msra.mxu3 %v8455_v38  ;;  %v11555_v34 = vand.u32 4294901760, %v8540_v63  ;;  %v8568_v6 = vsub.f32 %v11837_v8, %v8543_v57  ;;  %v8571_v36 = vand.u32 4294901760, %v11839_v50  ;;  %v2332_v27 = vsub.f32 %v8519_v2, %v11557_v39 }
 0x4bc   : > { %2298 = vmatpush.msra.mxu1 %v2297_v56  ;;  %2257 = vmatpush.msra.mxu0 %v8458_v26  ;;  %v8577_v45 = vand.u32 4294901760, %v11840_v37  ;;  %v2321_v12 = vand.u32 4294901760, %v2320_v51  ;;  %v11556_v0 = vand.u32 4294901760, %v8554_v48  ;;  %v8585_v56 = vsub.f32 %v11838_v42, %v8557_v3 }
 0x4bd   : > { %2402 = vmatpush.msra.mxu2 %v8482_v14  ;;  %2453 = vmatpush.msra.mxu3 %v8458_v26  ;;  %v2327_v10 = vand.u32 4294901760, %v2326_v24  ;;  %v2338_v59 = vsub.f32 %v8540_v63, %v11555_v34  ;;  %v11558_v8 = vand.u32 4294901760, %v8568_v6  ;;  %v2333_v51 = vand.u32 4294901760, %v2332_v27 }
 0x4be   : > { %2304 = vmatpush.msra.mxu1 %v2303_v44  ;;  %2259 = vmatpush.msra.mxu0 %v8461_v55  ;;  %v8588_v44 = vand.u32 4294901760, %v11841_v33  ;;  %v8603_v42 = vsub.f32 %v11840_v37, %v8577_v45  ;;  %v2344_v24 = vsub.f32 %v8554_v48, %v11556_v0  ;;  %v8618_v27 = vand.u32 4294901760, %v6452_v35 }
 0x4bf   : > { %2405 = vmatpush.msra.mxu2 %v8486_v43  ;;  %2455 = vmatpush.msra.mxu3 %v8461_v55  ;;  %v2339_v37 = vand.u32 4294901760, %v2338_v59  ;;  %v8680_v9 = vand.u32 4294901760, %v6676_v32  ;;  %v8683_v11 = vand.u32 4294901760, %v6674_v31  ;;  %v8695_v61 = vand.u32 4294901760, %v11843_v49 }
 0x4c0   : > { %2310 = vmatpush.msra.mxu1 %v2309_v41  ;;  %2261 = vmatpush.msra.mxu0 %v8489_v1  ;;  %v8599_v41 = vsub.f32 %v11839_v50, %v8571_v36  ;;  %v11842_v50 = vld [vmem:[#allocation23_spill] sm:$0xff]  ;;  %v8627_v39 = vsub.f32 %v11841_v33, %v8588_v44  ;;  %v2345_v59 = vand.u32 4294901760, %v2344_v24  ;;  %v11563_v58 = vand.u32 4294901760, %v8603_v42 }
 0x4c1   : > { %2408 = vmatpush.msra.mxu2 %v8501_v52  ;;  %2457 = vmatpush.msra.mxu3 %v8489_v1  ;;  %v8613_v34 = vand.u32 4294901760, %v11842_v50 }
 0x4c2   : > { %2316 = vmatpush.msra.mxu1 %v2315_v15  ;;  %2263 = vmatpush.msra.mxu0 %v8515_v4  ;;  %v11561_v15 = vand.u32 4294901760, %v8585_v56  ;;  %v11562_v0 = vand.u32 4294901760, %v8599_v41  ;;  %v11564_v24 = vand.u32 4294901760, %v8627_v39 }
 0x4c3   : > { %2411 = vmatpush.msra.mxu2 %v8519_v2  ;;  %2459 = vmatpush.msra.mxu3 %v8515_v4  ;;  %v8640_v33 = vsub.f32 %v11842_v50, %v8613_v34 }
 0x4c4   : > { %2322 = vmatpush.msra.mxu1 %v2321_v12  ;;  %2265 = vmatpush.msra.mxu0 %v8536_v7  ;;  %v2350_v12 = vsub.f32 %v8568_v6, %v11558_v8  ;;  %v2356_v8 = vsub.f32 %v8585_v56, %v11561_v15 }
 0x4c5   : > { %2414 = vmatpush.msra.mxu2 %v8540_v63  ;;  %2461 = vmatpush.msra.mxu3 %v8536_v7 }
 0x4c6   : > { %2328 = vmatpush.msra.mxu1 %v2327_v10  ;;  %2267 = vmatpush.msra.mxu0 %v8543_v57  ;;  %v2279_v10 = vsub.f32 %v6452_v35, %v8618_v27  ;;  %v2351_v53 = vand.u32 4294901760, %v2350_v12  ;;  %v2357_v50 = vand.u32 4294901760, %v2356_v8  ;;  %v11566_v12 = vand.u32 4294901760, %v8640_v33 }
 0x4c7   : > { %2417 = vmatpush.msra.mxu2 %v8554_v48  ;;  %2463 = vmatpush.msra.mxu3 %v8543_v57  ;;  %v2374_v8 = vsub.f32 %v8627_v39, %v11564_v24 }
 0x4c8   : > { %2334 = vmatpush.msra.mxu1 %v2333_v51  ;;  %2269 = vmatpush.msra.mxu0 %v8557_v3  ;;  %v2362_v51 = vsub.f32 %v8599_v41, %v11562_v0  ;;  %v2280_v15 = vand.u32 4294901760, %v2279_v10 }
 0x4c9   : > { %2420 = vmatpush.msra.mxu2 %v8568_v6  ;;  %2465 = vmatpush.msra.mxu3 %v8557_v3 }
 0x4ca   : > { %2340 = vmatpush.msra.mxu1 %v2339_v37  ;;  %2271 = vmatpush.msra.mxu0 %v8571_v36  ;;  %v2368_v37 = vsub.f32 %v8603_v42, %v11563_v58  ;;  %v2363_v0 = vand.u32 4294901760, %v2362_v51  ;;  %v2375_v51 = vand.u32 4294901760, %v2374_v8  ;;  %v8732_v8 = vand.u32 4294901760, %v6662_v25 }
 0x4cb   : > { %2423 = vmatpush.msra.mxu2 %v8585_v56  ;;  %2467 = vmatpush.msra.mxu3 %v8571_v36 }
 0x4cc   : > { %2346 = vmatpush.msra.mxu1 %v2345_v59  ;;  %2273 = vmatpush.msra.mxu0 %v8577_v45  ;;  %v2281_v59 = vsub.f32 %v2279_v10, %v2280_v15  ;;  %v2369_v58 = vand.u32 4294901760, %v2368_v37 }
 0x4cd   : > { %2426 = vmatpush.msra.mxu2 %v8599_v41  ;;  %2469 = vmatpush.msra.mxu3 %v8577_v45 }
 0x4ce   : > { %2352 = vmatpush.msra.mxu1 %v2351_v53  ;;  %2275 = vmatpush.msra.mxu0 %v8588_v44  ;;  %v2380_v53 = vsub.f32 %v8640_v33, %v11566_v12  ;;  %v2282_v24 = vand.u32 4294901760, %v2281_v59 }
 0x4cf   : > { %2429 = vmatpush.msra.mxu2 %v8603_v42  ;;  %2471 = vmatpush.msra.mxu3 %v8588_v44 }
 0x4d0   : > { %2358 = vmatpush.msra.mxu1 %v2357_v50  ;;  %2277 = vmatpush.msra.mxu0 %v8613_v34  ;;  %v2381_v50 = vand.u32 4294901760, %v2380_v53 }
 0x4d1   : > { %2432 = vmatpush.msra.mxu2 %v8627_v39  ;;  %2473 = vmatpush.msra.mxu3 %v8613_v34 }
 0x4d2   : > { %2484 = vmatpush.msrb.mxu0 %v2289_v40  ;;  %2364 = vmatpush.msra.mxu1 %v2363_v0  ;;  %v8686_v40 = vand.u32 4294901760, %v6672_v30 }
 0x4d3   : > { %2435 = vmatpush.msra.mxu2 %v8640_v33  ;;  %2477 = vmatmul.f32.vlgmr.msra.gmra.mxu3 %v2280_v15  ;;  %v8706_v15 = vsub.f32 %v6676_v32, %v8680_v9 }
 0x4d4   : > { %2488 = vmatpush.msrb.mxu0 %v2295_v60  ;;  %2370 = vmatpush.msra.mxu1 %v2369_v58  ;;  %v8689_v60 = vand.u32 4294901760, %v6670_v29  ;;  %v11845_v58 = vld [vmem:[#allocation40_spill] sm:$0xff]  ;;  %v8714_v14 = vsub.f32 %v6672_v30, %v8686_v40 }
 0x4d5   : > { %2438 = vmatmul.f32.vlgmr.msra.gmra.mxu2 %v2279_v10  ;;  %2283 = vmatmul.f32.vlgmr.msra.gmra.mxu0 %v2282_v24  ;;  %v8701_v0 = vand.u32 4294901760, %v11845_v58  ;;  %v11846_v10 = vand.u32 4294901760, %v8486_v43  ;;  %v8725_v24 = vsub.f32 %v11843_v49, %v8695_v61  ;;  %v11565_v59 = vand.u32 4294901760, %v8706_v15 }
 0x4d6   : > { %2492 = vmatpush.msrb.mxu0 %v2301_v47  ;;  %2376 = vmatpush.msra.mxu1 %v2375_v51  ;;  %v11844_v47 = vld [vmem:[#allocation41_spill] sm:$0xff]  ;;  %v11847_v51 = vand.u32 4294901760, %v8501_v52  ;;  %v11848_v52 = vld [vmem:[#allocation39_spill] sm:$0xff] }
 0x4d7   : > { %2589 = vmatpush.msrb.mxu2 %v8680_v9  ;;  %v8745_v49 = vsub.f32 %v11845_v58, %v8701_v0  ;;  %v11849_v58 = vand.u32 4294901760, %v8519_v2  ;;  %v11851_v2 = vand.u32 4294901760, %v8725_v24 }
 0x4d8   : > { %2496 = vmatpush.msrb.mxu0 %v2307_v28  ;;  %2382 = vmatpush.msra.mxu1 %v2381_v50  ;;  %v8698_v28 = vand.u32 4294901760, %v11844_v47  ;;  %v8785_v50 = vand.u32 4294901760, %v6658_v23 }
 0x4d9   : > { %2384 = vmatmul.f32.vlgmr.msra.gmra.mxu1 %v8618_v27  ;;  %2591 = vmatpush.msrb.mxu2 %v8683_v11 }
 0x4da   : > { %2551 = vmatpush.msrb.mxu1 %v8443_v46  ;;  %2500 = vmatpush.msrb.mxu0 %v2313_v62  ;;  %v8710_v46 = vsub.f32 %v6674_v31, %v8683_v11  ;;  %v8718_v62 = vsub.f32 %v6670_v29, %v8689_v60  ;;  %v8729_v37 = vsub.f32 %v11844_v47, %v8698_v28 }
 0x4db   : > { %v2632_v47 = vsub.f32 %v8706_v15, %v11565_v59  ;;  %v8765_v59 = vsub.f32 %v6662_v25, %v8732_v8  ;;  %2593 = vmatpush.msrb.mxu2 %v8686_v40 }
 0x4dc   : > { %2553 = vmatpush.msrb.mxu1 %v8446_v54  ;;  %2504 = vmatpush.msrb.mxu0 %v11846_v10  ;;  %v11567_v53 = vand.u32 4294901760, %v8710_v46  ;;  %v11568_v54 = vand.u32 4294901760, %v8714_v14  ;;  %v11569_v43 = vand.u32 4294901760, %v8718_v62 }
 0x4dd   : > { %v2633_v12 = vand.u32 4294901760, %v2632_v47  ;;  %2595 = vmatpush.msrb.mxu2 %v8689_v60  ;;  %v8803_v47 = vand.u32 4294901760, %v6654_v21 }
 0x4de   : > { %2555 = vmatpush.msrb.mxu1 %v8449_v5  ;;  %2508 = vmatpush.msrb.mxu0 %v11847_v51  ;;  %v2638_v10 = vsub.f32 %v8710_v46, %v11567_v53  ;;  %v2644_v5 = vsub.f32 %v8714_v14, %v11568_v54  ;;  %v8758_v51 = vand.u32 4294901760, %v11848_v52  ;;  %v2650_v54 = vsub.f32 %v8718_v62, %v11569_v43 }
 0x4df   : > { %2634 = vmatpush.msrb.mxu3 %v2633_v12  ;;  %2597 = vmatpush.msrb.mxu2 %v8695_v61  ;;  %v8818_v12 = vand.u32 4294901760, %v6652_v20 }
 0x4e0   : > { %2557 = vmatpush.msrb.mxu1 %v8452_v13  ;;  %2512 = vmatpush.msrb.mxu0 %v11849_v58  ;;  %v2639_v53 = vand.u32 4294901760, %v2638_v10  ;;  %v11850_v13 = vand.u32 4294901760, %v8540_v63  ;;  %v2656_v58 = vsub.f32 %v8725_v24, %v11851_v2  ;;  %v2645_v10 = vand.u32 4294901760, %v2644_v5 }
 0x4e1   : > { %v8782_v43 = vsub.f32 %v11848_v52, %v8758_v51  ;;  %v11852_v63 = vand.u32 4294901760, %v8554_v48  ;;  %v2651_v5 = vand.u32 4294901760, %v2650_v54  ;;  %v8800_v2 = vsub.f32 %v6658_v23, %v8785_v50  ;;  %2599 = vmatpush.msrb.mxu2 %v8698_v28 }
 0x4e2   : > { %2559 = vmatpush.msrb.mxu1 %v8455_v38  ;;  %2516 = vmatpush.msrb.mxu0 %v11850_v13  ;;  %v8788_v38 = vand.u32 4294901760, %v6656_v22  ;;  %v11853_v13 = vand.u32 4294901760, %v8729_v37  ;;  %v11855_v48 = vand.u32 4294901760, %v8745_v49  ;;  %v2657_v54 = vand.u32 4294901760, %v2656_v58 }
 0x4e3   : > { %2640 = vmatpush.msrb.mxu3 %v2639_v53  ;;  %2601 = vmatpush.msrb.mxu2 %v8701_v0 }
 0x4e4   : > { %2561 = vmatpush.msrb.mxu1 %v8458_v26  ;;  %2520 = vmatpush.msrb.mxu0 %v11852_v63  ;;  %v2662_v52 = vsub.f32 %v8729_v37, %v11853_v13  ;;  %v11854_v26 = vand.u32 4294901760, %v8568_v6  ;;  %v2668_v53 = vsub.f32 %v8745_v49, %v11855_v48  ;;  %v8815_v13 = vsub.f32 %v6656_v22, %v8788_v38 }
 0x4e5   : > { %2646 = vmatpush.msrb.mxu3 %v2645_v10  ;;  %v11857_v6 = vand.u32 4294901760, %v8765_v59  ;;  %v8830_v48 = vsub.f32 %v6654_v21, %v8803_v47  ;;  %v8833_v63 = vand.u32 4294901760, %v6650_v19  ;;  %2603 = vmatpush.msrb.mxu2 %v8732_v8 }
 0x4e6   : > { %2563 = vmatpush.msrb.mxu1 %v8461_v55  ;;  %2524 = vmatpush.msrb.mxu0 %v11854_v26  ;;  %v11856_v55 = vand.u32 4294901760, %v8585_v56  ;;  %v2663_v10 = vand.u32 4294901760, %v2662_v52  ;;  %v2669_v56 = vand.u32 4294901760, %v2668_v53  ;;  %v8848_v26 = vand.u32 4294901760, %v6648_v18 }
 0x4e7   : > { %v2674_v58 = vsub.f32 %v8765_v59, %v11857_v6  ;;  %2652 = vmatpush.msrb.mxu3 %v2651_v5  ;;  %v11859_v5 = vand.u32 4294901760, %v8782_v43  ;;  %v8845_v6 = vsub.f32 %v6652_v20, %v8818_v12  ;;  %v11861_v53 = vand.u32 4294901760, %v8800_v2  ;;  %2605 = vmatpush.msrb.mxu2 %v8758_v51 }
 0x4e8   : > { %2565 = vmatpush.msrb.mxu1 %v8489_v1  ;;  %2528 = vmatpush.msrb.mxu0 %v11856_v55  ;;  %v11858_v1 = vand.u32 4294901760, %v8599_v41  ;;  %v8863_v55 = vand.u32 4294901760, %v6646_v17 }
 0x4e9   : > { %2658 = vmatpush.msrb.mxu3 %v2657_v54  ;;  %v2680_v52 = vsub.f32 %v8782_v43, %v11859_v5  ;;  %v2675_v41 = vand.u32 4294901760, %v2674_v58  ;;  %v2686_v54 = vsub.f32 %v8800_v2, %v11861_v53  ;;  %v8860_v5 = vsub.f32 %v6650_v19, %v8833_v63  ;;  %2607 = vmatpush.msrb.mxu2 %v8785_v50 }
 0x4ea   : > { %2567 = vmatpush.msrb.mxu1 %v8515_v4  ;;  %2532 = vmatpush.msrb.mxu0 %v11858_v1  ;;  %v11860_v4 = vand.u32 4294901760, %v8603_v42  ;;  %v2697_v1 = vand.u32 4294901760, %v8830_v48  ;;  %v11863_v58 = vand.u32 4294901760, %v8815_v13  ;;  %v8875_v53 = vsub.f32 %v6648_v18, %v8848_v26 }
 0x4eb   : > { %2664 = vmatpush.msrb.mxu3 %v2663_v10  ;;  %v2681_v42 = vand.u32 4294901760, %v2680_v52  ;;  %v2709_v52 = vand.u32 4294901760, %v8860_v5  ;;  %2609 = vmatpush.msrb.mxu2 %v8788_v38 }
 0x4ec   : > { %2569 = vmatpush.msrb.mxu1 %v8536_v7  ;;  %2536 = vmatpush.msrb.mxu0 %v11860_v4  ;;  %v11862_v7 = vand.u32 4294901760, %v8627_v39  ;;  %v2692_v10 = vsub.f32 %v8815_v13, %v11863_v58  ;;  %v2703_v4 = vand.u32 4294901760, %v8845_v6  ;;  %v2687_v39 = vand.u32 4294901760, %v2686_v54 }
 0x4ed   : > { %2670 = vmatpush.msrb.mxu3 %v2669_v56  ;;  %v2698_v56 = vsub.f32 %v8830_v48, %v2697_v1  ;;  %2611 = vmatpush.msrb.mxu2 %v8803_v47 }
 0x4ee   : > { %2571 = vmatpush.msrb.mxu1 %v8543_v57  ;;  %2540 = vmatpush.msrb.mxu0 %v11862_v7  ;;  %v11864_v57 = vand.u32 4294901760, %v8640_v33  ;;  %v8887_v7 = vsub.f32 %v6646_v17, %v8863_v55  ;;  %v2704_v33 = vsub.f32 %v8845_v6, %v2703_v4 }
 0x4ef   : > { %2676 = vmatpush.msrb.mxu3 %v2675_v41  ;;  %v2715_v41 = vand.u32 4294901760, %v8875_v53  ;;  %v2699_v54 = vand.u32 4294901760, %v2698_v56  ;;  %2613 = vmatpush.msrb.mxu2 %v8818_v12  ;;  %v11867_v56 = vand.u32 4294901760, %v8714_v14 }
 0x4f0   : > { %2573 = vmatpush.msrb.mxu1 %v8557_v3  ;;  %2544 = vmatpush.msrb.mxu0 %v11864_v57  ;;  %v2693_v3 = vand.u32 4294901760, %v2692_v10  ;;  %v2705_v58 = vand.u32 4294901760, %v2704_v33 }
 0x4f1   : > { %2546 = vmatmul.f32.vlgmr.msrb.gmra.mxu0 %v8618_v27  ;;  %2682 = vmatpush.msrb.mxu3 %v2681_v42  ;;  %v2721_v42 = vand.u32 4294901760, %v8887_v7 }
 0x4f2   : > { %2575 = vmatpush.msrb.mxu1 %v8571_v36  ;;  %2732 = vmatpush.msra.mxu0 %v8706_v15  ;;  %v2710_v36 = vsub.f32 %v8860_v5, %v2709_v52 }
 0x4f3   : > { %2688 = vmatpush.msrb.mxu3 %v2687_v39  ;;  %2615 = vmatpush.msrb.mxu2 %v8833_v63  ;;  %v11866_v39 = vand.u32 4294901760, %v8710_v46 }
 0x4f4   : > { %2577 = vmatpush.msrb.mxu1 %v8577_v45  ;;  %2735 = vmatpush.msra.mxu0 %v8710_v46  ;;  %v2716_v45 = vsub.f32 %v8875_v53, %v2715_v41  ;;  %v2711_v10 = vand.u32 4294901760, %v2710_v36 }
 0x4f5   : > { %2694 = vmatpush.msrb.mxu3 %v2693_v3  ;;  %2617 = vmatpush.msrb.mxu2 %v8848_v26 }
 0x4f6   : > { %2579 = vmatpush.msrb.mxu1 %v8588_v44  ;;  %2738 = vmatpush.msra.mxu0 %v8714_v14  ;;  %v2722_v44 = vsub.f32 %v8887_v7, %v2721_v42  ;;  %v2717_v57 = vand.u32 4294901760, %v2716_v45 }
 0x4f7   : > { %2700 = vmatpush.msrb.mxu3 %v2699_v54  ;;  %2619 = vmatpush.msrb.mxu2 %v8863_v55  ;;  %v2930_v54 = vstv %s2929_s11 }
 0x4f8   : > { %2581 = vmatpush.msrb.mxu1 %v8613_v34  ;;  %2741 = vmatpush.msra.mxu0 %v8718_v62  ;;  %v2723_v34 = vand.u32 4294901760, %v2722_v44 }
 0x4f9   : > { %2583 = vmatmul.f32.vlgmr.msrb.gmra.mxu1 %v8618_v27  ;;  %2706 = vmatpush.msrb.mxu3 %v2705_v58  ;;  %v11865_v27 = vand.u32 4294901760, %v8706_v15  ;;  %v11875_v15 = vand.u32 4294901760, %v8815_v13 }
 0x4fa   : > { %2785 = vmatpush.msra.mxu1 %v8680_v9  ;;  %2744 = vmatpush.msra.mxu0 %v8725_v24 }
 0x4fb   : > { %2712 = vmatpush.msrb.mxu3 %v2711_v10  ;;  %2826 = vmatpush.msra.mxu2 %v11865_v27 }
 0x4fc   : > { %2787 = vmatpush.msra.mxu1 %v8683_v11  ;;  %2747 = vmatpush.msra.mxu0 %v8729_v37 }
 0x4fd   : > { %2718 = vmatpush.msrb.mxu3 %v2717_v57  ;;  %2830 = vmatpush.msra.mxu2 %v11866_v39 }
 0x4fe   : > { %2789 = vmatpush.msra.mxu1 %v8686_v40  ;;  %2750 = vmatpush.msra.mxu0 %v8745_v49 }
 0x4ff   : > { %2724 = vmatpush.msrb.mxu3 %v2723_v34  ;;  %2834 = vmatpush.msra.mxu2 %v11867_v56 }
 0x500   : > { %2791 = vmatpush.msra.mxu1 %v8689_v60  ;;  %2753 = vmatpush.msra.mxu0 %v8765_v59 }
 0x501   : > { %2893 = vmatpush.msra.mxu3 %v8680_v9  ;;  %v11868_v9 = vand.u32 4294901760, %v8718_v62 }
 0x502   : > { %2793 = vmatpush.msra.mxu1 %v8695_v61  ;;  %2756 = vmatpush.msra.mxu0 %v8782_v43 }
 0x503   : > { %2895 = vmatpush.msra.mxu3 %v8683_v11  ;;  %2838 = vmatpush.msra.mxu2 %v11868_v9  ;;  %v11869_v11 = vand.u32 4294901760, %v8725_v24 }
 0x504   : > { %2795 = vmatpush.msra.mxu1 %v8698_v28  ;;  %2759 = vmatpush.msra.mxu0 %v8800_v2 }
 0x505   : > { %2897 = vmatpush.msra.mxu3 %v8686_v40  ;;  %2842 = vmatpush.msra.mxu2 %v11869_v11  ;;  %v11870_v40 = vand.u32 4294901760, %v8729_v37 }
 0x506   : > { %2797 = vmatpush.msra.mxu1 %v8701_v0  ;;  %2762 = vmatpush.msra.mxu0 %v8815_v13 }
 0x507   : > { %2899 = vmatpush.msra.mxu3 %v8689_v60  ;;  %2846 = vmatpush.msra.mxu2 %v11870_v40  ;;  %v11871_v60 = vand.u32 4294901760, %v8745_v49 }
 0x508   : > { %2799 = vmatpush.msra.mxu1 %v8732_v8  ;;  %2765 = vmatpush.msra.mxu0 %v8830_v48 }
 0x509   : > { %2901 = vmatpush.msra.mxu3 %v8695_v61  ;;  %2850 = vmatpush.msra.mxu2 %v11871_v60  ;;  %v11872_v61 = vand.u32 4294901760, %v8765_v59 }
 0x50a   : > { %2801 = vmatpush.msra.mxu1 %v8758_v51  ;;  %2768 = vmatpush.msra.mxu0 %v8845_v6  ;;  %v11876_v6 = vld [vmem:[#allocation43_spill] sm:$0xff] }
 0x50b   : > { %2903 = vmatpush.msra.mxu3 %v8698_v28  ;;  %2854 = vmatpush.msra.mxu2 %v11872_v61  ;;  %v11873_v28 = vand.u32 4294901760, %v8782_v43 }
 0x50c   : > { %2803 = vmatpush.msra.mxu1 %v8785_v50  ;;  %2771 = vmatpush.msra.mxu0 %v8860_v5 }
 0x50d   : > { %2905 = vmatpush.msra.mxu3 %v8701_v0  ;;  %2858 = vmatpush.msra.mxu2 %v11873_v28  ;;  %v11874_v0 = vand.u32 4294901760, %v8800_v2 }
 0x50e   : > { %2805 = vmatpush.msra.mxu1 %v8788_v38  ;;  %2774 = vmatpush.msra.mxu0 %v8875_v53 }
 0x50f   : > { %2907 = vmatpush.msra.mxu3 %v8732_v8  ;;  %2862 = vmatpush.msra.mxu2 %v11874_v0 }
 0x510   : > { %2807 = vmatpush.msra.mxu1 %v8803_v47  ;;  %2777 = vmatpush.msra.mxu0 %v8887_v7 }
 0x511   : > { %2909 = vmatpush.msra.mxu3 %v8758_v51  ;;  %2866 = vmatpush.msra.mxu2 %v11875_v15 }
 0x512   : > { %2809 = vmatpush.msra.mxu1 %v8818_v12 }
 0x513   : > { %2911 = vmatpush.msra.mxu3 %v8785_v50  ;;  %2870 = vmatpush.msra.mxu2 %v2697_v1 }
 0x514   : > { %2811 = vmatpush.msra.mxu1 %v8833_v63 }
 0x515   : > { %2913 = vmatpush.msra.mxu3 %v8788_v38  ;;  %2874 = vmatpush.msra.mxu2 %v2703_v4 }
 0x516   : > { %2813 = vmatpush.msra.mxu1 %v8848_v26 }
 0x517   : > { %2915 = vmatpush.msra.mxu3 %v8803_v47  ;;  %2878 = vmatpush.msra.mxu2 %v2709_v52 }
 0x518   : > { %2815 = vmatpush.msra.mxu1 %v8863_v55 }
 0x519   : > { %2917 = vmatpush.msra.mxu3 %v8818_v12  ;;  %2882 = vmatpush.msra.mxu2 %v2715_v41 }
 0x51b   : > { %2919 = vmatpush.msra.mxu3 %v8833_v63  ;;  %2886 = vmatpush.msra.mxu2 %v2721_v42 }
 0x51d   : > { %2921 = vmatpush.msra.mxu3 %v8848_v26 }
 0x51f   : > { %2923 = vmatpush.msra.mxu3 %v8863_v55 }
 0x552   : > { %v2284_v46 = vpop.f32.mrf.mxu0 }
 0x553   : > { %v2285_v14 = vadd.f32 %v2284_v46, %v6644_v16 }
 0x556   : > { %v2385_v62 = vpop.f32.mrf.mxu1  ;;  %v2478_v59 = vpop.f32.mrf.mxu3 }
 0x557   : > { %v2386_v24 = vadd.f32 %v2385_v62, %v2285_v14 }
 0x558   : > { %v2439_v37 = vpop.f32.mrf.mxu2 }
 0x559   : > { %v2440_v8 = vadd.f32 %v2439_v37, %v2386_v24 }
 0x55b   : > { %v2479_v43 = vadd.f32 %v2478_v59, %v2440_v8 }
 0x56e   : > { %v2547_v50 = vpop.f32.mrf.mxu0 }
 0x56f   : > { %v2548_v49 = vadd.f32 %v2547_v50, %v2479_v43 }
 0x576   : > { %v2584_v51 = vpop.f32.mrf.mxu1 }
 0x577   : > { %v2585_v47 = vadd.f32 %v2584_v51, %v2548_v49 }
 0x579   : > { %6118 = vtanh.f32 %v2585_v47 }
 0x57f   : > { %v6119_v38 = vpop.eup %6118 }
 0x580   : > { %v2620_v12 = vand.u32 4294901760, %v6119_v38 }
 0x582   : > { %2726 = vmatmul.f32.vlgmr.msrb.gmra.mxu3 %v2620_v12  ;;  %v2621_v2 = vsub.f32 %v6119_v38, %v2620_v12 }
 0x584   : > { %2780 = vmatmul.f32.vlgmr.msra.gmra.mxu0 %v2621_v2  ;;  %v2622_v63 = vand.u32 4294901760, %v2621_v2 }
 0x586   : > { %2819 = vmatmul.f32.vlgmr.msra.gmra.mxu1 %v2622_v63  ;;  %v2623_v13 = vsub.f32 %v2621_v2, %v2622_v63 }
 0x588   : > { %v2624_v26 = vand.u32 4294901760, %v2623_v13 }
 0x58a   : > { %2625 = vmatmul.f32.vlgmr.msrb.gmra.mxu2 %v2624_v26  ;;  %2925 = vmatmul.f32.vlgmr.msra.gmra.mxu3 %v2620_v12 }
 0x592   : > { %2888 = vmatmul.f32.vlgmr.msra.gmra.mxu2 %v2620_v12 }
 0x601   : > { %v2781_v4 = vpop.f32.mrf.mxu0 }
 0x603   : > { %v2820_v52 = vpop.f32.mrf.mxu1 }
 0x605   : > { %v2727_v48 = vpop.f32.mrf.mxu3 }
 0x60d   : > { %v2626_v55 = vpop.f32.mrf.mxu2  ;;  %v2926_v41 = vpop.f32.mrf.mxu3 }
 0x60e   : > { %v2627_v1 = vadd.f32 %v2626_v55, %v11876_v6 }
 0x610   : > { %v2728_v5 = vadd.f32 %v2727_v48, %v2627_v1 }
 0x612   : > { %v2782_v53 = vadd.f32 %v2781_v4, %v2728_v5 }
 0x614   : > { %v2821_v7 = vadd.f32 %v2820_v52, %v2782_v53 }
 0x615   : > { %v2889_v3 = vpop.f32.mrf.mxu2 }
 0x616   : > { %v2890_v33 = vadd.f32 %v2889_v3, %v2821_v7 }
 0x618   : > { %v2927_v36 = vadd.f32 %v2926_v41, %v2890_v33 }
 0x61a   : > { %v2931_v42 = vmul.f32 %v2930_v54, %v2927_v36  ;;  %2244 = sbr.rel (!%p2241_p7) target bundleno = 1199 (0x4af), region = 163 }
 0x61c   : > { %v2932_v58 = vadd.f32 %v6452_v35, %v2931_v42  }
 0x61e   : > { %v11877_v35 = vmov %v2932_v58  ;;  %v11878_v48 = vmov (%p2241_p7), %v2932_v58 }
 0x61f PF:  { %2934 = vst [vmem:[#allocation2 + $0x18] sm:$0xff] %v6460_v48  ;;  %s9007_s12 = sld [smem:[#allocation5 + $0x4]]   ;;  %v11879_v35 = vmov %v6460_v48  ;;  %v6460_v48 = vphi %v11826_v48, %v11878_v48  }
 0x625   :  { %p5852_p8 = scmp.ge.s32.totalorder %s8425_s3, %s9007_s12 }
 0x627   :  { %5854 = sbr.rel (%p5852_p8) target bundleno = 1948 (0x79c), region = 168 }
 0x62c LB: > { %v11880_v45 = vld [vmem:[#allocation38_spill] sm:$0xff]  ;;  %v11881_v44 = vld [vmem:[#allocation37_spill] sm:$0xff]  ;;  %v11882_v34 = vld [vmem:[#allocation36_spill] sm:$0xff]  ;;  %s3626_s13 = sld [smem:[#allocation4 + %s6468_s3]]  ;;  %s2939_s3 = sadd.s32 1, %s6468_s3   ;;  %s6468_s3 = sphi %s8425_s3, %s2939_s3   ;;  %v6464_v48 = vphi %v6460_v48, %v11930_v48  }
 0x62d   : > { %v9025_v10 = vand.u32 4294901760, %v11880_v45  ;;  %v9028_v57 = vand.u32 4294901760, %v11881_v44  ;;  %v9031_v27 = vand.u32 4294901760, %v11882_v34  ;;  %v11883_v39 = vld [vmem:[#allocation35_spill] sm:$0xff]  ;;  %v11884_v9 = vld [vmem:[#allocation34_spill] sm:$0xff]  ;;  %v11885_v40 = vld [vmem:[#allocation33_spill] sm:$0xff]  ;;  %p2938_p9 = scmp.ge.s32.totalorder %s2939_s3, %s9007_s12 }
 0x62e   : > { %v9034_v56 = vand.u32 4294901760, %v11883_v39  ;;  %v9037_v11 = vand.u32 4294901760, %v11884_v9  ;;  %v9040_v60 = vand.u32 4294901760, %v11885_v40  ;;  %v11886_v61 = vld [vmem:[#allocation32_spill] sm:$0xff]  ;;  %v11887_v37 = vld [vmem:[#allocation31_spill] sm:$0xff]  ;;  %v11888_v63 = vld [vmem:[#allocation30_spill] sm:$0xff] }
 0x62f   : > { %v9043_v28 = vand.u32 4294901760, %v11886_v61  ;;  %2944 = vmatpush.msra.mxu0 %v9025_v10  ;;  %v9048_v0 = vsub.f32 %v11880_v45, %v9025_v10  ;;  %v9052_v15 = vsub.f32 %v11881_v44, %v9028_v57  ;;  %v9056_v46 = vsub.f32 %v11882_v34, %v9031_v27  ;;  %3140 = vmatpush.msra.mxu3 %v9025_v10  ;;  %v11889_v7 = vld [vmem:[#allocation29_spill] sm:$0xff]  ;;  %v11890_v41 = vld [vmem:[#allocation28_spill] sm:$0xff]  ;;  %v11891_v45 = vld [vmem:[#allocation27_spill] sm:$0xff] }
 0x630   : > { %v9060_v14 = vsub.f32 %v11883_v39, %v9034_v56  ;;  %v9064_v62 = vsub.f32 %v11884_v9, %v9037_v11  ;;  %v9068_v24 = vsub.f32 %v11885_v40, %v9040_v60  ;;  %v9071_v8 = vand.u32 4294901760, %v11887_v37 }
 0x631   : > { %2946 = vmatpush.msra.mxu0 %v9028_v57  ;;  %v2986_v59 = vand.u32 4294901760, %v9048_v0  ;;  %v2992_v43 = vand.u32 4294901760, %v9052_v15  ;;  %v2998_v50 = vand.u32 4294901760, %v9056_v46  ;;  %3087 = vmatpush.msra.mxu2 %v9048_v0  ;;  %v9083_v47 = vsub.f32 %v11886_v61, %v9043_v28  ;;  %v11892_v61 = vld [vmem:[#allocation26_spill] sm:$0xff] }
 0x632   : > { %v3004_v49 = vand.u32 4294901760, %v9060_v14  ;;  %v3010_v51 = vand.u32 4294901760, %v9064_v62  ;;  %3142 = vmatpush.msra.mxu3 %v9028_v57  ;;  %v9097_v13 = vand.u32 4294901760, %v11888_v63  ;;  %v9101_v26 = vsub.f32 %v11887_v37, %v9071_v8 }
 0x633   : > { %v2987_v38 = vsub.f32 %v9048_v0, %v2986_v59  ;;  %2948 = vmatpush.msra.mxu0 %v9031_v27  ;;  %v2993_v12 = vsub.f32 %v9052_v15, %v2992_v43  ;;  %v2999_v2 = vsub.f32 %v9056_v46, %v2998_v50  ;;  %3090 = vmatpush.msra.mxu2 %v9052_v15  ;;  %v11575_v5 = vand.u32 4294901760, %v9068_v24 }
 0x634   : > { %3144 = vmatpush.msra.mxu3 %v9031_v27  ;;  %v3005_v1 = vsub.f32 %v9060_v14, %v3004_v49  ;;  %v3011_v4 = vsub.f32 %v9064_v62, %v3010_v51  ;;  %v11574_v53 = vand.u32 4294901760, %v9083_v47  ;;  %v9118_v3 = vand.u32 4294901760, %v11889_v7 }
 0x635   : > { %v2988_v55 = vand.u32 4294901760, %v2987_v38  ;;  %v2994_v6 = vand.u32 4294901760, %v2993_v12  ;;  %2950 = vmatpush.msra.mxu0 %v9034_v56  ;;  %3093 = vmatpush.msra.mxu2 %v9056_v46  ;;  %v3000_v52 = vand.u32 4294901760, %v2999_v2  ;;  %v9122_v33 = vsub.f32 %v11888_v63, %v9097_v13  ;;  %v11893_v12 = vld [vmem:[#allocation25_spill] sm:$0xff]  ;;  %v11896_v46 = vld [vmem:[#allocation42_spill] sm:$0xff] }
 0x636   : > { %3146 = vmatpush.msra.mxu3 %v9034_v56  ;;  %v9125_v54 = vand.u32 4294901760, %v11890_v41  ;;  %v11572_v36 = vand.u32 4294901760, %v9101_v26  ;;  %v3006_v42 = vand.u32 4294901760, %v3005_v1  ;;  %v3017_v58 = vsub.f32 %v9068_v24, %v11575_v5 }
 0x637   : > { %2989 = vmatpush.msra.mxu1 %v2988_v55  ;;  %2952 = vmatpush.msra.mxu0 %v9037_v11  ;;  %v9136_v35 = vsub.f32 %v11889_v7, %v9118_v3  ;;  %v9139_v44 = vand.u32 4294901760, %v11891_v45  ;;  %v3023_v34 = vsub.f32 %v9083_v47, %v11574_v53  ;;  %v3012_v39 = vand.u32 4294901760, %v3011_v4  ;;  %v11894_v4 = vld [vmem:[#allocation24_spill] sm:$0xff] }
 0x638   : > { %3096 = vmatpush.msra.mxu2 %v9060_v14  ;;  %3148 = vmatpush.msra.mxu3 %v9037_v11  ;;  %v11570_v9 = vand.u32 4294901760, %v9122_v33  ;;  %v9150_v40 = vsub.f32 %v11890_v41, %v9125_v54  ;;  %v9153_v37 = vand.u32 4294901760, %v11892_v61  ;;  %v3029_v38 = vsub.f32 %v9101_v26, %v11572_v36 }
 0x639   : > { %2995 = vmatpush.msra.mxu1 %v2994_v6  ;;  %2954 = vmatpush.msra.mxu0 %v9040_v60  ;;  %v9159_v2 = vand.u32 4294901760, %v11893_v12  ;;  %v3018_v63 = vand.u32 4294901760, %v3017_v58  ;;  %v11571_v55 = vand.u32 4294901760, %v9136_v35  ;;  %v9167_v6 = vsub.f32 %v11891_v45, %v9139_v44 }
 0x63a   : > { %3099 = vmatpush.msra.mxu2 %v9064_v62  ;;  %3150 = vmatpush.msra.mxu3 %v9040_v60  ;;  %v3024_v1 = vand.u32 4294901760, %v3023_v34  ;;  %v3035_v7 = vsub.f32 %v9122_v33, %v11570_v9  ;;  %v11573_v41 = vand.u32 4294901760, %v9150_v40  ;;  %v3030_v58 = vand.u32 4294901760, %v3029_v38 }
 0x63b   : > { %3001 = vmatpush.msra.mxu1 %v3000_v52  ;;  %2956 = vmatpush.msra.mxu0 %v9043_v28  ;;  %v9170_v52 = vand.u32 4294901760, %v11894_v4  ;;  %v9185_v45 = vsub.f32 %v11893_v12, %v9159_v2  ;;  %v3041_v34 = vsub.f32 %v9136_v35, %v11571_v55  ;;  %v9200_v38 = vand.u32 4294901760, %v6464_v48 }
 0x63c   : > { %3102 = vmatpush.msra.mxu2 %v9068_v24  ;;  %3152 = vmatpush.msra.mxu3 %v9043_v28  ;;  %v3036_v12 = vand.u32 4294901760, %v3035_v7  ;;  %v9262_v0 = vand.u32 4294901760, %v6676_v32  ;;  %v9265_v15 = vand.u32 4294901760, %v6674_v31  ;;  %v9277_v14 = vand.u32 4294901760, %v11896_v46 }
 0x63d   : > { %3007 = vmatpush.msra.mxu1 %v3006_v42  ;;  %2958 = vmatpush.msra.mxu0 %v9071_v8  ;;  %v9181_v42 = vsub.f32 %v11892_v61, %v9153_v37  ;;  %v11895_v61 = vld [vmem:[#allocation23_spill] sm:$0xff]  ;;  %v9209_v36 = vsub.f32 %v11894_v4, %v9170_v52  ;;  %v3042_v7 = vand.u32 4294901760, %v3041_v34  ;;  %v11578_v53 = vand.u32 4294901760, %v9185_v45 }
 0x63e   : > { %3105 = vmatpush.msra.mxu2 %v9083_v47  ;;  %3154 = vmatpush.msra.mxu3 %v9071_v8  ;;  %v9195_v9 = vand.u32 4294901760, %v11895_v61 }
 0x63f   : > { %3013 = vmatpush.msra.mxu1 %v3012_v39  ;;  %2960 = vmatpush.msra.mxu0 %v9097_v13  ;;  %v11576_v39 = vand.u32 4294901760, %v9167_v6  ;;  %v11577_v55 = vand.u32 4294901760, %v9181_v42  ;;  %v11579_v34 = vand.u32 4294901760, %v9209_v36 }
 0x640   : > { %3108 = vmatpush.msra.mxu2 %v9101_v26  ;;  %3156 = vmatpush.msra.mxu3 %v9097_v13  ;;  %v9222_v4 = vsub.f32 %v11895_v61, %v9195_v9 }
 0x641   : > { %3019 = vmatpush.msra.mxu1 %v3018_v63  ;;  %2962 = vmatpush.msra.mxu0 %v9118_v3  ;;  %v3047_v63 = vsub.f32 %v9150_v40, %v11573_v41  ;;  %v3053_v41 = vsub.f32 %v9167_v6, %v11576_v39 }
 0x642   : > { %3111 = vmatpush.msra.mxu2 %v9122_v33  ;;  %3158 = vmatpush.msra.mxu3 %v9118_v3 }
 0x643   : > { %3025 = vmatpush.msra.mxu1 %v3024_v1  ;;  %2964 = vmatpush.msra.mxu0 %v9125_v54  ;;  %v2976_v1 = vsub.f32 %v6464_v48, %v9200_v38  ;;  %v3048_v5 = vand.u32 4294901760, %v3047_v63  ;;  %v3054_v61 = vand.u32 4294901760, %v3053_v41  ;;  %v11581_v63 = vand.u32 4294901760, %v9222_v4 }
 0x644   : > { %3114 = vmatpush.msra.mxu2 %v9136_v35  ;;  %3160 = vmatpush.msra.mxu3 %v9125_v54  ;;  %v3071_v41 = vsub.f32 %v9209_v36, %v11579_v34 }
 0x645   : > { %3031 = vmatpush.msra.mxu1 %v3030_v58  ;;  %2966 = vmatpush.msra.mxu0 %v9139_v44  ;;  %v3059_v58 = vsub.f32 %v9181_v42, %v11577_v55  ;;  %v2977_v39 = vand.u32 4294901760, %v2976_v1 }
 0x646   : > { %3117 = vmatpush.msra.mxu2 %v9150_v40  ;;  %3162 = vmatpush.msra.mxu3 %v9139_v44 }
 0x647   : > { %3037 = vmatpush.msra.mxu1 %v3036_v12  ;;  %2968 = vmatpush.msra.mxu0 %v9153_v37  ;;  %v3065_v12 = vsub.f32 %v9185_v45, %v11578_v53  ;;  %v3060_v55 = vand.u32 4294901760, %v3059_v58  ;;  %v3072_v58 = vand.u32 4294901760, %v3071_v41  ;;  %v9314_v41 = vand.u32 4294901760, %v6662_v25 }
 0x648   : > { %3120 = vmatpush.msra.mxu2 %v9167_v6  ;;  %3164 = vmatpush.msra.mxu3 %v9153_v37 }
 0x649   : > { %3043 = vmatpush.msra.mxu1 %v3042_v7  ;;  %2970 = vmatpush.msra.mxu0 %v9159_v2  ;;  %v2978_v7 = vsub.f32 %v2976_v1, %v2977_v39  ;;  %v3066_v53 = vand.u32 4294901760, %v3065_v12 }
 0x64a   : > { %3123 = vmatpush.msra.mxu2 %v9181_v42  ;;  %3166 = vmatpush.msra.mxu3 %v9159_v2 }
 0x64b   : > { %3049 = vmatpush.msra.mxu1 %v3048_v5  ;;  %2972 = vmatpush.msra.mxu0 %v9170_v52  ;;  %v3077_v5 = vsub.f32 %v9222_v4, %v11581_v63  ;;  %v2979_v34 = vand.u32 4294901760, %v2978_v7 }
 0x64c   : > { %3126 = vmatpush.msra.mxu2 %v9185_v45  ;;  %3168 = vmatpush.msra.mxu3 %v9170_v52 }
 0x64d   : > { %3055 = vmatpush.msra.mxu1 %v3054_v61  ;;  %2974 = vmatpush.msra.mxu0 %v9195_v9  ;;  %v3078_v61 = vand.u32 4294901760, %v3077_v5 }
 0x64e   : > { %3129 = vmatpush.msra.mxu2 %v9209_v36  ;;  %3170 = vmatpush.msra.mxu3 %v9195_v9 }
 0x64f   : > { %3181 = vmatpush.msrb.mxu0 %v2986_v59  ;;  %3061 = vmatpush.msra.mxu1 %v3060_v55  ;;  %v9268_v59 = vand.u32 4294901760, %v6672_v30 }
 0x650   : > { %3132 = vmatpush.msra.mxu2 %v9222_v4  ;;  %3174 = vmatmul.f32.vlgmr.msra.gmra.mxu3 %v2977_v39  ;;  %v9288_v39 = vsub.f32 %v6676_v32, %v9262_v0 }
 0x651   : > { %3185 = vmatpush.msrb.mxu0 %v2992_v43  ;;  %3067 = vmatpush.msra.mxu1 %v3066_v53  ;;  %v9271_v43 = vand.u32 4294901760, %v6670_v29  ;;  %v11898_v53 = vld [vmem:[#allocation40_spill] sm:$0xff]  ;;  %v9296_v62 = vsub.f32 %v6672_v30, %v9268_v59 }
 0x652   : > { %3135 = vmatmul.f32.vlgmr.msra.gmra.mxu2 %v2976_v1  ;;  %2980 = vmatmul.f32.vlgmr.msra.gmra.mxu0 %v2979_v34  ;;  %v9283_v55 = vand.u32 4294901760, %v11898_v53  ;;  %v11899_v1 = vand.u32 4294901760, %v9068_v24  ;;  %v9307_v34 = vsub.f32 %v11896_v46, %v9277_v14  ;;  %v11580_v7 = vand.u32 4294901760, %v9288_v39 }
 0x653   : > { %3189 = vmatpush.msrb.mxu0 %v2998_v50  ;;  %3073 = vmatpush.msra.mxu1 %v3072_v58  ;;  %v11897_v50 = vld [vmem:[#allocation41_spill] sm:$0xff]  ;;  %v11900_v58 = vand.u32 4294901760, %v9083_v47  ;;  %v11901_v47 = vld [vmem:[#allocation39_spill] sm:$0xff] }
 0x654   : > { %3286 = vmatpush.msrb.mxu2 %v9262_v0  ;;  %v9327_v46 = vsub.f32 %v11898_v53, %v9283_v55  ;;  %v11902_v53 = vand.u32 4294901760, %v9101_v26  ;;  %v11904_v26 = vand.u32 4294901760, %v9307_v34 }
 0x655   : > { %3193 = vmatpush.msrb.mxu0 %v3004_v49  ;;  %3079 = vmatpush.msra.mxu1 %v3078_v61  ;;  %v9280_v49 = vand.u32 4294901760, %v11897_v50  ;;  %v9367_v61 = vand.u32 4294901760, %v6658_v23 }
 0x656   : > { %3081 = vmatmul.f32.vlgmr.msra.gmra.mxu1 %v9200_v38  ;;  %3288 = vmatpush.msrb.mxu2 %v9265_v15 }
 0x657   : > { %3248 = vmatpush.msrb.mxu1 %v9025_v10  ;;  %3197 = vmatpush.msrb.mxu0 %v3010_v51  ;;  %v9292_v10 = vsub.f32 %v6674_v31, %v9265_v15  ;;  %v9300_v51 = vsub.f32 %v6670_v29, %v9271_v43  ;;  %v9311_v12 = vsub.f32 %v11897_v50, %v9280_v49 }
 0x658   : > { %v3329_v50 = vsub.f32 %v9288_v39, %v11580_v7  ;;  %v9347_v7 = vsub.f32 %v6662_v25, %v9314_v41  ;;  %3290 = vmatpush.msrb.mxu2 %v9268_v59 }
 0x659   : > { %3250 = vmatpush.msrb.mxu1 %v9028_v57  ;;  %3201 = vmatpush.msrb.mxu0 %v11899_v1  ;;  %v11582_v5 = vand.u32 4294901760, %v9292_v10  ;;  %v11583_v57 = vand.u32 4294901760, %v9296_v62  ;;  %v11584_v24 = vand.u32 4294901760, %v9300_v51 }
 0x65a   : > { %v3330_v63 = vand.u32 4294901760, %v3329_v50  ;;  %3292 = vmatpush.msrb.mxu2 %v9271_v43  ;;  %v9385_v50 = vand.u32 4294901760, %v6654_v21 }
 0x65b   : > { %3252 = vmatpush.msrb.mxu1 %v9031_v27  ;;  %3205 = vmatpush.msrb.mxu0 %v11900_v58  ;;  %v3335_v1 = vsub.f32 %v9292_v10, %v11582_v5  ;;  %v3341_v27 = vsub.f32 %v9296_v62, %v11583_v57  ;;  %v9340_v58 = vand.u32 4294901760, %v11901_v47  ;;  %v3347_v57 = vsub.f32 %v9300_v51, %v11584_v24 }
 0x65c   : > { %3331 = vmatpush.msrb.mxu3 %v3330_v63  ;;  %3294 = vmatpush.msrb.mxu2 %v9277_v14  ;;  %v9400_v63 = vand.u32 4294901760, %v6652_v20 }
 0x65d   : > { %3254 = vmatpush.msrb.mxu1 %v9034_v56  ;;  %3209 = vmatpush.msrb.mxu0 %v11902_v53  ;;  %v3336_v5 = vand.u32 4294901760, %v3335_v1  ;;  %v11903_v56 = vand.u32 4294901760, %v9122_v33  ;;  %v3353_v53 = vsub.f32 %v9307_v34, %v11904_v26  ;;  %v3342_v1 = vand.u32 4294901760, %v3341_v27 }
 0x65e   : > { %v9364_v24 = vsub.f32 %v11901_v47, %v9340_v58  ;;  %v11905_v33 = vand.u32 4294901760, %v9136_v35  ;;  %v3348_v27 = vand.u32 4294901760, %v3347_v57  ;;  %v9382_v26 = vsub.f32 %v6658_v23, %v9367_v61  ;;  %3296 = vmatpush.msrb.mxu2 %v9280_v49 }
 0x65f   : > { %3256 = vmatpush.msrb.mxu1 %v9037_v11  ;;  %3213 = vmatpush.msrb.mxu0 %v11903_v56  ;;  %v9370_v11 = vand.u32 4294901760, %v6656_v22  ;;  %v11906_v56 = vand.u32 4294901760, %v9311_v12  ;;  %v11908_v35 = vand.u32 4294901760, %v9327_v46  ;;  %v3354_v57 = vand.u32 4294901760, %v3353_v53 }
 0x660   : > { %3337 = vmatpush.msrb.mxu3 %v3336_v5  ;;  %3298 = vmatpush.msrb.mxu2 %v9283_v55 }
 0x661   : > { %3258 = vmatpush.msrb.mxu1 %v9040_v60  ;;  %3217 = vmatpush.msrb.mxu0 %v11905_v33  ;;  %v3359_v47 = vsub.f32 %v9311_v12, %v11906_v56  ;;  %v11907_v60 = vand.u32 4294901760, %v9150_v40  ;;  %v3365_v5 = vsub.f32 %v9327_v46, %v11908_v35  ;;  %v9397_v56 = vsub.f32 %v6656_v22, %v9370_v11 }
 0x662   : > { %3343 = vmatpush.msrb.mxu3 %v3342_v1  ;;  %v11910_v40 = vand.u32 4294901760, %v9347_v7  ;;  %v9412_v35 = vsub.f32 %v6654_v21, %v9385_v50  ;;  %v9415_v33 = vand.u32 4294901760, %v6650_v19  ;;  %3300 = vmatpush.msrb.mxu2 %v9314_v41 }
 0x663   : > { %3260 = vmatpush.msrb.mxu1 %v9043_v28  ;;  %3221 = vmatpush.msrb.mxu0 %v11907_v60  ;;  %v11909_v28 = vand.u32 4294901760, %v9167_v6  ;;  %v3360_v1 = vand.u32 4294901760, %v3359_v47  ;;  %v3366_v6 = vand.u32 4294901760, %v3365_v5  ;;  %v9430_v60 = vand.u32 4294901760, %v6648_v18 }
 0x664   : > { %v3371_v53 = vsub.f32 %v9347_v7, %v11910_v40  ;;  %3349 = vmatpush.msrb.mxu3 %v3348_v27  ;;  %v11912_v27 = vand.u32 4294901760, %v9364_v24  ;;  %v9427_v40 = vsub.f32 %v6652_v20, %v9400_v63  ;;  %v11914_v5 = vand.u32 4294901760, %v9382_v26  ;;  %3302 = vmatpush.msrb.mxu2 %v9340_v58 }
 0x665   : > { %3262 = vmatpush.msrb.mxu1 %v9071_v8  ;;  %3225 = vmatpush.msrb.mxu0 %v11909_v28  ;;  %v11911_v8 = vand.u32 4294901760, %v9181_v42  ;;  %v9445_v28 = vand.u32 4294901760, %v6646_v17 }
 0x666   : > { %3355 = vmatpush.msrb.mxu3 %v3354_v57  ;;  %v3377_v47 = vsub.f32 %v9364_v24, %v11912_v27  ;;  %v3372_v42 = vand.u32 4294901760, %v3371_v53  ;;  %v3383_v57 = vsub.f32 %v9382_v26, %v11914_v5  ;;  %v9442_v27 = vsub.f32 %v6650_v19, %v9415_v33  ;;  %3304 = vmatpush.msrb.mxu2 %v9367_v61 }
 0x667   : > { %3264 = vmatpush.msrb.mxu1 %v9097_v13  ;;  %3229 = vmatpush.msrb.mxu0 %v11911_v8  ;;  %v11913_v13 = vand.u32 4294901760, %v9185_v45  ;;  %v3394_v8 = vand.u32 4294901760, %v9412_v35  ;;  %v11916_v53 = vand.u32 4294901760, %v9397_v56  ;;  %v9457_v5 = vsub.f32 %v6648_v18, %v9430_v60 }
 0x668   : > { %3361 = vmatpush.msrb.mxu3 %v3360_v1  ;;  %v3378_v45 = vand.u32 4294901760, %v3377_v47  ;;  %v3406_v47 = vand.u32 4294901760, %v9442_v27  ;;  %3306 = vmatpush.msrb.mxu2 %v9370_v11 }
 0x669   : > { %3266 = vmatpush.msrb.mxu1 %v9118_v3  ;;  %3233 = vmatpush.msrb.mxu0 %v11913_v13  ;;  %v11915_v3 = vand.u32 4294901760, %v9209_v36  ;;  %v3389_v1 = vsub.f32 %v9397_v56, %v11916_v53  ;;  %v3400_v13 = vand.u32 4294901760, %v9427_v40  ;;  %v3384_v36 = vand.u32 4294901760, %v3383_v57 }
 0x66a   : > { %3367 = vmatpush.msrb.mxu3 %v3366_v6  ;;  %v3395_v6 = vsub.f32 %v9412_v35, %v3394_v8  ;;  %3308 = vmatpush.msrb.mxu2 %v9385_v50 }
 0x66b   : > { %3268 = vmatpush.msrb.mxu1 %v9125_v54  ;;  %3237 = vmatpush.msrb.mxu0 %v11915_v3  ;;  %v11917_v54 = vand.u32 4294901760, %v9222_v4  ;;  %v9469_v3 = vsub.f32 %v6646_v17, %v9445_v28  ;;  %v3401_v4 = vsub.f32 %v9427_v40, %v3400_v13 }
 0x66c   : > { %3373 = vmatpush.msrb.mxu3 %v3372_v42  ;;  %v3412_v42 = vand.u32 4294901760, %v9457_v5  ;;  %v3396_v57 = vand.u32 4294901760, %v3395_v6  ;;  %3310 = vmatpush.msrb.mxu2 %v9400_v63  ;;  %v11920_v6 = vand.u32 4294901760, %v9296_v62 }
 0x66d   : > { %3270 = vmatpush.msrb.mxu1 %v9139_v44  ;;  %3241 = vmatpush.msrb.mxu0 %v11917_v54  ;;  %v3390_v44 = vand.u32 4294901760, %v3389_v1  ;;  %v3402_v53 = vand.u32 4294901760, %v3401_v4 }
 0x66e   : > { %3243 = vmatmul.f32.vlgmr.msrb.gmra.mxu0 %v9200_v38  ;;  %3379 = vmatpush.msrb.mxu3 %v3378_v45  ;;  %v3418_v45 = vand.u32 4294901760, %v9469_v3 }
 0x66f   : > { %3272 = vmatpush.msrb.mxu1 %v9153_v37  ;;  %3429 = vmatpush.msra.mxu0 %v9288_v39  ;;  %v3407_v37 = vsub.f32 %v9442_v27, %v3406_v47 }
 0x670   : > { %3385 = vmatpush.msrb.mxu3 %v3384_v36  ;;  %3312 = vmatpush.msrb.mxu2 %v9415_v33  ;;  %v11919_v36 = vand.u32 4294901760, %v9292_v10 }
 0x671   : > { %3274 = vmatpush.msrb.mxu1 %v9159_v2  ;;  %3432 = vmatpush.msra.mxu0 %v9292_v10  ;;  %v3413_v2 = vsub.f32 %v9457_v5, %v3412_v42  ;;  %v3408_v1 = vand.u32 4294901760, %v3407_v37 }
 0x672   : > { %3391 = vmatpush.msrb.mxu3 %v3390_v44  ;;  %3314 = vmatpush.msrb.mxu2 %v9430_v60 }
 0x673   : > { %3276 = vmatpush.msrb.mxu1 %v9170_v52  ;;  %3435 = vmatpush.msra.mxu0 %v9296_v62  ;;  %v3419_v52 = vsub.f32 %v9469_v3, %v3418_v45  ;;  %v3414_v54 = vand.u32 4294901760, %v3413_v2 }
 0x674   : > { %3397 = vmatpush.msrb.mxu3 %v3396_v57  ;;  %3316 = vmatpush.msrb.mxu2 %v9445_v28  ;;  %v3627_v57 = vstv %s3626_s13 }
 0x675   : > { %3278 = vmatpush.msrb.mxu1 %v9195_v9  ;;  %3438 = vmatpush.msra.mxu0 %v9300_v51  ;;  %v3420_v9 = vand.u32 4294901760, %v3419_v52 }
 0x676   : > { %3280 = vmatmul.f32.vlgmr.msrb.gmra.mxu1 %v9200_v38  ;;  %3403 = vmatpush.msrb.mxu3 %v3402_v53  ;;  %v11918_v38 = vand.u32 4294901760, %v9288_v39  ;;  %v11928_v39 = vand.u32 4294901760, %v9397_v56 }
 0x677   : > { %3482 = vmatpush.msra.mxu1 %v9262_v0  ;;  %3441 = vmatpush.msra.mxu0 %v9307_v34 }
 0x678   : > { %3409 = vmatpush.msrb.mxu3 %v3408_v1  ;;  %3523 = vmatpush.msra.mxu2 %v11918_v38 }
 0x679   : > { %3484 = vmatpush.msra.mxu1 %v9265_v15  ;;  %3444 = vmatpush.msra.mxu0 %v9311_v12 }
 0x67a   : > { %3415 = vmatpush.msrb.mxu3 %v3414_v54  ;;  %3527 = vmatpush.msra.mxu2 %v11919_v36 }
 0x67b   : > { %3486 = vmatpush.msra.mxu1 %v9268_v59  ;;  %3447 = vmatpush.msra.mxu0 %v9327_v46 }
 0x67c   : > { %3421 = vmatpush.msrb.mxu3 %v3420_v9  ;;  %3531 = vmatpush.msra.mxu2 %v11920_v6 }
 0x67d   : > { %3488 = vmatpush.msra.mxu1 %v9271_v43  ;;  %3450 = vmatpush.msra.mxu0 %v9347_v7 }
 0x67e   : > { %3590 = vmatpush.msra.mxu3 %v9262_v0  ;;  %v11921_v0 = vand.u32 4294901760, %v9300_v51 }
 0x67f   : > { %3490 = vmatpush.msra.mxu1 %v9277_v14  ;;  %3453 = vmatpush.msra.mxu0 %v9364_v24 }
 0x680   : > { %3592 = vmatpush.msra.mxu3 %v9265_v15  ;;  %3535 = vmatpush.msra.mxu2 %v11921_v0  ;;  %v11922_v15 = vand.u32 4294901760, %v9307_v34 }
 0x681   : > { %3492 = vmatpush.msra.mxu1 %v9280_v49  ;;  %3456 = vmatpush.msra.mxu0 %v9382_v26 }
 0x682   : > { %3594 = vmatpush.msra.mxu3 %v9268_v59  ;;  %3539 = vmatpush.msra.mxu2 %v11922_v15  ;;  %v11923_v59 = vand.u32 4294901760, %v9311_v12 }
 0x683   : > { %3494 = vmatpush.msra.mxu1 %v9283_v55  ;;  %3459 = vmatpush.msra.mxu0 %v9397_v56 }
 0x684   : > { %3596 = vmatpush.msra.mxu3 %v9271_v43  ;;  %3543 = vmatpush.msra.mxu2 %v11923_v59  ;;  %v11924_v43 = vand.u32 4294901760, %v9327_v46 }
 0x685   : > { %3496 = vmatpush.msra.mxu1 %v9314_v41  ;;  %3462 = vmatpush.msra.mxu0 %v9412_v35 }
 0x686   : > { %3598 = vmatpush.msra.mxu3 %v9277_v14  ;;  %3547 = vmatpush.msra.mxu2 %v11924_v43  ;;  %v11925_v14 = vand.u32 4294901760, %v9347_v7 }
 0x687   : > { %3498 = vmatpush.msra.mxu1 %v9340_v58  ;;  %3465 = vmatpush.msra.mxu0 %v9427_v40  ;;  %v11929_v40 = vld [vmem:[#allocation43_spill] sm:$0xff] }
 0x688   : > { %3600 = vmatpush.msra.mxu3 %v9280_v49  ;;  %3551 = vmatpush.msra.mxu2 %v11925_v14  ;;  %v11926_v49 = vand.u32 4294901760, %v9364_v24 }
 0x689   : > { %3500 = vmatpush.msra.mxu1 %v9367_v61  ;;  %3468 = vmatpush.msra.mxu0 %v9442_v27 }
 0x68a   : > { %3602 = vmatpush.msra.mxu3 %v9283_v55  ;;  %3555 = vmatpush.msra.mxu2 %v11926_v49  ;;  %v11927_v55 = vand.u32 4294901760, %v9382_v26 }
 0x68b   : > { %3502 = vmatpush.msra.mxu1 %v9370_v11  ;;  %3471 = vmatpush.msra.mxu0 %v9457_v5 }
 0x68c   : > { %3604 = vmatpush.msra.mxu3 %v9314_v41  ;;  %3559 = vmatpush.msra.mxu2 %v11927_v55 }
 0x68d   : > { %3504 = vmatpush.msra.mxu1 %v9385_v50  ;;  %3474 = vmatpush.msra.mxu0 %v9469_v3 }
 0x68e   : > { %3606 = vmatpush.msra.mxu3 %v9340_v58  ;;  %3563 = vmatpush.msra.mxu2 %v11928_v39 }
 0x68f   : > { %3506 = vmatpush.msra.mxu1 %v9400_v63 }
 0x690   : > { %3608 = vmatpush.msra.mxu3 %v9367_v61  ;;  %3567 = vmatpush.msra.mxu2 %v3394_v8 }
 0x691   : > { %3508 = vmatpush.msra.mxu1 %v9415_v33 }
 0x692   : > { %3610 = vmatpush.msra.mxu3 %v9370_v11  ;;  %3571 = vmatpush.msra.mxu2 %v3400_v13 }
 0x693   : > { %3510 = vmatpush.msra.mxu1 %v9430_v60 }
 0x694   : > { %3612 = vmatpush.msra.mxu3 %v9385_v50  ;;  %3575 = vmatpush.msra.mxu2 %v3406_v47 }
 0x695   : > { %3512 = vmatpush.msra.mxu1 %v9445_v28 }
 0x696   : > { %3614 = vmatpush.msra.mxu3 %v9400_v63  ;;  %3579 = vmatpush.msra.mxu2 %v3412_v42 }
 0x698   : > { %3616 = vmatpush.msra.mxu3 %v9415_v33  ;;  %3583 = vmatpush.msra.mxu2 %v3418_v45 }
 0x69a   : > { %3618 = vmatpush.msra.mxu3 %v9430_v60 }
 0x69c   : > { %3620 = vmatpush.msra.mxu3 %v9445_v28 }
 0x6cf   : > { %v2981_v10 = vpop.f32.mrf.mxu0 }
 0x6d0   : > { %v2982_v62 = vadd.f32 %v2981_v10, %v6644_v16 }
 0x6d3   : > { %v3082_v51 = vpop.f32.mrf.mxu1  ;;  %v3175_v7 = vpop.f32.mrf.mxu3 }
 0x6d4   : > { %v3083_v34 = vadd.f32 %v3082_v51, %v2982_v62 }
 0x6d5   : > { %v3136_v12 = vpop.f32.mrf.mxu2 }
 0x6d6   : > { %v3137_v41 = vadd.f32 %v3136_v12, %v3083_v34 }
 0x6d8   : > { %v3176_v24 = vadd.f32 %v3175_v7, %v3137_v41 }
 0x6eb   : > { %v3244_v61 = vpop.f32.mrf.mxu0 }
 0x6ec   : > { %v3245_v46 = vadd.f32 %v3244_v61, %v3176_v24 }
 0x6f3   : > { %v3281_v58 = vpop.f32.mrf.mxu1 }
 0x6f4   : > { %v3282_v50 = vadd.f32 %v3281_v58, %v3245_v46 }
 0x6f6   : > { %6120 = vtanh.f32 %v3282_v50 }
 0x6fc   : > { %v6121_v11 = vpop.eup %6120 }
 0x6fd   : > { %v3317_v63 = vand.u32 4294901760, %v6121_v11 }
 0x6ff   : > { %3423 = vmatmul.f32.vlgmr.msrb.gmra.mxu3 %v3317_v63  ;;  %v3318_v26 = vsub.f32 %v6121_v11, %v3317_v63 }
 0x701   : > { %3477 = vmatmul.f32.vlgmr.msra.gmra.mxu0 %v3318_v26  ;;  %v3319_v33 = vand.u32 4294901760, %v3318_v26 }
 0x703   : > { %3516 = vmatmul.f32.vlgmr.msra.gmra.mxu1 %v3319_v33  ;;  %v3320_v56 = vsub.f32 %v3318_v26, %v3319_v33 }
 0x705   : > { %v3321_v60 = vand.u32 4294901760, %v3320_v56 }
 0x707   : > { %3322 = vmatmul.f32.vlgmr.msrb.gmra.mxu2 %v3321_v60  ;;  %3622 = vmatmul.f32.vlgmr.msra.gmra.mxu3 %v3317_v63 }
 0x70f   : > { %3585 = vmatmul.f32.vlgmr.msra.gmra.mxu2 %v3317_v63 }
 0x77e   : > { %v3478_v13 = vpop.f32.mrf.mxu0 }
 0x780   : > { %v3517_v47 = vpop.f32.mrf.mxu1 }
 0x782   : > { %v3424_v35 = vpop.f32.mrf.mxu3 }
 0x78a   : > { %v3323_v28 = vpop.f32.mrf.mxu2  ;;  %v3623_v42 = vpop.f32.mrf.mxu3 }
 0x78b   : > { %v3324_v8 = vadd.f32 %v3323_v28, %v11929_v40 }
 0x78d   : > { %v3425_v27 = vadd.f32 %v3424_v35, %v3324_v8 }
 0x78f   : > { %v3479_v5 = vadd.f32 %v3478_v13, %v3425_v27 }
 0x791   : > { %v3518_v3 = vadd.f32 %v3517_v47, %v3479_v5 }
 0x792   : > { %v3586_v44 = vpop.f32.mrf.mxu2 }
 0x793   : > { %v3587_v4 = vadd.f32 %v3586_v44, %v3518_v3 }
 0x795   : > { %v3624_v37 = vadd.f32 %v3623_v42, %v3587_v4 }
 0x797   : > { %v3628_v45 = vmul.f32 %v3627_v57, %v3624_v37  ;;  %2941 = sbr.rel (!%p2938_p9) target bundleno = 1580 (0x62c), region = 174 }
 0x799   : > { %v3629_v53 = vadd.f32 %v6464_v48, %v3628_v45  }
 0x79b   : > { %v11930_v48 = vmov %v3629_v53  ;;  %v11931_v35 = vmov (%p2938_p9), %v3629_v53 }
 0x79c PF:  { %3631 = vst [vmem:[#allocation2 + $0x20] sm:$0xff] %v6472_v35  ;;  %s9589_s14 = sld [smem:[#allocation5 + $0x5]]   ;;  %v11932_v48 = vmov %v6472_v35  ;;  %v6472_v35 = vphi %v11879_v35, %v11931_v35  }
 0x7a2   :  { %p5860_p10 = scmp.ge.s32.totalorder %s9007_s12, %s9589_s14 }
 0x7a4   :  { %5862 = sbr.rel (%p5860_p10) target bundleno = 2329 (0x919), region = 179 }
 0x7a9 LB: > { %v11933_v2 = vld [vmem:[#allocation38_spill] sm:$0xff]  ;;  %v11934_v52 = vld [vmem:[#allocation37_spill] sm:$0xff]  ;;  %v11935_v9 = vld [vmem:[#allocation36_spill] sm:$0xff]  ;;  %s4323_s4 = sld [smem:[#allocation4 + %s6480_s12]]  ;;  %s3636_s12 = sadd.s32 1, %s6480_s12   ;;  %s6480_s12 = sphi %s9007_s12, %s3636_s12   ;;  %v6476_v35 = vphi %v6472_v35, %v11983_v35  }
 0x7aa   : > { %v9607_v1 = vand.u32 4294901760, %v11933_v2  ;;  %v9610_v54 = vand.u32 4294901760, %v11934_v52  ;;  %v9613_v38 = vand.u32 4294901760, %v11935_v9  ;;  %v11936_v36 = vld [vmem:[#allocation35_spill] sm:$0xff]  ;;  %v11937_v0 = vld [vmem:[#allocation34_spill] sm:$0xff]  ;;  %v11938_v59 = vld [vmem:[#allocation33_spill] sm:$0xff]  ;;  %p3635_p11 = scmp.ge.s32.totalorder %s3636_s12, %s9589_s14 }
 0x7ab   : > { %v9616_v6 = vand.u32 4294901760, %v11936_v36  ;;  %v9619_v15 = vand.u32 4294901760, %v11937_v0  ;;  %v9622_v43 = vand.u32 4294901760, %v11938_v59  ;;  %v11939_v14 = vld [vmem:[#allocation32_spill] sm:$0xff]  ;;  %v11940_v12 = vld [vmem:[#allocation31_spill] sm:$0xff]  ;;  %v11941_v33 = vld [vmem:[#allocation30_spill] sm:$0xff] }
 0x7ac   : > { %v9625_v49 = vand.u32 4294901760, %v11939_v14  ;;  %3641 = vmatpush.msra.mxu0 %v9607_v1  ;;  %v9630_v55 = vsub.f32 %v11933_v2, %v9607_v1  ;;  %v9634_v39 = vsub.f32 %v11934_v52, %v9610_v54  ;;  %v9638_v10 = vsub.f32 %v11935_v9, %v9613_v38  ;;  %3837 = vmatpush.msra.mxu3 %v9607_v1  ;;  %v11942_v3 = vld [vmem:[#allocation29_spill] sm:$0xff]  ;;  %v11943_v42 = vld [vmem:[#allocation28_spill] sm:$0xff]  ;;  %v11944_v2 = vld [vmem:[#allocation27_spill] sm:$0xff] }
 0x7ad   : > { %v9642_v62 = vsub.f32 %v11936_v36, %v9616_v6  ;;  %v9646_v51 = vsub.f32 %v11937_v0, %v9619_v15  ;;  %v9650_v34 = vsub.f32 %v11938_v59, %v9622_v43  ;;  %v9653_v41 = vand.u32 4294901760, %v11940_v12 }
 0x7ae   : > { %3643 = vmatpush.msra.mxu0 %v9610_v54  ;;  %v3683_v7 = vand.u32 4294901760, %v9630_v55  ;;  %v3689_v24 = vand.u32 4294901760, %v9634_v39  ;;  %v3695_v61 = vand.u32 4294901760, %v9638_v10  ;;  %3784 = vmatpush.msra.mxu2 %v9630_v55  ;;  %v9665_v50 = vsub.f32 %v11939_v14, %v9625_v49  ;;  %v11945_v14 = vld [vmem:[#allocation26_spill] sm:$0xff] }
 0x7af   : > { %v3701_v46 = vand.u32 4294901760, %v9642_v62  ;;  %v3707_v58 = vand.u32 4294901760, %v9646_v51  ;;  %3839 = vmatpush.msra.mxu3 %v9610_v54  ;;  %v9679_v56 = vand.u32 4294901760, %v11941_v33  ;;  %v9683_v60 = vsub.f32 %v11940_v12, %v9653_v41 }
 0x7b0   : > { %v3684_v11 = vsub.f32 %v9630_v55, %v3683_v7  ;;  %3645 = vmatpush.msra.mxu0 %v9613_v38  ;;  %v3690_v63 = vsub.f32 %v9634_v39, %v3689_v24  ;;  %v3696_v26 = vsub.f32 %v9638_v10, %v3695_v61  ;;  %3787 = vmatpush.msra.mxu2 %v9634_v39  ;;  %v11590_v27 = vand.u32 4294901760, %v9650_v34 }
 0x7b1   : > { %3841 = vmatpush.msra.mxu3 %v9613_v38  ;;  %v3702_v8 = vsub.f32 %v9642_v62, %v3701_v46  ;;  %v3708_v13 = vsub.f32 %v9646_v51, %v3707_v58  ;;  %v11589_v5 = vand.u32 4294901760, %v9665_v50  ;;  %v9700_v44 = vand.u32 4294901760, %v11942_v3 }
 0x7b2   : > { %v3685_v28 = vand.u32 4294901760, %v3684_v11  ;;  %v3691_v40 = vand.u32 4294901760, %v3690_v63  ;;  %3647 = vmatpush.msra.mxu0 %v9616_v6  ;;  %3790 = vmatpush.msra.mxu2 %v9638_v10  ;;  %v3697_v47 = vand.u32 4294901760, %v3696_v26  ;;  %v9704_v4 = vsub.f32 %v11941_v33, %v9679_v56  ;;  %v11946_v63 = vld [vmem:[#allocation25_spill] sm:$0xff]  ;;  %v11949_v10 = vld [vmem:[#allocation42_spill] sm:$0xff] }
 0x7b3   : > { %3843 = vmatpush.msra.mxu3 %v9616_v6  ;;  %v9707_v57 = vand.u32 4294901760, %v11943_v42  ;;  %v11587_v37 = vand.u32 4294901760, %v9683_v60  ;;  %v3703_v45 = vand.u32 4294901760, %v3702_v8  ;;  %v3714_v53 = vsub.f32 %v9650_v34, %v11590_v27 }
 0x7b4   : > { %3686 = vmatpush.msra.mxu1 %v3685_v28  ;;  %3649 = vmatpush.msra.mxu0 %v9619_v15  ;;  %v9718_v48 = vsub.f32 %v11942_v3, %v9700_v44  ;;  %v9721_v52 = vand.u32 4294901760, %v11944_v2  ;;  %v3720_v9 = vsub.f32 %v9665_v50, %v11589_v5  ;;  %v3709_v36 = vand.u32 4294901760, %v3708_v13  ;;  %v11947_v13 = vld [vmem:[#allocation24_spill] sm:$0xff] }
 0x7b5   : > { %3793 = vmatpush.msra.mxu2 %v9642_v62  ;;  %3845 = vmatpush.msra.mxu3 %v9619_v15  ;;  %v11585_v0 = vand.u32 4294901760, %v9704_v4  ;;  %v9732_v59 = vsub.f32 %v11943_v42, %v9707_v57  ;;  %v9735_v12 = vand.u32 4294901760, %v11945_v14  ;;  %v3726_v11 = vsub.f32 %v9683_v60, %v11587_v37 }
 0x7b6   : > { %3692 = vmatpush.msra.mxu1 %v3691_v40  ;;  %3651 = vmatpush.msra.mxu0 %v9622_v43  ;;  %v9741_v26 = vand.u32 4294901760, %v11946_v63  ;;  %v3715_v33 = vand.u32 4294901760, %v3714_v53  ;;  %v11586_v28 = vand.u32 4294901760, %v9718_v48  ;;  %v9749_v40 = vsub.f32 %v11944_v2, %v9721_v52 }
 0x7b7   : > { %3796 = vmatpush.msra.mxu2 %v9646_v51  ;;  %3847 = vmatpush.msra.mxu3 %v9622_v43  ;;  %v3721_v8 = vand.u32 4294901760, %v3720_v9  ;;  %v3732_v3 = vsub.f32 %v9704_v4, %v11585_v0  ;;  %v11588_v42 = vand.u32 4294901760, %v9732_v59  ;;  %v3727_v53 = vand.u32 4294901760, %v3726_v11 }
 0x7b8   : > { %3698 = vmatpush.msra.mxu1 %v3697_v47  ;;  %3653 = vmatpush.msra.mxu0 %v9625_v49  ;;  %v9752_v47 = vand.u32 4294901760, %v11947_v13  ;;  %v9767_v2 = vsub.f32 %v11946_v63, %v9741_v26  ;;  %v3738_v9 = vsub.f32 %v9718_v48, %v11586_v28  ;;  %v9782_v11 = vand.u32 4294901760, %v6476_v35 }
 0x7b9   : > { %3799 = vmatpush.msra.mxu2 %v9650_v34  ;;  %3849 = vmatpush.msra.mxu3 %v9625_v49  ;;  %v3733_v63 = vand.u32 4294901760, %v3732_v3  ;;  %v9844_v55 = vand.u32 4294901760, %v6676_v32  ;;  %v9847_v39 = vand.u32 4294901760, %v6674_v31  ;;  %v9859_v62 = vand.u32 4294901760, %v11949_v10 }
 0x7ba   : > { %3704 = vmatpush.msra.mxu1 %v3703_v45  ;;  %3655 = vmatpush.msra.mxu0 %v9653_v41  ;;  %v9763_v45 = vsub.f32 %v11945_v14, %v9735_v12  ;;  %v11948_v14 = vld [vmem:[#allocation23_spill] sm:$0xff]  ;;  %v9791_v37 = vsub.f32 %v11947_v13, %v9752_v47  ;;  %v3739_v3 = vand.u32 4294901760, %v3738_v9  ;;  %v11593_v5 = vand.u32 4294901760, %v9767_v2 }
 0x7bb   : > { %3802 = vmatpush.msra.mxu2 %v9665_v50  ;;  %3851 = vmatpush.msra.mxu3 %v9653_v41  ;;  %v9777_v0 = vand.u32 4294901760, %v11948_v14 }
 0x7bc   : > { %3710 = vmatpush.msra.mxu1 %v3709_v36  ;;  %3657 = vmatpush.msra.mxu0 %v9679_v56  ;;  %v11591_v36 = vand.u32 4294901760, %v9749_v40  ;;  %v11592_v28 = vand.u32 4294901760, %v9763_v45  ;;  %v11594_v9 = vand.u32 4294901760, %v9791_v37 }
 0x7bd   : > { %3805 = vmatpush.msra.mxu2 %v9683_v60  ;;  %3853 = vmatpush.msra.mxu3 %v9679_v56  ;;  %v9804_v13 = vsub.f32 %v11948_v14, %v9777_v0 }
 0x7be   : > { %3716 = vmatpush.msra.mxu1 %v3715_v33  ;;  %3659 = vmatpush.msra.mxu0 %v9700_v44  ;;  %v3744_v33 = vsub.f32 %v9732_v59, %v11588_v42  ;;  %v3750_v42 = vsub.f32 %v9749_v40, %v11591_v36 }
 0x7bf   : > { %3808 = vmatpush.msra.mxu2 %v9704_v4  ;;  %3855 = vmatpush.msra.mxu3 %v9700_v44 }
 0x7c0   : > { %3722 = vmatpush.msra.mxu1 %v3721_v8  ;;  %3661 = vmatpush.msra.mxu0 %v9707_v57  ;;  %v3673_v8 = vsub.f32 %v6476_v35, %v9782_v11  ;;  %v3745_v27 = vand.u32 4294901760, %v3744_v33  ;;  %v3751_v14 = vand.u32 4294901760, %v3750_v42  ;;  %v11596_v33 = vand.u32 4294901760, %v9804_v13 }
 0x7c1   : > { %3811 = vmatpush.msra.mxu2 %v9718_v48  ;;  %3857 = vmatpush.msra.mxu3 %v9707_v57  ;;  %v3768_v42 = vsub.f32 %v9791_v37, %v11594_v9 }
 0x7c2   : > { %3728 = vmatpush.msra.mxu1 %v3727_v53  ;;  %3663 = vmatpush.msra.mxu0 %v9721_v52  ;;  %v3756_v53 = vsub.f32 %v9763_v45, %v11592_v28  ;;  %v3674_v36 = vand.u32 4294901760, %v3673_v8 }
 0x7c3   : > { %3814 = vmatpush.msra.mxu2 %v9732_v59  ;;  %3859 = vmatpush.msra.mxu3 %v9721_v52 }
 0x7c4   : > { %3734 = vmatpush.msra.mxu1 %v3733_v63  ;;  %3665 = vmatpush.msra.mxu0 %v9735_v12  ;;  %v3762_v63 = vsub.f32 %v9767_v2, %v11593_v5  ;;  %v3757_v28 = vand.u32 4294901760, %v3756_v53  ;;  %v3769_v53 = vand.u32 4294901760, %v3768_v42  ;;  %v9896_v42 = vand.u32 4294901760, %v6662_v25 }
 0x7c5   : > { %3817 = vmatpush.msra.mxu2 %v9749_v40  ;;  %3861 = vmatpush.msra.mxu3 %v9735_v12 }
 0x7c6   : > { %3740 = vmatpush.msra.mxu1 %v3739_v3  ;;  %3667 = vmatpush.msra.mxu0 %v9741_v26  ;;  %v3675_v3 = vsub.f32 %v3673_v8, %v3674_v36  ;;  %v3763_v5 = vand.u32 4294901760, %v3762_v63 }
 0x7c7   : > { %3820 = vmatpush.msra.mxu2 %v9763_v45  ;;  %3863 = vmatpush.msra.mxu3 %v9741_v26 }
 0x7c8   : > { %3746 = vmatpush.msra.mxu1 %v3745_v27  ;;  %3669 = vmatpush.msra.mxu0 %v9752_v47  ;;  %v3774_v27 = vsub.f32 %v9804_v13, %v11596_v33  ;;  %v3676_v9 = vand.u32 4294901760, %v3675_v3 }
 0x7c9   : > { %3823 = vmatpush.msra.mxu2 %v9767_v2  ;;  %3865 = vmatpush.msra.mxu3 %v9752_v47 }
 0x7ca   : > { %3752 = vmatpush.msra.mxu1 %v3751_v14  ;;  %3671 = vmatpush.msra.mxu0 %v9777_v0  ;;  %v3775_v14 = vand.u32 4294901760, %v3774_v27 }
 0x7cb   : > { %3826 = vmatpush.msra.mxu2 %v9791_v37  ;;  %3867 = vmatpush.msra.mxu3 %v9777_v0 }
 0x7cc   : > { %3878 = vmatpush.msrb.mxu0 %v3683_v7  ;;  %3758 = vmatpush.msra.mxu1 %v3757_v28  ;;  %v9850_v7 = vand.u32 4294901760, %v6672_v30 }
 0x7cd   : > { %3829 = vmatpush.msra.mxu2 %v9804_v13  ;;  %3871 = vmatmul.f32.vlgmr.msra.gmra.mxu3 %v3674_v36  ;;  %v9870_v36 = vsub.f32 %v6676_v32, %v9844_v55 }
 0x7ce   : > { %3882 = vmatpush.msrb.mxu0 %v3689_v24  ;;  %3764 = vmatpush.msra.mxu1 %v3763_v5  ;;  %v9853_v24 = vand.u32 4294901760, %v6670_v29  ;;  %v11951_v5 = vld [vmem:[#allocation40_spill] sm:$0xff]  ;;  %v9878_v51 = vsub.f32 %v6672_v30, %v9850_v7 }
 0x7cf   : > { %3832 = vmatmul.f32.vlgmr.msra.gmra.mxu2 %v3673_v8  ;;  %3677 = vmatmul.f32.vlgmr.msra.gmra.mxu0 %v3676_v9  ;;  %v9865_v28 = vand.u32 4294901760, %v11951_v5  ;;  %v11952_v8 = vand.u32 4294901760, %v9650_v34  ;;  %v9889_v9 = vsub.f32 %v11949_v10, %v9859_v62  ;;  %v11595_v3 = vand.u32 4294901760, %v9870_v36 }
 0x7d0   : > { %3886 = vmatpush.msrb.mxu0 %v3695_v61  ;;  %3770 = vmatpush.msra.mxu1 %v3769_v53  ;;  %v11950_v61 = vld [vmem:[#allocation41_spill] sm:$0xff]  ;;  %v11953_v53 = vand.u32 4294901760, %v9665_v50  ;;  %v11954_v50 = vld [vmem:[#allocation39_spill] sm:$0xff] }
 0x7d1   : > { %3983 = vmatpush.msrb.mxu2 %v9844_v55  ;;  %v9909_v10 = vsub.f32 %v11951_v5, %v9865_v28  ;;  %v11955_v5 = vand.u32 4294901760, %v9683_v60  ;;  %v11957_v60 = vand.u32 4294901760, %v9889_v9 }
 0x7d2   : > { %3890 = vmatpush.msrb.mxu0 %v3701_v46  ;;  %3776 = vmatpush.msra.mxu1 %v3775_v14  ;;  %v9862_v46 = vand.u32 4294901760, %v11950_v61  ;;  %v9949_v14 = vand.u32 4294901760, %v6658_v23 }
 0x7d3   : > { %3778 = vmatmul.f32.vlgmr.msra.gmra.mxu1 %v9782_v11  ;;  %3985 = vmatpush.msrb.mxu2 %v9847_v39 }
 0x7d4   : > { %3945 = vmatpush.msrb.mxu1 %v9607_v1  ;;  %3894 = vmatpush.msrb.mxu0 %v3707_v58  ;;  %v9874_v1 = vsub.f32 %v6674_v31, %v9847_v39  ;;  %v9882_v58 = vsub.f32 %v6670_v29, %v9853_v24  ;;  %v9893_v63 = vsub.f32 %v11950_v61, %v9862_v46 }
 0x7d5   : > { %v4026_v61 = vsub.f32 %v9870_v36, %v11595_v3  ;;  %v9929_v3 = vsub.f32 %v6662_v25, %v9896_v42  ;;  %3987 = vmatpush.msrb.mxu2 %v9850_v7 }
 0x7d6   : > { %3947 = vmatpush.msrb.mxu1 %v9610_v54  ;;  %3898 = vmatpush.msrb.mxu0 %v11952_v8  ;;  %v11597_v27 = vand.u32 4294901760, %v9874_v1  ;;  %v11598_v54 = vand.u32 4294901760, %v9878_v51  ;;  %v11599_v34 = vand.u32 4294901760, %v9882_v58 }
 0x7d7   : > { %v4027_v33 = vand.u32 4294901760, %v4026_v61  ;;  %3989 = vmatpush.msrb.mxu2 %v9853_v24  ;;  %v9967_v61 = vand.u32 4294901760, %v6654_v21 }
 0x7d8   : > { %3949 = vmatpush.msrb.mxu1 %v9613_v38  ;;  %3902 = vmatpush.msrb.mxu0 %v11953_v53  ;;  %v4032_v8 = vsub.f32 %v9874_v1, %v11597_v27  ;;  %v4038_v38 = vsub.f32 %v9878_v51, %v11598_v54  ;;  %v9922_v53 = vand.u32 4294901760, %v11954_v50  ;;  %v4044_v54 = vsub.f32 %v9882_v58, %v11599_v34 }
 0x7d9   : > { %4028 = vmatpush.msrb.mxu3 %v4027_v33  ;;  %3991 = vmatpush.msrb.mxu2 %v9859_v62  ;;  %v9982_v33 = vand.u32 4294901760, %v6652_v20 }
 0x7da   : > { %3951 = vmatpush.msrb.mxu1 %v9616_v6  ;;  %3906 = vmatpush.msrb.mxu0 %v11955_v5  ;;  %v4033_v27 = vand.u32 4294901760, %v4032_v8  ;;  %v11956_v6 = vand.u32 4294901760, %v9704_v4  ;;  %v4050_v5 = vsub.f32 %v9889_v9, %v11957_v60  ;;  %v4039_v8 = vand.u32 4294901760, %v4038_v38 }
 0x7db   : > { %v9946_v34 = vsub.f32 %v11954_v50, %v9922_v53  ;;  %v11958_v4 = vand.u32 4294901760, %v9718_v48  ;;  %v4045_v38 = vand.u32 4294901760, %v4044_v54  ;;  %v9964_v60 = vsub.f32 %v6658_v23, %v9949_v14  ;;  %3993 = vmatpush.msrb.mxu2 %v9862_v46 }
 0x7dc   : > { %3953 = vmatpush.msrb.mxu1 %v9619_v15  ;;  %3910 = vmatpush.msrb.mxu0 %v11956_v6  ;;  %v9952_v15 = vand.u32 4294901760, %v6656_v22  ;;  %v11959_v6 = vand.u32 4294901760, %v9893_v63  ;;  %v11961_v48 = vand.u32 4294901760, %v9909_v10  ;;  %v4051_v54 = vand.u32 4294901760, %v4050_v5 }
 0x7dd   : > { %4034 = vmatpush.msrb.mxu3 %v4033_v27  ;;  %3995 = vmatpush.msrb.mxu2 %v9865_v28 }
 0x7de   : > { %3955 = vmatpush.msrb.mxu1 %v9622_v43  ;;  %3914 = vmatpush.msrb.mxu0 %v11958_v4  ;;  %v4056_v50 = vsub.f32 %v9893_v63, %v11959_v6  ;;  %v11960_v43 = vand.u32 4294901760, %v9732_v59  ;;  %v4062_v27 = vsub.f32 %v9909_v10, %v11961_v48  ;;  %v9979_v6 = vsub.f32 %v6656_v22, %v9952_v15 }
 0x7df   : > { %4040 = vmatpush.msrb.mxu3 %v4039_v8  ;;  %v11963_v59 = vand.u32 4294901760, %v9929_v3  ;;  %v9994_v48 = vsub.f32 %v6654_v21, %v9967_v61  ;;  %v9997_v4 = vand.u32 4294901760, %v6650_v19  ;;  %3997 = vmatpush.msrb.mxu2 %v9896_v42 }
 0x7e0   : > { %3957 = vmatpush.msrb.mxu1 %v9625_v49  ;;  %3918 = vmatpush.msrb.mxu0 %v11960_v43  ;;  %v11962_v49 = vand.u32 4294901760, %v9749_v40  ;;  %v4057_v8 = vand.u32 4294901760, %v4056_v50  ;;  %v4063_v40 = vand.u32 4294901760, %v4062_v27  ;;  %v10012_v43 = vand.u32 4294901760, %v6648_v18 }
 0x7e1   : > { %v4068_v5 = vsub.f32 %v9929_v3, %v11963_v59  ;;  %4046 = vmatpush.msrb.mxu3 %v4045_v38  ;;  %v11965_v38 = vand.u32 4294901760, %v9946_v34  ;;  %v10009_v59 = vsub.f32 %v6652_v20, %v9982_v33  ;;  %v11967_v27 = vand.u32 4294901760, %v9964_v60  ;;  %3999 = vmatpush.msrb.mxu2 %v9922_v53 }
 0x7e2   : > { %3959 = vmatpush.msrb.mxu1 %v9653_v41  ;;  %3922 = vmatpush.msrb.mxu0 %v11962_v49  ;;  %v11964_v41 = vand.u32 4294901760, %v9763_v45  ;;  %v10027_v49 = vand.u32 4294901760, %v6646_v17 }
 0x7e3   : > { %4052 = vmatpush.msrb.mxu3 %v4051_v54  ;;  %v4074_v50 = vsub.f32 %v9946_v34, %v11965_v38  ;;  %v4069_v45 = vand.u32 4294901760, %v4068_v5  ;;  %v4080_v54 = vsub.f32 %v9964_v60, %v11967_v27  ;;  %v10024_v38 = vsub.f32 %v6650_v19, %v9997_v4  ;;  %4001 = vmatpush.msrb.mxu2 %v9949_v14 }
 0x7e4   : > { %3961 = vmatpush.msrb.mxu1 %v9679_v56  ;;  %3926 = vmatpush.msrb.mxu0 %v11964_v41  ;;  %v11966_v56 = vand.u32 4294901760, %v9767_v2  ;;  %v4091_v41 = vand.u32 4294901760, %v9994_v48  ;;  %v11969_v5 = vand.u32 4294901760, %v9979_v6  ;;  %v10039_v27 = vsub.f32 %v6648_v18, %v10012_v43 }
 0x7e5   : > { %4058 = vmatpush.msrb.mxu3 %v4057_v8  ;;  %v4075_v2 = vand.u32 4294901760, %v4074_v50  ;;  %v4103_v50 = vand.u32 4294901760, %v10024_v38  ;;  %4003 = vmatpush.msrb.mxu2 %v9952_v15 }
 0x7e6   : > { %3963 = vmatpush.msrb.mxu1 %v9700_v44  ;;  %3930 = vmatpush.msrb.mxu0 %v11966_v56  ;;  %v11968_v44 = vand.u32 4294901760, %v9791_v37  ;;  %v4086_v8 = vsub.f32 %v9979_v6, %v11969_v5  ;;  %v4097_v56 = vand.u32 4294901760, %v10009_v59  ;;  %v4081_v37 = vand.u32 4294901760, %v4080_v54 }
 0x7e7   : > { %4064 = vmatpush.msrb.mxu3 %v4063_v40  ;;  %v4092_v40 = vsub.f32 %v9994_v48, %v4091_v41  ;;  %4005 = vmatpush.msrb.mxu2 %v9967_v61 }
 0x7e8   : > { %3965 = vmatpush.msrb.mxu1 %v9707_v57  ;;  %3934 = vmatpush.msrb.mxu0 %v11968_v44  ;;  %v11970_v57 = vand.u32 4294901760, %v9804_v13  ;;  %v10051_v44 = vsub.f32 %v6646_v17, %v10027_v49  ;;  %v4098_v13 = vsub.f32 %v10009_v59, %v4097_v56 }
 0x7e9   : > { %4070 = vmatpush.msrb.mxu3 %v4069_v45  ;;  %v4109_v45 = vand.u32 4294901760, %v10039_v27  ;;  %v4093_v54 = vand.u32 4294901760, %v4092_v40  ;;  %4007 = vmatpush.msrb.mxu2 %v9982_v33  ;;  %v11973_v40 = vand.u32 4294901760, %v9878_v51 }
 0x7ea   : > { %3967 = vmatpush.msrb.mxu1 %v9721_v52  ;;  %3938 = vmatpush.msrb.mxu0 %v11970_v57  ;;  %v4087_v52 = vand.u32 4294901760, %v4086_v8  ;;  %v4099_v5 = vand.u32 4294901760, %v4098_v13 }
 0x7eb   : > { %3940 = vmatmul.f32.vlgmr.msrb.gmra.mxu0 %v9782_v11  ;;  %4076 = vmatpush.msrb.mxu3 %v4075_v2  ;;  %v4115_v2 = vand.u32 4294901760, %v10051_v44 }
 0x7ec   : > { %3969 = vmatpush.msrb.mxu1 %v9735_v12  ;;  %4126 = vmatpush.msra.mxu0 %v9870_v36  ;;  %v4104_v12 = vsub.f32 %v10024_v38, %v4103_v50 }
 0x7ed   : > { %4082 = vmatpush.msrb.mxu3 %v4081_v37  ;;  %4009 = vmatpush.msrb.mxu2 %v9997_v4  ;;  %v11972_v37 = vand.u32 4294901760, %v9874_v1 }
 0x7ee   : > { %3971 = vmatpush.msrb.mxu1 %v9741_v26  ;;  %4129 = vmatpush.msra.mxu0 %v9874_v1  ;;  %v4110_v26 = vsub.f32 %v10039_v27, %v4109_v45  ;;  %v4105_v8 = vand.u32 4294901760, %v4104_v12 }
 0x7ef   : > { %4088 = vmatpush.msrb.mxu3 %v4087_v52  ;;  %4011 = vmatpush.msrb.mxu2 %v10012_v43 }
 0x7f0   : > { %3973 = vmatpush.msrb.mxu1 %v9752_v47  ;;  %4132 = vmatpush.msra.mxu0 %v9878_v51  ;;  %v4116_v47 = vsub.f32 %v10051_v44, %v4115_v2  ;;  %v4111_v57 = vand.u32 4294901760, %v4110_v26 }
 0x7f1   : > { %4094 = vmatpush.msrb.mxu3 %v4093_v54  ;;  %4013 = vmatpush.msrb.mxu2 %v10027_v49  ;;  %v4324_v54 = vstv %s4323_s4 }
 0x7f2   : > { %3975 = vmatpush.msrb.mxu1 %v9777_v0  ;;  %4135 = vmatpush.msra.mxu0 %v9882_v58  ;;  %v4117_v0 = vand.u32 4294901760, %v4116_v47 }
 0x7f3   : > { %3977 = vmatmul.f32.vlgmr.msrb.gmra.mxu1 %v9782_v11  ;;  %4100 = vmatpush.msrb.mxu3 %v4099_v5  ;;  %v11971_v11 = vand.u32 4294901760, %v9870_v36  ;;  %v11981_v36 = vand.u32 4294901760, %v9979_v6 }
 0x7f4   : > { %4179 = vmatpush.msra.mxu1 %v9844_v55  ;;  %4138 = vmatpush.msra.mxu0 %v9889_v9 }
 0x7f5   : > { %4106 = vmatpush.msrb.mxu3 %v4105_v8  ;;  %4220 = vmatpush.msra.mxu2 %v11971_v11 }
 0x7f6   : > { %4181 = vmatpush.msra.mxu1 %v9847_v39  ;;  %4141 = vmatpush.msra.mxu0 %v9893_v63 }
 0x7f7   : > { %4112 = vmatpush.msrb.mxu3 %v4111_v57  ;;  %4224 = vmatpush.msra.mxu2 %v11972_v37 }
 0x7f8   : > { %4183 = vmatpush.msra.mxu1 %v9850_v7  ;;  %4144 = vmatpush.msra.mxu0 %v9909_v10 }
 0x7f9   : > { %4118 = vmatpush.msrb.mxu3 %v4117_v0  ;;  %4228 = vmatpush.msra.mxu2 %v11973_v40 }
 0x7fa   : > { %4185 = vmatpush.msra.mxu1 %v9853_v24  ;;  %4147 = vmatpush.msra.mxu0 %v9929_v3 }
 0x7fb   : > { %4287 = vmatpush.msra.mxu3 %v9844_v55  ;;  %v11974_v55 = vand.u32 4294901760, %v9882_v58 }
 0x7fc   : > { %4187 = vmatpush.msra.mxu1 %v9859_v62  ;;  %4150 = vmatpush.msra.mxu0 %v9946_v34 }
 0x7fd   : > { %4289 = vmatpush.msra.mxu3 %v9847_v39  ;;  %4232 = vmatpush.msra.mxu2 %v11974_v55  ;;  %v11975_v39 = vand.u32 4294901760, %v9889_v9 }
 0x7fe   : > { %4189 = vmatpush.msra.mxu1 %v9862_v46  ;;  %4153 = vmatpush.msra.mxu0 %v9964_v60 }
 0x7ff   : > { %4291 = vmatpush.msra.mxu3 %v9850_v7  ;;  %4236 = vmatpush.msra.mxu2 %v11975_v39  ;;  %v11976_v7 = vand.u32 4294901760, %v9893_v63 }
 0x800   : > { %4191 = vmatpush.msra.mxu1 %v9865_v28  ;;  %4156 = vmatpush.msra.mxu0 %v9979_v6 }
 0x801   : > { %4293 = vmatpush.msra.mxu3 %v9853_v24  ;;  %4240 = vmatpush.msra.mxu2 %v11976_v7  ;;  %v11977_v24 = vand.u32 4294901760, %v9909_v10 }
 0x802   : > { %4193 = vmatpush.msra.mxu1 %v9896_v42  ;;  %4159 = vmatpush.msra.mxu0 %v9994_v48 }
 0x803   : > { %4295 = vmatpush.msra.mxu3 %v9859_v62  ;;  %4244 = vmatpush.msra.mxu2 %v11977_v24  ;;  %v11978_v62 = vand.u32 4294901760, %v9929_v3 }
 0x804   : > { %4195 = vmatpush.msra.mxu1 %v9922_v53  ;;  %4162 = vmatpush.msra.mxu0 %v10009_v59  ;;  %v11982_v59 = vld [vmem:[#allocation43_spill] sm:$0xff] }
 0x805   : > { %4297 = vmatpush.msra.mxu3 %v9862_v46  ;;  %4248 = vmatpush.msra.mxu2 %v11978_v62  ;;  %v11979_v46 = vand.u32 4294901760, %v9946_v34 }
 0x806   : > { %4197 = vmatpush.msra.mxu1 %v9949_v14  ;;  %4165 = vmatpush.msra.mxu0 %v10024_v38 }
 0x807   : > { %4299 = vmatpush.msra.mxu3 %v9865_v28  ;;  %4252 = vmatpush.msra.mxu2 %v11979_v46  ;;  %v11980_v28 = vand.u32 4294901760, %v9964_v60 }
 0x808   : > { %4199 = vmatpush.msra.mxu1 %v9952_v15  ;;  %4168 = vmatpush.msra.mxu0 %v10039_v27 }
 0x809   : > { %4301 = vmatpush.msra.mxu3 %v9896_v42  ;;  %4256 = vmatpush.msra.mxu2 %v11980_v28 }
 0x80a   : > { %4201 = vmatpush.msra.mxu1 %v9967_v61  ;;  %4171 = vmatpush.msra.mxu0 %v10051_v44 }
 0x80b   : > { %4303 = vmatpush.msra.mxu3 %v9922_v53  ;;  %4260 = vmatpush.msra.mxu2 %v11981_v36 }
 0x80c   : > { %4203 = vmatpush.msra.mxu1 %v9982_v33 }
 0x80d   : > { %4305 = vmatpush.msra.mxu3 %v9949_v14  ;;  %4264 = vmatpush.msra.mxu2 %v4091_v41 }
 0x80e   : > { %4205 = vmatpush.msra.mxu1 %v9997_v4 }
 0x80f   : > { %4307 = vmatpush.msra.mxu3 %v9952_v15  ;;  %4268 = vmatpush.msra.mxu2 %v4097_v56 }
 0x810   : > { %4207 = vmatpush.msra.mxu1 %v10012_v43 }
 0x811   : > { %4309 = vmatpush.msra.mxu3 %v9967_v61  ;;  %4272 = vmatpush.msra.mxu2 %v4103_v50 }
 0x812   : > { %4209 = vmatpush.msra.mxu1 %v10027_v49 }
 0x813   : > { %4311 = vmatpush.msra.mxu3 %v9982_v33  ;;  %4276 = vmatpush.msra.mxu2 %v4109_v45 }
 0x815   : > { %4313 = vmatpush.msra.mxu3 %v9997_v4  ;;  %4280 = vmatpush.msra.mxu2 %v4115_v2 }
 0x817   : > { %4315 = vmatpush.msra.mxu3 %v10012_v43 }
 0x819   : > { %4317 = vmatpush.msra.mxu3 %v10027_v49 }
 0x84c   : > { %v3678_v1 = vpop.f32.mrf.mxu0 }
 0x84d   : > { %v3679_v51 = vadd.f32 %v3678_v1, %v6644_v16 }
 0x850   : > { %v3779_v58 = vpop.f32.mrf.mxu1  ;;  %v3872_v3 = vpop.f32.mrf.mxu3 }
 0x851   : > { %v3780_v9 = vadd.f32 %v3779_v58, %v3679_v51 }
 0x852   : > { %v3833_v63 = vpop.f32.mrf.mxu2 }
 0x853   : > { %v3834_v42 = vadd.f32 %v3833_v63, %v3780_v9 }
 0x855   : > { %v3873_v34 = vadd.f32 %v3872_v3, %v3834_v42 }
 0x868   : > { %v3941_v14 = vpop.f32.mrf.mxu0 }
 0x869   : > { %v3942_v10 = vadd.f32 %v3941_v14, %v3873_v34 }
 0x870   : > { %v3978_v53 = vpop.f32.mrf.mxu1 }
 0x871   : > { %v3979_v61 = vadd.f32 %v3978_v53, %v3942_v10 }
 0x873   : > { %6122 = vtanh.f32 %v3979_v61 }
 0x879   : > { %v6123_v15 = vpop.eup %6122 }
 0x87a   : > { %v4014_v33 = vand.u32 4294901760, %v6123_v15 }
 0x87c   : > { %4120 = vmatmul.f32.vlgmr.msrb.gmra.mxu3 %v4014_v33  ;;  %v4015_v60 = vsub.f32 %v6123_v15, %v4014_v33 }
 0x87e   : > { %4174 = vmatmul.f32.vlgmr.msra.gmra.mxu0 %v4015_v60  ;;  %v4016_v4 = vand.u32 4294901760, %v4015_v60 }
 0x880   : > { %4213 = vmatmul.f32.vlgmr.msra.gmra.mxu1 %v4016_v4  ;;  %v4017_v6 = vsub.f32 %v4015_v60, %v4016_v4 }
 0x882   : > { %v4018_v43 = vand.u32 4294901760, %v4017_v6 }
 0x884   : > { %4019 = vmatmul.f32.vlgmr.msrb.gmra.mxu2 %v4018_v43  ;;  %4319 = vmatmul.f32.vlgmr.msra.gmra.mxu3 %v4014_v33 }
 0x88c   : > { %4282 = vmatmul.f32.vlgmr.msra.gmra.mxu2 %v4014_v33 }
 0x8fb   : > { %v4175_v56 = vpop.f32.mrf.mxu0 }
 0x8fd   : > { %v4214_v50 = vpop.f32.mrf.mxu1 }
 0x8ff   : > { %v4121_v48 = vpop.f32.mrf.mxu3 }
 0x907   : > { %v4020_v49 = vpop.f32.mrf.mxu2  ;;  %v4320_v45 = vpop.f32.mrf.mxu3 }
 0x908   : > { %v4021_v41 = vadd.f32 %v4020_v49, %v11982_v59 }
 0x90a   : > { %v4122_v38 = vadd.f32 %v4121_v48, %v4021_v41 }
 0x90c   : > { %v4176_v27 = vadd.f32 %v4175_v56, %v4122_v38 }
 0x90e   : > { %v4215_v44 = vadd.f32 %v4214_v50, %v4176_v27 }
 0x90f   : > { %v4283_v52 = vpop.f32.mrf.mxu2 }
 0x910   : > { %v4284_v13 = vadd.f32 %v4283_v52, %v4215_v44 }
 0x912   : > { %v4321_v12 = vadd.f32 %v4320_v45, %v4284_v13 }
 0x914   : > { %v4325_v2 = vmul.f32 %v4324_v54, %v4321_v12  ;;  %3638 = sbr.rel (!%p3635_p11) target bundleno = 1961 (0x7a9), region = 185 }
 0x916   : > { %v4326_v5 = vadd.f32 %v6476_v35, %v4325_v2  }
 0x918   : > { %v11983_v35 = vmov %v4326_v5  ;;  %v11984_v48 = vmov (%p3635_p11), %v4326_v5 }
 0x919 PF:  { %4328 = vst [vmem:[#allocation2 + $0x28] sm:$0xff] %v6484_v48  ;;  %s10171_s15 = sld [smem:[#allocation5 + $0x6]]   ;;  %v11985_v35 = vmov %v6484_v48  ;;  %v6484_v48 = vphi %v11932_v48, %v11984_v48  }
 0x91f   :  { %p5868_p12 = scmp.ge.s32.totalorder %s9589_s14, %s10171_s15 }
 0x921   :  { %5870 = sbr.rel (%p5868_p12) target bundleno = 2710 (0xa96), region = 190 }
 0x926 LB: > { %v11986_v26 = vld [vmem:[#allocation38_spill] sm:$0xff]  ;;  %v11987_v47 = vld [vmem:[#allocation37_spill] sm:$0xff]  ;;  %v11988_v0 = vld [vmem:[#allocation36_spill] sm:$0xff]  ;;  %s5020_s18 = sld [smem:[#allocation4 + %s6492_s14]]  ;;  %s4333_s14 = sadd.s32 1, %s6492_s14   ;;  %s6492_s14 = sphi %s9589_s14, %s4333_s14   ;;  %v6488_v48 = vphi %v6484_v48, %v12036_v48  }
 0x927   : > { %v10189_v8 = vand.u32 4294901760, %v11986_v26  ;;  %v10192_v57 = vand.u32 4294901760, %v11987_v47  ;;  %v10195_v11 = vand.u32 4294901760, %v11988_v0  ;;  %v11989_v37 = vld [vmem:[#allocation35_spill] sm:$0xff]  ;;  %v11990_v55 = vld [vmem:[#allocation34_spill] sm:$0xff]  ;;  %v11991_v7 = vld [vmem:[#allocation33_spill] sm:$0xff]  ;;  %p4332_p13 = scmp.ge.s32.totalorder %s4333_s14, %s10171_s15 }
 0x928   : > { %v10198_v40 = vand.u32 4294901760, %v11989_v37  ;;  %v10201_v39 = vand.u32 4294901760, %v11990_v55  ;;  %v10204_v24 = vand.u32 4294901760, %v11991_v7  ;;  %v11992_v62 = vld [vmem:[#allocation32_spill] sm:$0xff]  ;;  %v11993_v63 = vld [vmem:[#allocation31_spill] sm:$0xff]  ;;  %v11994_v4 = vld [vmem:[#allocation30_spill] sm:$0xff] }
 0x929   : > { %v10207_v46 = vand.u32 4294901760, %v11992_v62  ;;  %4338 = vmatpush.msra.mxu0 %v10189_v8  ;;  %v10212_v28 = vsub.f32 %v11986_v26, %v10189_v8  ;;  %v10216_v36 = vsub.f32 %v11987_v47, %v10192_v57  ;;  %v10220_v1 = vsub.f32 %v11988_v0, %v10195_v11  ;;  %4534 = vmatpush.msra.mxu3 %v10189_v8  ;;  %v11995_v44 = vld [vmem:[#allocation29_spill] sm:$0xff]  ;;  %v11996_v45 = vld [vmem:[#allocation28_spill] sm:$0xff]  ;;  %v11997_v26 = vld [vmem:[#allocation27_spill] sm:$0xff] }
 0x92a   : > { %v10224_v51 = vsub.f32 %v11989_v37, %v10198_v40  ;;  %v10228_v58 = vsub.f32 %v11990_v55, %v10201_v39  ;;  %v10232_v9 = vsub.f32 %v11991_v7, %v10204_v24  ;;  %v10235_v42 = vand.u32 4294901760, %v11993_v63 }
 0x92b   : > { %4340 = vmatpush.msra.mxu0 %v10192_v57  ;;  %v4380_v3 = vand.u32 4294901760, %v10212_v28  ;;  %v4386_v34 = vand.u32 4294901760, %v10216_v36  ;;  %v4392_v14 = vand.u32 4294901760, %v10220_v1  ;;  %4481 = vmatpush.msra.mxu2 %v10212_v28  ;;  %v10247_v61 = vsub.f32 %v11992_v62, %v10207_v46  ;;  %v11998_v62 = vld [vmem:[#allocation26_spill] sm:$0xff] }
 0x92c   : > { %v4398_v10 = vand.u32 4294901760, %v10224_v51  ;;  %v4404_v53 = vand.u32 4294901760, %v10228_v58  ;;  %4536 = vmatpush.msra.mxu3 %v10192_v57  ;;  %v10261_v6 = vand.u32 4294901760, %v11994_v4  ;;  %v10265_v43 = vsub.f32 %v11993_v63, %v10235_v42 }
 0x92d   : > { %v4381_v15 = vsub.f32 %v10212_v28, %v4380_v3  ;;  %4342 = vmatpush.msra.mxu0 %v10195_v11  ;;  %v4387_v33 = vsub.f32 %v10216_v36, %v4386_v34  ;;  %v4393_v60 = vsub.f32 %v10220_v1, %v4392_v14  ;;  %4484 = vmatpush.msra.mxu2 %v10216_v36  ;;  %v11605_v38 = vand.u32 4294901760, %v10232_v9 }
 0x92e   : > { %4538 = vmatpush.msra.mxu3 %v10195_v11  ;;  %v4399_v41 = vsub.f32 %v10224_v51, %v4398_v10  ;;  %v4405_v56 = vsub.f32 %v10228_v58, %v4404_v53  ;;  %v11604_v27 = vand.u32 4294901760, %v10247_v61  ;;  %v10282_v52 = vand.u32 4294901760, %v11995_v44 }
 0x92f   : > { %v4382_v49 = vand.u32 4294901760, %v4381_v15  ;;  %v4388_v59 = vand.u32 4294901760, %v4387_v33  ;;  %4344 = vmatpush.msra.mxu0 %v10198_v40  ;;  %4487 = vmatpush.msra.mxu2 %v10220_v1  ;;  %v4394_v50 = vand.u32 4294901760, %v4393_v60  ;;  %v10286_v13 = vsub.f32 %v11994_v4, %v10261_v6  ;;  %v11999_v33 = vld [vmem:[#allocation25_spill] sm:$0xff]  ;;  %v12002_v1 = vld [vmem:[#allocation42_spill] sm:$0xff] }
 0x930   : > { %4540 = vmatpush.msra.mxu3 %v10198_v40  ;;  %v10289_v54 = vand.u32 4294901760, %v11996_v45  ;;  %v11602_v12 = vand.u32 4294901760, %v10265_v43  ;;  %v4400_v2 = vand.u32 4294901760, %v4399_v41  ;;  %v4411_v5 = vsub.f32 %v10232_v9, %v11605_v38 }
 0x931   : > { %4383 = vmatpush.msra.mxu1 %v4382_v49  ;;  %4346 = vmatpush.msra.mxu0 %v10201_v39  ;;  %v10300_v35 = vsub.f32 %v11995_v44, %v10282_v52  ;;  %v10303_v47 = vand.u32 4294901760, %v11997_v26  ;;  %v4417_v0 = vsub.f32 %v10247_v61, %v11604_v27  ;;  %v4406_v37 = vand.u32 4294901760, %v4405_v56  ;;  %v12000_v56 = vld [vmem:[#allocation24_spill] sm:$0xff] }
 0x932   : > { %4490 = vmatpush.msra.mxu2 %v10224_v51  ;;  %4542 = vmatpush.msra.mxu3 %v10201_v39  ;;  %v11600_v55 = vand.u32 4294901760, %v10286_v13  ;;  %v10314_v7 = vsub.f32 %v11996_v45, %v10289_v54  ;;  %v10317_v63 = vand.u32 4294901760, %v11998_v62  ;;  %v4423_v15 = vsub.f32 %v10265_v43, %v11602_v12 }
 0x933   : > { %4389 = vmatpush.msra.mxu1 %v4388_v59  ;;  %4348 = vmatpush.msra.mxu0 %v10204_v24  ;;  %v10323_v60 = vand.u32 4294901760, %v11999_v33  ;;  %v4412_v4 = vand.u32 4294901760, %v4411_v5  ;;  %v11601_v49 = vand.u32 4294901760, %v10300_v35  ;;  %v10331_v59 = vsub.f32 %v11997_v26, %v10303_v47 }
 0x934   : > { %4493 = vmatpush.msra.mxu2 %v10228_v58  ;;  %4544 = vmatpush.msra.mxu3 %v10204_v24  ;;  %v4418_v41 = vand.u32 4294901760, %v4417_v0  ;;  %v4429_v44 = vsub.f32 %v10286_v13, %v11600_v55  ;;  %v11603_v45 = vand.u32 4294901760, %v10314_v7  ;;  %v4424_v5 = vand.u32 4294901760, %v4423_v15 }
 0x935   : > { %4395 = vmatpush.msra.mxu1 %v4394_v50  ;;  %4350 = vmatpush.msra.mxu0 %v10207_v46  ;;  %v10334_v50 = vand.u32 4294901760, %v12000_v56  ;;  %v10349_v26 = vsub.f32 %v11999_v33, %v10323_v60  ;;  %v4435_v0 = vsub.f32 %v10300_v35, %v11601_v49  ;;  %v10364_v15 = vand.u32 4294901760, %v6488_v48 }
 0x936   : > { %4496 = vmatpush.msra.mxu2 %v10232_v9  ;;  %4546 = vmatpush.msra.mxu3 %v10207_v46  ;;  %v4430_v33 = vand.u32 4294901760, %v4429_v44  ;;  %v10426_v28 = vand.u32 4294901760, %v6676_v32  ;;  %v10429_v36 = vand.u32 4294901760, %v6674_v31  ;;  %v10441_v51 = vand.u32 4294901760, %v12002_v1 }
 0x937   : > { %4401 = vmatpush.msra.mxu1 %v4400_v2  ;;  %4352 = vmatpush.msra.mxu0 %v10235_v42  ;;  %v10345_v2 = vsub.f32 %v11998_v62, %v10317_v63  ;;  %v12001_v62 = vld [vmem:[#allocation23_spill] sm:$0xff]  ;;  %v10373_v12 = vsub.f32 %v12000_v56, %v10334_v50  ;;  %v4436_v44 = vand.u32 4294901760, %v4435_v0  ;;  %v11608_v27 = vand.u32 4294901760, %v10349_v26 }
 0x938   : > { %4499 = vmatpush.msra.mxu2 %v10247_v61  ;;  %4548 = vmatpush.msra.mxu3 %v10235_v42  ;;  %v10359_v55 = vand.u32 4294901760, %v12001_v62 }
 0x939   : > { %4407 = vmatpush.msra.mxu1 %v4406_v37  ;;  %4354 = vmatpush.msra.mxu0 %v10261_v6  ;;  %v11606_v37 = vand.u32 4294901760, %v10331_v59  ;;  %v11607_v49 = vand.u32 4294901760, %v10345_v2  ;;  %v11609_v0 = vand.u32 4294901760, %v10373_v12 }
 0x93a   : > { %4502 = vmatpush.msra.mxu2 %v10265_v43  ;;  %4550 = vmatpush.msra.mxu3 %v10261_v6  ;;  %v10386_v56 = vsub.f32 %v12001_v62, %v10359_v55 }
 0x93b   : > { %4413 = vmatpush.msra.mxu1 %v4412_v4  ;;  %4356 = vmatpush.msra.mxu0 %v10282_v52  ;;  %v4441_v4 = vsub.f32 %v10314_v7, %v11603_v45  ;;  %v4447_v45 = vsub.f32 %v10331_v59, %v11606_v37 }
 0x93c   : > { %4505 = vmatpush.msra.mxu2 %v10286_v13  ;;  %4552 = vmatpush.msra.mxu3 %v10282_v52 }
 0x93d   : > { %4419 = vmatpush.msra.mxu1 %v4418_v41  ;;  %4358 = vmatpush.msra.mxu0 %v10289_v54  ;;  %v4370_v41 = vsub.f32 %v6488_v48, %v10364_v15  ;;  %v4442_v38 = vand.u32 4294901760, %v4441_v4  ;;  %v4448_v62 = vand.u32 4294901760, %v4447_v45  ;;  %v11611_v4 = vand.u32 4294901760, %v10386_v56 }
 0x93e   : > { %4508 = vmatpush.msra.mxu2 %v10300_v35  ;;  %4554 = vmatpush.msra.mxu3 %v10289_v54  ;;  %v4465_v45 = vsub.f32 %v10373_v12, %v11609_v0 }
 0x93f   : > { %4425 = vmatpush.msra.mxu1 %v4424_v5  ;;  %4360 = vmatpush.msra.mxu0 %v10303_v47  ;;  %v4453_v5 = vsub.f32 %v10345_v2, %v11607_v49  ;;  %v4371_v37 = vand.u32 4294901760, %v4370_v41 }
 0x940   : > { %4511 = vmatpush.msra.mxu2 %v10314_v7  ;;  %4556 = vmatpush.msra.mxu3 %v10303_v47 }
 0x941   : > { %4431 = vmatpush.msra.mxu1 %v4430_v33  ;;  %4362 = vmatpush.msra.mxu0 %v10317_v63  ;;  %v4459_v33 = vsub.f32 %v10349_v26, %v11608_v27  ;;  %v4454_v49 = vand.u32 4294901760, %v4453_v5  ;;  %v4466_v5 = vand.u32 4294901760, %v4465_v45  ;;  %v10478_v45 = vand.u32 4294901760, %v6662_v25 }
 0x942   : > { %4514 = vmatpush.msra.mxu2 %v10331_v59  ;;  %4558 = vmatpush.msra.mxu3 %v10317_v63 }
 0x943   : > { %4437 = vmatpush.msra.mxu1 %v4436_v44  ;;  %4364 = vmatpush.msra.mxu0 %v10323_v60  ;;  %v4372_v44 = vsub.f32 %v4370_v41, %v4371_v37  ;;  %v4460_v27 = vand.u32 4294901760, %v4459_v33 }
 0x944   : > { %4517 = vmatpush.msra.mxu2 %v10345_v2  ;;  %4560 = vmatpush.msra.mxu3 %v10323_v60 }
 0x945   : > { %4443 = vmatpush.msra.mxu1 %v4442_v38  ;;  %4366 = vmatpush.msra.mxu0 %v10334_v50  ;;  %v4471_v38 = vsub.f32 %v10386_v56, %v11611_v4  ;;  %v4373_v0 = vand.u32 4294901760, %v4372_v44 }
 0x946   : > { %4520 = vmatpush.msra.mxu2 %v10349_v26  ;;  %4562 = vmatpush.msra.mxu3 %v10334_v50 }
 0x947   : > { %4449 = vmatpush.msra.mxu1 %v4448_v62  ;;  %4368 = vmatpush.msra.mxu0 %v10359_v55  ;;  %v4472_v62 = vand.u32 4294901760, %v4471_v38 }
 0x948   : > { %4523 = vmatpush.msra.mxu2 %v10373_v12  ;;  %4564 = vmatpush.msra.mxu3 %v10359_v55 }
 0x949   : > { %4575 = vmatpush.msrb.mxu0 %v4380_v3  ;;  %4455 = vmatpush.msra.mxu1 %v4454_v49  ;;  %v10432_v3 = vand.u32 4294901760, %v6672_v30 }
 0x94a   : > { %4526 = vmatpush.msra.mxu2 %v10386_v56  ;;  %4568 = vmatmul.f32.vlgmr.msra.gmra.mxu3 %v4371_v37  ;;  %v10452_v37 = vsub.f32 %v6676_v32, %v10426_v28 }
 0x94b   : > { %4579 = vmatpush.msrb.mxu0 %v4386_v34  ;;  %4461 = vmatpush.msra.mxu1 %v4460_v27  ;;  %v10435_v34 = vand.u32 4294901760, %v6670_v29  ;;  %v12004_v27 = vld [vmem:[#allocation40_spill] sm:$0xff]  ;;  %v10460_v58 = vsub.f32 %v6672_v30, %v10432_v3 }
 0x94c   : > { %4529 = vmatmul.f32.vlgmr.msra.gmra.mxu2 %v4370_v41  ;;  %4374 = vmatmul.f32.vlgmr.msra.gmra.mxu0 %v4373_v0  ;;  %v10447_v49 = vand.u32 4294901760, %v12004_v27  ;;  %v12005_v41 = vand.u32 4294901760, %v10232_v9  ;;  %v10471_v0 = vsub.f32 %v12002_v1, %v10441_v51  ;;  %v11610_v44 = vand.u32 4294901760, %v10452_v37 }
 0x94d   : > { %4583 = vmatpush.msrb.mxu0 %v4392_v14  ;;  %4467 = vmatpush.msra.mxu1 %v4466_v5  ;;  %v12003_v14 = vld [vmem:[#allocation41_spill] sm:$0xff]  ;;  %v12006_v5 = vand.u32 4294901760, %v10247_v61  ;;  %v12007_v61 = vld [vmem:[#allocation39_spill] sm:$0xff] }
 0x94e   : > { %4680 = vmatpush.msrb.mxu2 %v10426_v28  ;;  %v10491_v1 = vsub.f32 %v12004_v27, %v10447_v49  ;;  %v12008_v27 = vand.u32 4294901760, %v10265_v43  ;;  %v12010_v43 = vand.u32 4294901760, %v10471_v0 }
 0x94f   : > { %4587 = vmatpush.msrb.mxu0 %v4398_v10  ;;  %4473 = vmatpush.msra.mxu1 %v4472_v62  ;;  %v10444_v10 = vand.u32 4294901760, %v12003_v14  ;;  %v10531_v62 = vand.u32 4294901760, %v6658_v23 }
 0x950   : > { %4475 = vmatmul.f32.vlgmr.msra.gmra.mxu1 %v10364_v15  ;;  %4682 = vmatpush.msrb.mxu2 %v10429_v36 }
 0x951   : > { %4642 = vmatpush.msrb.mxu1 %v10189_v8  ;;  %4591 = vmatpush.msrb.mxu0 %v4404_v53  ;;  %v10456_v8 = vsub.f32 %v6674_v31, %v10429_v36  ;;  %v10464_v53 = vsub.f32 %v6670_v29, %v10435_v34  ;;  %v10475_v33 = vsub.f32 %v12003_v14, %v10444_v10 }
 0x952   : > { %v4723_v14 = vsub.f32 %v10452_v37, %v11610_v44  ;;  %v10511_v44 = vsub.f32 %v6662_v25, %v10478_v45  ;;  %4684 = vmatpush.msrb.mxu2 %v10432_v3 }
 0x953   : > { %4644 = vmatpush.msrb.mxu1 %v10192_v57  ;;  %4595 = vmatpush.msrb.mxu0 %v12005_v41  ;;  %v11612_v38 = vand.u32 4294901760, %v10456_v8  ;;  %v11613_v57 = vand.u32 4294901760, %v10460_v58  ;;  %v11614_v9 = vand.u32 4294901760, %v10464_v53 }
 0x954   : > { %v4724_v4 = vand.u32 4294901760, %v4723_v14  ;;  %4686 = vmatpush.msrb.mxu2 %v10435_v34  ;;  %v10549_v14 = vand.u32 4294901760, %v6654_v21 }
 0x955   : > { %4646 = vmatpush.msrb.mxu1 %v10195_v11  ;;  %4599 = vmatpush.msrb.mxu0 %v12006_v5  ;;  %v4729_v41 = vsub.f32 %v10456_v8, %v11612_v38  ;;  %v4735_v11 = vsub.f32 %v10460_v58, %v11613_v57  ;;  %v10504_v5 = vand.u32 4294901760, %v12007_v61  ;;  %v4741_v57 = vsub.f32 %v10464_v53, %v11614_v9 }
 0x956   : > { %4725 = vmatpush.msrb.mxu3 %v4724_v4  ;;  %4688 = vmatpush.msrb.mxu2 %v10441_v51  ;;  %v10564_v4 = vand.u32 4294901760, %v6652_v20 }
 0x957   : > { %4648 = vmatpush.msrb.mxu1 %v10198_v40  ;;  %4603 = vmatpush.msrb.mxu0 %v12008_v27  ;;  %v4730_v38 = vand.u32 4294901760, %v4729_v41  ;;  %v12009_v40 = vand.u32 4294901760, %v10286_v13  ;;  %v4747_v27 = vsub.f32 %v10471_v0, %v12010_v43  ;;  %v4736_v41 = vand.u32 4294901760, %v4735_v11 }
 0x958   : > { %v10528_v9 = vsub.f32 %v12007_v61, %v10504_v5  ;;  %v12011_v13 = vand.u32 4294901760, %v10300_v35  ;;  %v4742_v11 = vand.u32 4294901760, %v4741_v57  ;;  %v10546_v43 = vsub.f32 %v6658_v23, %v10531_v62  ;;  %4690 = vmatpush.msrb.mxu2 %v10444_v10 }
 0x959   : > { %4650 = vmatpush.msrb.mxu1 %v10201_v39  ;;  %4607 = vmatpush.msrb.mxu0 %v12009_v40  ;;  %v10534_v39 = vand.u32 4294901760, %v6656_v22  ;;  %v12012_v40 = vand.u32 4294901760, %v10475_v33  ;;  %v12014_v35 = vand.u32 4294901760, %v10491_v1  ;;  %v4748_v57 = vand.u32 4294901760, %v4747_v27 }
 0x95a   : > { %4731 = vmatpush.msrb.mxu3 %v4730_v38  ;;  %4692 = vmatpush.msrb.mxu2 %v10447_v49 }
 0x95b   : > { %4652 = vmatpush.msrb.mxu1 %v10204_v24  ;;  %4611 = vmatpush.msrb.mxu0 %v12011_v13  ;;  %v4753_v61 = vsub.f32 %v10475_v33, %v12012_v40  ;;  %v12013_v24 = vand.u32 4294901760, %v10314_v7  ;;  %v4759_v38 = vsub.f32 %v10491_v1, %v12014_v35  ;;  %v10561_v40 = vsub.f32 %v6656_v22, %v10534_v39 }
 0x95c   : > { %4737 = vmatpush.msrb.mxu3 %v4736_v41  ;;  %v12016_v7 = vand.u32 4294901760, %v10511_v44  ;;  %v10576_v35 = vsub.f32 %v6654_v21, %v10549_v14  ;;  %v10579_v13 = vand.u32 4294901760, %v6650_v19  ;;  %4694 = vmatpush.msrb.mxu2 %v10478_v45 }
 0x95d   : > { %4654 = vmatpush.msrb.mxu1 %v10207_v46  ;;  %4615 = vmatpush.msrb.mxu0 %v12013_v24  ;;  %v12015_v46 = vand.u32 4294901760, %v10331_v59  ;;  %v4754_v41 = vand.u32 4294901760, %v4753_v61  ;;  %v4760_v59 = vand.u32 4294901760, %v4759_v38  ;;  %v10594_v24 = vand.u32 4294901760, %v6648_v18 }
 0x95e   : > { %v4765_v27 = vsub.f32 %v10511_v44, %v12016_v7  ;;  %4743 = vmatpush.msrb.mxu3 %v4742_v11  ;;  %v12018_v11 = vand.u32 4294901760, %v10528_v9  ;;  %v10591_v7 = vsub.f32 %v6652_v20, %v10564_v4  ;;  %v12020_v38 = vand.u32 4294901760, %v10546_v43  ;;  %4696 = vmatpush.msrb.mxu2 %v10504_v5 }
 0x95f   : > { %4656 = vmatpush.msrb.mxu1 %v10235_v42  ;;  %4619 = vmatpush.msrb.mxu0 %v12015_v46  ;;  %v12017_v42 = vand.u32 4294901760, %v10345_v2  ;;  %v10609_v46 = vand.u32 4294901760, %v6646_v17 }
 0x960   : > { %4749 = vmatpush.msrb.mxu3 %v4748_v57  ;;  %v4771_v61 = vsub.f32 %v10528_v9, %v12018_v11  ;;  %v4766_v2 = vand.u32 4294901760, %v4765_v27  ;;  %v4777_v57 = vsub.f32 %v10546_v43, %v12020_v38  ;;  %v10606_v11 = vsub.f32 %v6650_v19, %v10579_v13  ;;  %4698 = vmatpush.msrb.mxu2 %v10531_v62 }
 0x961   : > { %4658 = vmatpush.msrb.mxu1 %v10261_v6  ;;  %4623 = vmatpush.msrb.mxu0 %v12017_v42  ;;  %v12019_v6 = vand.u32 4294901760, %v10349_v26  ;;  %v4788_v42 = vand.u32 4294901760, %v10576_v35  ;;  %v12022_v27 = vand.u32 4294901760, %v10561_v40  ;;  %v10621_v38 = vsub.f32 %v6648_v18, %v10594_v24 }
 0x962   : > { %4755 = vmatpush.msrb.mxu3 %v4754_v41  ;;  %v4772_v26 = vand.u32 4294901760, %v4771_v61  ;;  %v4800_v61 = vand.u32 4294901760, %v10606_v11  ;;  %4700 = vmatpush.msrb.mxu2 %v10534_v39 }
 0x963   : > { %4660 = vmatpush.msrb.mxu1 %v10282_v52  ;;  %4627 = vmatpush.msrb.mxu0 %v12019_v6  ;;  %v12021_v52 = vand.u32 4294901760, %v10373_v12  ;;  %v4783_v41 = vsub.f32 %v10561_v40, %v12022_v27  ;;  %v4794_v6 = vand.u32 4294901760, %v10591_v7  ;;  %v4778_v12 = vand.u32 4294901760, %v4777_v57 }
 0x964   : > { %4761 = vmatpush.msrb.mxu3 %v4760_v59  ;;  %v4789_v59 = vsub.f32 %v10576_v35, %v4788_v42  ;;  %4702 = vmatpush.msrb.mxu2 %v10549_v14 }
 0x965   : > { %4662 = vmatpush.msrb.mxu1 %v10289_v54  ;;  %4631 = vmatpush.msrb.mxu0 %v12021_v52  ;;  %v12023_v54 = vand.u32 4294901760, %v10386_v56  ;;  %v10633_v52 = vsub.f32 %v6646_v17, %v10609_v46  ;;  %v4795_v56 = vsub.f32 %v10591_v7, %v4794_v6 }
 0x966   : > { %4767 = vmatpush.msrb.mxu3 %v4766_v2  ;;  %v4806_v2 = vand.u32 4294901760, %v10621_v38  ;;  %v4790_v57 = vand.u32 4294901760, %v4789_v59  ;;  %4704 = vmatpush.msrb.mxu2 %v10564_v4  ;;  %v12026_v59 = vand.u32 4294901760, %v10460_v58 }
 0x967   : > { %4664 = vmatpush.msrb.mxu1 %v10303_v47  ;;  %4635 = vmatpush.msrb.mxu0 %v12023_v54  ;;  %v4784_v47 = vand.u32 4294901760, %v4783_v41  ;;  %v4796_v27 = vand.u32 4294901760, %v4795_v56 }
 0x968   : > { %4637 = vmatmul.f32.vlgmr.msrb.gmra.mxu0 %v10364_v15  ;;  %4773 = vmatpush.msrb.mxu3 %v4772_v26  ;;  %v4812_v26 = vand.u32 4294901760, %v10633_v52 }
 0x969   : > { %4666 = vmatpush.msrb.mxu1 %v10317_v63  ;;  %4823 = vmatpush.msra.mxu0 %v10452_v37  ;;  %v4801_v63 = vsub.f32 %v10606_v11, %v4800_v61 }
 0x96a   : > { %4779 = vmatpush.msrb.mxu3 %v4778_v12  ;;  %4706 = vmatpush.msrb.mxu2 %v10579_v13  ;;  %v12025_v12 = vand.u32 4294901760, %v10456_v8 }
 0x96b   : > { %4668 = vmatpush.msrb.mxu1 %v10323_v60  ;;  %4826 = vmatpush.msra.mxu0 %v10456_v8  ;;  %v4807_v60 = vsub.f32 %v10621_v38, %v4806_v2  ;;  %v4802_v41 = vand.u32 4294901760, %v4801_v63 }
 0x96c   : > { %4785 = vmatpush.msrb.mxu3 %v4784_v47  ;;  %4708 = vmatpush.msrb.mxu2 %v10594_v24 }
 0x96d   : > { %4670 = vmatpush.msrb.mxu1 %v10334_v50  ;;  %4829 = vmatpush.msra.mxu0 %v10460_v58  ;;  %v4813_v50 = vsub.f32 %v10633_v52, %v4812_v26  ;;  %v4808_v54 = vand.u32 4294901760, %v4807_v60 }
 0x96e   : > { %4791 = vmatpush.msrb.mxu3 %v4790_v57  ;;  %4710 = vmatpush.msrb.mxu2 %v10609_v46  ;;  %v5021_v57 = vstv %s5020_s18 }
 0x96f   : > { %4672 = vmatpush.msrb.mxu1 %v10359_v55  ;;  %4832 = vmatpush.msra.mxu0 %v10464_v53  ;;  %v4814_v55 = vand.u32 4294901760, %v4813_v50 }
 0x970   : > { %4674 = vmatmul.f32.vlgmr.msrb.gmra.mxu1 %v10364_v15  ;;  %4797 = vmatpush.msrb.mxu3 %v4796_v27  ;;  %v12024_v15 = vand.u32 4294901760, %v10452_v37  ;;  %v12034_v37 = vand.u32 4294901760, %v10561_v40 }
 0x971   : > { %4876 = vmatpush.msra.mxu1 %v10426_v28  ;;  %4835 = vmatpush.msra.mxu0 %v10471_v0 }
 0x972   : > { %4803 = vmatpush.msrb.mxu3 %v4802_v41  ;;  %4917 = vmatpush.msra.mxu2 %v12024_v15 }
 0x973   : > { %4878 = vmatpush.msra.mxu1 %v10429_v36  ;;  %4838 = vmatpush.msra.mxu0 %v10475_v33 }
 0x974   : > { %4809 = vmatpush.msrb.mxu3 %v4808_v54  ;;  %4921 = vmatpush.msra.mxu2 %v12025_v12 }
 0x975   : > { %4880 = vmatpush.msra.mxu1 %v10432_v3  ;;  %4841 = vmatpush.msra.mxu0 %v10491_v1 }
 0x976   : > { %4815 = vmatpush.msrb.mxu3 %v4814_v55  ;;  %4925 = vmatpush.msra.mxu2 %v12026_v59 }
 0x977   : > { %4882 = vmatpush.msra.mxu1 %v10435_v34  ;;  %4844 = vmatpush.msra.mxu0 %v10511_v44 }
 0x978   : > { %4984 = vmatpush.msra.mxu3 %v10426_v28  ;;  %v12027_v28 = vand.u32 4294901760, %v10464_v53 }
 0x979   : > { %4884 = vmatpush.msra.mxu1 %v10441_v51  ;;  %4847 = vmatpush.msra.mxu0 %v10528_v9 }
 0x97a   : > { %4986 = vmatpush.msra.mxu3 %v10429_v36  ;;  %4929 = vmatpush.msra.mxu2 %v12027_v28  ;;  %v12028_v36 = vand.u32 4294901760, %v10471_v0 }
 0x97b   : > { %4886 = vmatpush.msra.mxu1 %v10444_v10  ;;  %4850 = vmatpush.msra.mxu0 %v10546_v43 }
 0x97c   : > { %4988 = vmatpush.msra.mxu3 %v10432_v3  ;;  %4933 = vmatpush.msra.mxu2 %v12028_v36  ;;  %v12029_v3 = vand.u32 4294901760, %v10475_v33 }
 0x97d   : > { %4888 = vmatpush.msra.mxu1 %v10447_v49  ;;  %4853 = vmatpush.msra.mxu0 %v10561_v40 }
 0x97e   : > { %4990 = vmatpush.msra.mxu3 %v10435_v34  ;;  %4937 = vmatpush.msra.mxu2 %v12029_v3  ;;  %v12030_v34 = vand.u32 4294901760, %v10491_v1 }
 0x97f   : > { %4890 = vmatpush.msra.mxu1 %v10478_v45  ;;  %4856 = vmatpush.msra.mxu0 %v10576_v35 }
 0x980   : > { %4992 = vmatpush.msra.mxu3 %v10441_v51  ;;  %4941 = vmatpush.msra.mxu2 %v12030_v34  ;;  %v12031_v51 = vand.u32 4294901760, %v10511_v44 }
 0x981   : > { %4892 = vmatpush.msra.mxu1 %v10504_v5  ;;  %4859 = vmatpush.msra.mxu0 %v10591_v7  ;;  %v12035_v7 = vld [vmem:[#allocation43_spill] sm:$0xff] }
 0x982   : > { %4994 = vmatpush.msra.mxu3 %v10444_v10  ;;  %4945 = vmatpush.msra.mxu2 %v12031_v51  ;;  %v12032_v10 = vand.u32 4294901760, %v10528_v9 }
 0x983   : > { %4894 = vmatpush.msra.mxu1 %v10531_v62  ;;  %4862 = vmatpush.msra.mxu0 %v10606_v11 }
 0x984   : > { %4996 = vmatpush.msra.mxu3 %v10447_v49  ;;  %4949 = vmatpush.msra.mxu2 %v12032_v10  ;;  %v12033_v49 = vand.u32 4294901760, %v10546_v43 }
 0x985   : > { %4896 = vmatpush.msra.mxu1 %v10534_v39  ;;  %4865 = vmatpush.msra.mxu0 %v10621_v38 }
 0x986   : > { %4998 = vmatpush.msra.mxu3 %v10478_v45  ;;  %4953 = vmatpush.msra.mxu2 %v12033_v49 }
 0x987   : > { %4898 = vmatpush.msra.mxu1 %v10549_v14  ;;  %4868 = vmatpush.msra.mxu0 %v10633_v52 }
 0x988   : > { %5000 = vmatpush.msra.mxu3 %v10504_v5  ;;  %4957 = vmatpush.msra.mxu2 %v12034_v37 }
 0x989   : > { %4900 = vmatpush.msra.mxu1 %v10564_v4 }
 0x98a   : > { %5002 = vmatpush.msra.mxu3 %v10531_v62  ;;  %4961 = vmatpush.msra.mxu2 %v4788_v42 }
 0x98b   : > { %4902 = vmatpush.msra.mxu1 %v10579_v13 }
 0x98c   : > { %5004 = vmatpush.msra.mxu3 %v10534_v39  ;;  %4965 = vmatpush.msra.mxu2 %v4794_v6 }
 0x98d   : > { %4904 = vmatpush.msra.mxu1 %v10594_v24 }
 0x98e   : > { %5006 = vmatpush.msra.mxu3 %v10549_v14  ;;  %4969 = vmatpush.msra.mxu2 %v4800_v61 }
 0x98f   : > { %4906 = vmatpush.msra.mxu1 %v10609_v46 }
 0x990   : > { %5008 = vmatpush.msra.mxu3 %v10564_v4  ;;  %4973 = vmatpush.msra.mxu2 %v4806_v2 }
 0x992   : > { %5010 = vmatpush.msra.mxu3 %v10579_v13  ;;  %4977 = vmatpush.msra.mxu2 %v4812_v26 }
 0x994   : > { %5012 = vmatpush.msra.mxu3 %v10594_v24 }
 0x996   : > { %5014 = vmatpush.msra.mxu3 %v10609_v46 }
 0x9c9   : > { %v4375_v8 = vpop.f32.mrf.mxu0 }
 0x9ca   : > { %v4376_v58 = vadd.f32 %v4375_v8, %v6644_v16 }
 0x9cd   : > { %v4476_v53 = vpop.f32.mrf.mxu1  ;;  %v4569_v44 = vpop.f32.mrf.mxu3 }
 0x9ce   : > { %v4477_v0 = vadd.f32 %v4476_v53, %v4376_v58 }
 0x9cf   : > { %v4530_v33 = vpop.f32.mrf.mxu2 }
 0x9d0   : > { %v4531_v45 = vadd.f32 %v4530_v33, %v4477_v0 }
 0x9d2   : > { %v4570_v9 = vadd.f32 %v4569_v44, %v4531_v45 }
 0x9e5   : > { %v4638_v62 = vpop.f32.mrf.mxu0 }
 0x9e6   : > { %v4639_v1 = vadd.f32 %v4638_v62, %v4570_v9 }
 0x9ed   : > { %v4675_v5 = vpop.f32.mrf.mxu1 }
 0x9ee   : > { %v4676_v14 = vadd.f32 %v4675_v5, %v4639_v1 }
 0x9f0   : > { %6124 = vtanh.f32 %v4676_v14 }
 0x9f6   : > { %v6125_v39 = vpop.eup %6124 }
 0x9f7   : > { %v4711_v4 = vand.u32 4294901760, %v6125_v39 }
 0x9f9   : > { %4817 = vmatmul.f32.vlgmr.msrb.gmra.mxu3 %v4711_v4  ;;  %v4712_v43 = vsub.f32 %v6125_v39, %v4711_v4 }
 0x9fb   : > { %4871 = vmatmul.f32.vlgmr.msra.gmra.mxu0 %v4712_v43  ;;  %v4713_v13 = vand.u32 4294901760, %v4712_v43 }
 0x9fd   : > { %4910 = vmatmul.f32.vlgmr.msra.gmra.mxu1 %v4713_v13  ;;  %v4714_v40 = vsub.f32 %v4712_v43, %v4713_v13 }
 0x9ff   : > { %v4715_v24 = vand.u32 4294901760, %v4714_v40 }
 0xa01   : > { %4716 = vmatmul.f32.vlgmr.msrb.gmra.mxu2 %v4715_v24  ;;  %5016 = vmatmul.f32.vlgmr.msra.gmra.mxu3 %v4711_v4 }
 0xa09   : > { %4979 = vmatmul.f32.vlgmr.msra.gmra.mxu2 %v4711_v4 }
 0xa78   : > { %v4872_v6 = vpop.f32.mrf.mxu0 }
 0xa7a   : > { %v4911_v61 = vpop.f32.mrf.mxu1 }
 0xa7c   : > { %v4818_v35 = vpop.f32.mrf.mxu3 }
 0xa84   : > { %v4717_v46 = vpop.f32.mrf.mxu2  ;;  %v5017_v2 = vpop.f32.mrf.mxu3 }
 0xa85   : > { %v4718_v42 = vadd.f32 %v4717_v46, %v12035_v7 }
 0xa87   : > { %v4819_v11 = vadd.f32 %v4818_v35, %v4718_v42 }
 0xa89   : > { %v4873_v38 = vadd.f32 %v4872_v6, %v4819_v11 }
 0xa8b   : > { %v4912_v52 = vadd.f32 %v4911_v61, %v4873_v38 }
 0xa8c   : > { %v4980_v47 = vpop.f32.mrf.mxu2 }
 0xa8d   : > { %v4981_v56 = vadd.f32 %v4980_v47, %v4912_v52 }
 0xa8f   : > { %v5018_v63 = vadd.f32 %v5017_v2, %v4981_v56 }
 0xa91   : > { %v5022_v26 = vmul.f32 %v5021_v57, %v5018_v63  ;;  %4335 = sbr.rel (!%p4332_p13) target bundleno = 2342 (0x926), region = 196 }
 0xa93   : > { %v5023_v27 = vadd.f32 %v6488_v48, %v5022_v26  }
 0xa95   : > { %v12036_v48 = vmov %v5023_v27  ;;  %v12037_v35 = vmov (%p4332_p13), %v5023_v27 }
 0xa96 PF:  { %5025 = vst [vmem:[#allocation2 + $0x30] sm:$0xff] %v6496_v35  ;;  %s10753_s19 = sld [smem:[#allocation5 + $0x7]]  ;;  %v12038_v48 = vmov %v6496_v35  ;;  %v6496_v35 = vphi %v11985_v35, %v12037_v35  }
 0xa9c   :  { %p5876_p0 = scmp.ge.s32.totalorder %s10171_s15, %s10753_s19 }
 0xa9e   :  { %5878 = sbr.rel (%p5876_p0) target bundleno = 3091 (0xc13), region = 201 }
 0xaa3 LB: > { %v12039_v60 = vld [vmem:[#allocation38_spill] sm:$0xff]  ;;  %v12040_v50 = vld [vmem:[#allocation37_spill] sm:$0xff]  ;;  %v12041_v55 = vld [vmem:[#allocation36_spill] sm:$0xff]  ;;  %s5717_s20 = sld [smem:[#allocation4 + %s6504_s15]]  ;;  %s5030_s15 = sadd.s32 1, %s6504_s15   ;;  %s6504_s15 = sphi %s10171_s15, %s5030_s15   ;;  %v6500_v35 = vphi %v6496_v35, %v12089_v35  }
 0xaa4   : > { %v10771_v41 = vand.u32 4294901760, %v12039_v60  ;;  %v10774_v54 = vand.u32 4294901760, %v12040_v50  ;;  %v10777_v15 = vand.u32 4294901760, %v12041_v55  ;;  %v12042_v12 = vld [vmem:[#allocation35_spill] sm:$0xff]  ;;  %v12043_v28 = vld [vmem:[#allocation34_spill] sm:$0xff]  ;;  %v12044_v3 = vld [vmem:[#allocation33_spill] sm:$0xff]  ;;  %p5029_p1 = scmp.ge.s32.totalorder %s5030_s15, %s10753_s19 }
 0xaa5   : > { %v10780_v59 = vand.u32 4294901760, %v12042_v12  ;;  %v10783_v36 = vand.u32 4294901760, %v12043_v28  ;;  %v10786_v34 = vand.u32 4294901760, %v12044_v3  ;;  %v12045_v51 = vld [vmem:[#allocation32_spill] sm:$0xff]  ;;  %v12046_v33 = vld [vmem:[#allocation31_spill] sm:$0xff]  ;;  %v12047_v13 = vld [vmem:[#allocation30_spill] sm:$0xff] }
 0xaa6   : > { %v10789_v10 = vand.u32 4294901760, %v12045_v51  ;;  %5035 = vmatpush.msra.mxu0 %v10771_v41  ;;  %v10794_v49 = vsub.f32 %v12039_v60, %v10771_v41  ;;  %v10798_v37 = vsub.f32 %v12040_v50, %v10774_v54  ;;  %v10802_v8 = vsub.f32 %v12041_v55, %v10777_v15  ;;  %5231 = vmatpush.msra.mxu3 %v10771_v41  ;;  %v12048_v52 = vld [vmem:[#allocation29_spill] sm:$0xff]  ;;  %v12049_v2 = vld [vmem:[#allocation28_spill] sm:$0xff]  ;;  %v12050_v60 = vld [vmem:[#allocation27_spill] sm:$0xff] }
 0xaa7   : > { %v10806_v58 = vsub.f32 %v12042_v12, %v10780_v59  ;;  %v10810_v53 = vsub.f32 %v12043_v28, %v10783_v36  ;;  %v10814_v0 = vsub.f32 %v12044_v3, %v10786_v34  ;;  %v10817_v45 = vand.u32 4294901760, %v12046_v33 }
 0xaa8   : > { %5037 = vmatpush.msra.mxu0 %v10774_v54  ;;  %v5077_v44 = vand.u32 4294901760, %v10794_v49  ;;  %v5083_v9 = vand.u32 4294901760, %v10798_v37  ;;  %v5089_v62 = vand.u32 4294901760, %v10802_v8  ;;  %5178 = vmatpush.msra.mxu2 %v10794_v49  ;;  %v10829_v14 = vsub.f32 %v12045_v51, %v10789_v10  ;;  %v12051_v51 = vld [vmem:[#allocation26_spill] sm:$0xff] }
 0xaa9   : > { %v5095_v1 = vand.u32 4294901760, %v10806_v58  ;;  %v5101_v5 = vand.u32 4294901760, %v10810_v53  ;;  %5233 = vmatpush.msra.mxu3 %v10774_v54  ;;  %v10843_v40 = vand.u32 4294901760, %v12047_v13  ;;  %v10847_v24 = vsub.f32 %v12046_v33, %v10817_v45 }
 0xaaa   : > { %v5078_v39 = vsub.f32 %v10794_v49, %v5077_v44  ;;  %5039 = vmatpush.msra.mxu0 %v10777_v15  ;;  %v5084_v4 = vsub.f32 %v10798_v37, %v5083_v9  ;;  %v5090_v43 = vsub.f32 %v10802_v8, %v5089_v62  ;;  %5181 = vmatpush.msra.mxu2 %v10798_v37  ;;  %v11620_v11 = vand.u32 4294901760, %v10814_v0 }
 0xaab   : > { %5235 = vmatpush.msra.mxu3 %v10777_v15  ;;  %v5096_v42 = vsub.f32 %v10806_v58, %v5095_v1  ;;  %v5102_v6 = vsub.f32 %v10810_v53, %v5101_v5  ;;  %v11619_v38 = vand.u32 4294901760, %v10829_v14  ;;  %v10864_v47 = vand.u32 4294901760, %v12048_v52 }
 0xaac   : > { %v5079_v46 = vand.u32 4294901760, %v5078_v39  ;;  %v5085_v7 = vand.u32 4294901760, %v5084_v4  ;;  %5041 = vmatpush.msra.mxu0 %v10780_v59  ;;  %5184 = vmatpush.msra.mxu2 %v10802_v8  ;;  %v5091_v61 = vand.u32 4294901760, %v5090_v43  ;;  %v10868_v56 = vsub.f32 %v12047_v13, %v10843_v40  ;;  %v12052_v4 = vld [vmem:[#allocation25_spill] sm:$0xff]  ;;  %v12055_v8 = vld [vmem:[#allocation42_spill] sm:$0xff] }
 0xaad   : > { %5237 = vmatpush.msra.mxu3 %v10780_v59  ;;  %v10871_v57 = vand.u32 4294901760, %v12049_v2  ;;  %v11617_v63 = vand.u32 4294901760, %v10847_v24  ;;  %v5097_v26 = vand.u32 4294901760, %v5096_v42  ;;  %v5108_v27 = vsub.f32 %v10814_v0, %v11620_v11 }
 0xaae   : > { %5080 = vmatpush.msra.mxu1 %v5079_v46  ;;  %5043 = vmatpush.msra.mxu0 %v10783_v36  ;;  %v10882_v48 = vsub.f32 %v12048_v52, %v10864_v47  ;;  %v10885_v50 = vand.u32 4294901760, %v12050_v60  ;;  %v5114_v55 = vsub.f32 %v10829_v14, %v11619_v38  ;;  %v5103_v12 = vand.u32 4294901760, %v5102_v6  ;;  %v12053_v6 = vld [vmem:[#allocation24_spill] sm:$0xff] }
 0xaaf   : > { %5187 = vmatpush.msra.mxu2 %v10806_v58  ;;  %5239 = vmatpush.msra.mxu3 %v10783_v36  ;;  %v11615_v28 = vand.u32 4294901760, %v10868_v56  ;;  %v10896_v3 = vsub.f32 %v12049_v2, %v10871_v57  ;;  %v10899_v33 = vand.u32 4294901760, %v12051_v51  ;;  %v5120_v39 = vsub.f32 %v10847_v24, %v11617_v63 }
 0xab0   : > { %5086 = vmatpush.msra.mxu1 %v5085_v7  ;;  %5045 = vmatpush.msra.mxu0 %v10786_v34  ;;  %v10905_v43 = vand.u32 4294901760, %v12052_v4  ;;  %v5109_v13 = vand.u32 4294901760, %v5108_v27  ;;  %v11616_v46 = vand.u32 4294901760, %v10882_v48  ;;  %v10913_v7 = vsub.f32 %v12050_v60, %v10885_v50 }
 0xab1   : > { %5190 = vmatpush.msra.mxu2 %v10810_v53  ;;  %5241 = vmatpush.msra.mxu3 %v10786_v34  ;;  %v5115_v42 = vand.u32 4294901760, %v5114_v55  ;;  %v5126_v52 = vsub.f32 %v10868_v56, %v11615_v28  ;;  %v11618_v2 = vand.u32 4294901760, %v10896_v3  ;;  %v5121_v27 = vand.u32 4294901760, %v5120_v39 }
 0xab2   : > { %5092 = vmatpush.msra.mxu1 %v5091_v61  ;;  %5047 = vmatpush.msra.mxu0 %v10789_v10  ;;  %v10916_v61 = vand.u32 4294901760, %v12053_v6  ;;  %v10931_v60 = vsub.f32 %v12052_v4, %v10905_v43  ;;  %v5132_v55 = vsub.f32 %v10882_v48, %v11616_v46  ;;  %v10946_v39 = vand.u32 4294901760, %v6500_v35 }
 0xab3   : > { %5193 = vmatpush.msra.mxu2 %v10814_v0  ;;  %5243 = vmatpush.msra.mxu3 %v10789_v10  ;;  %v5127_v4 = vand.u32 4294901760, %v5126_v52  ;;  %v11008_v49 = vand.u32 4294901760, %v6676_v32  ;;  %v11011_v37 = vand.u32 4294901760, %v6674_v31  ;;  %v11023_v58 = vand.u32 4294901760, %v12055_v8 }
 0xab4   : > { %5098 = vmatpush.msra.mxu1 %v5097_v26  ;;  %5049 = vmatpush.msra.mxu0 %v10817_v45  ;;  %v10927_v26 = vsub.f32 %v12051_v51, %v10899_v33  ;;  %v12054_v51 = vld [vmem:[#allocation23_spill] sm:$0xff]  ;;  %v10955_v63 = vsub.f32 %v12053_v6, %v10916_v61  ;;  %v5133_v52 = vand.u32 4294901760, %v5132_v55  ;;  %v11623_v38 = vand.u32 4294901760, %v10931_v60 }
 0xab5   : > { %5196 = vmatpush.msra.mxu2 %v10829_v14  ;;  %5245 = vmatpush.msra.mxu3 %v10817_v45  ;;  %v10941_v28 = vand.u32 4294901760, %v12054_v51 }
 0xab6   : > { %5104 = vmatpush.msra.mxu1 %v5103_v12  ;;  %5051 = vmatpush.msra.mxu0 %v10843_v40  ;;  %v11621_v12 = vand.u32 4294901760, %v10913_v7  ;;  %v11622_v46 = vand.u32 4294901760, %v10927_v26  ;;  %v11624_v55 = vand.u32 4294901760, %v10955_v63 }
 0xab7   : > { %5199 = vmatpush.msra.mxu2 %v10847_v24  ;;  %5247 = vmatpush.msra.mxu3 %v10843_v40  ;;  %v10968_v6 = vsub.f32 %v12054_v51, %v10941_v28 }
 0xab8   : > { %5110 = vmatpush.msra.mxu1 %v5109_v13  ;;  %5053 = vmatpush.msra.mxu0 %v10864_v47  ;;  %v5138_v13 = vsub.f32 %v10896_v3, %v11618_v2  ;;  %v5144_v2 = vsub.f32 %v10913_v7, %v11621_v12 }
 0xab9   : > { %5202 = vmatpush.msra.mxu2 %v10868_v56  ;;  %5249 = vmatpush.msra.mxu3 %v10864_v47 }
 0xaba   : > { %5116 = vmatpush.msra.mxu1 %v5115_v42  ;;  %5055 = vmatpush.msra.mxu0 %v10871_v57  ;;  %v5067_v42 = vsub.f32 %v6500_v35, %v10946_v39  ;;  %v5139_v11 = vand.u32 4294901760, %v5138_v13  ;;  %v5145_v51 = vand.u32 4294901760, %v5144_v2  ;;  %v11626_v13 = vand.u32 4294901760, %v10968_v6 }
 0xabb   : > { %5205 = vmatpush.msra.mxu2 %v10882_v48  ;;  %5251 = vmatpush.msra.mxu3 %v10871_v57  ;;  %v5162_v2 = vsub.f32 %v10955_v63, %v11624_v55 }
 0xabc   : > { %5122 = vmatpush.msra.mxu1 %v5121_v27  ;;  %5057 = vmatpush.msra.mxu0 %v10885_v50  ;;  %v5150_v27 = vsub.f32 %v10927_v26, %v11622_v46  ;;  %v5068_v12 = vand.u32 4294901760, %v5067_v42 }
 0xabd   : > { %5208 = vmatpush.msra.mxu2 %v10896_v3  ;;  %5253 = vmatpush.msra.mxu3 %v10885_v50 }
 0xabe   : > { %5128 = vmatpush.msra.mxu1 %v5127_v4  ;;  %5059 = vmatpush.msra.mxu0 %v10899_v33  ;;  %v5156_v4 = vsub.f32 %v10931_v60, %v11623_v38  ;;  %v5151_v46 = vand.u32 4294901760, %v5150_v27  ;;  %v5163_v27 = vand.u32 4294901760, %v5162_v2  ;;  %v11060_v2 = vand.u32 4294901760, %v6662_v25 }
 0xabf   : > { %5211 = vmatpush.msra.mxu2 %v10913_v7  ;;  %5255 = vmatpush.msra.mxu3 %v10899_v33 }
 0xac0   : > { %5134 = vmatpush.msra.mxu1 %v5133_v52  ;;  %5061 = vmatpush.msra.mxu0 %v10905_v43  ;;  %v5069_v52 = vsub.f32 %v5067_v42, %v5068_v12  ;;  %v5157_v38 = vand.u32 4294901760, %v5156_v4 }
 0xac1   : > { %5214 = vmatpush.msra.mxu2 %v10927_v26  ;;  %5257 = vmatpush.msra.mxu3 %v10905_v43 }
 0xac2   : > { %5140 = vmatpush.msra.mxu1 %v5139_v11  ;;  %5063 = vmatpush.msra.mxu0 %v10916_v61  ;;  %v5168_v11 = vsub.f32 %v10968_v6, %v11626_v13  ;;  %v5070_v55 = vand.u32 4294901760, %v5069_v52 }
 0xac3   : > { %5217 = vmatpush.msra.mxu2 %v10931_v60  ;;  %5259 = vmatpush.msra.mxu3 %v10916_v61 }
 0xac4   : > { %5146 = vmatpush.msra.mxu1 %v5145_v51  ;;  %5065 = vmatpush.msra.mxu0 %v10941_v28  ;;  %v5169_v51 = vand.u32 4294901760, %v5168_v11 }
 0xac5   : > { %5220 = vmatpush.msra.mxu2 %v10955_v63  ;;  %5261 = vmatpush.msra.mxu3 %v10941_v28 }
 0xac6   : > { %5272 = vmatpush.msrb.mxu0 %v5077_v44  ;;  %5152 = vmatpush.msra.mxu1 %v5151_v46  ;;  %v11014_v44 = vand.u32 4294901760, %v6672_v30 }
 0xac7   : > { %5223 = vmatpush.msra.mxu2 %v10968_v6  ;;  %5265 = vmatmul.f32.vlgmr.msra.gmra.mxu3 %v5068_v12  ;;  %v11034_v12 = vsub.f32 %v6676_v32, %v11008_v49 }
 0xac8   : > { %5276 = vmatpush.msrb.mxu0 %v5083_v9  ;;  %5158 = vmatpush.msra.mxu1 %v5157_v38  ;;  %v11017_v9 = vand.u32 4294901760, %v6670_v29  ;;  %v12057_v38 = vld [vmem:[#allocation40_spill] sm:$0xff]  ;;  %v11042_v53 = vsub.f32 %v6672_v30, %v11014_v44 }
 0xac9   : > { %5226 = vmatmul.f32.vlgmr.msra.gmra.mxu2 %v5067_v42  ;;  %5071 = vmatmul.f32.vlgmr.msra.gmra.mxu0 %v5070_v55  ;;  %v11029_v46 = vand.u32 4294901760, %v12057_v38  ;;  %v12058_v42 = vand.u32 4294901760, %v10814_v0  ;;  %v11053_v55 = vsub.f32 %v12055_v8, %v11023_v58  ;;  %v11625_v52 = vand.u32 4294901760, %v11034_v12 }
 0xaca   : > { %5280 = vmatpush.msrb.mxu0 %v5089_v62  ;;  %5164 = vmatpush.msra.mxu1 %v5163_v27  ;;  %v12056_v62 = vld [vmem:[#allocation41_spill] sm:$0xff]  ;;  %v12059_v27 = vand.u32 4294901760, %v10829_v14  ;;  %v12060_v14 = vld [vmem:[#allocation39_spill] sm:$0xff] }
 0xacb   : > { %5377 = vmatpush.msrb.mxu2 %v11008_v49  ;;  %v11073_v8 = vsub.f32 %v12057_v38, %v11029_v46  ;;  %v12061_v38 = vand.u32 4294901760, %v10847_v24  ;;  %v12063_v24 = vand.u32 4294901760, %v11053_v55 }
 0xacc   : > { %5284 = vmatpush.msrb.mxu0 %v5095_v1  ;;  %5170 = vmatpush.msra.mxu1 %v5169_v51  ;;  %v11026_v1 = vand.u32 4294901760, %v12056_v62  ;;  %v11113_v51 = vand.u32 4294901760, %v6658_v23 }
 0xacd   : > { %5172 = vmatmul.f32.vlgmr.msra.gmra.mxu1 %v10946_v39  ;;  %5379 = vmatpush.msrb.mxu2 %v11011_v37 }
 0xace   : > { %5339 = vmatpush.msrb.mxu1 %v10771_v41  ;;  %5288 = vmatpush.msrb.mxu0 %v5101_v5  ;;  %v11038_v41 = vsub.f32 %v6674_v31, %v11011_v37  ;;  %v11046_v5 = vsub.f32 %v6670_v29, %v11017_v9  ;;  %v11057_v4 = vsub.f32 %v12056_v62, %v11026_v1 }
 0xacf   : > { %v5420_v62 = vsub.f32 %v11034_v12, %v11625_v52  ;;  %v11093_v52 = vsub.f32 %v6662_v25, %v11060_v2  ;;  %5381 = vmatpush.msrb.mxu2 %v11014_v44 }
 0xad0   : > { %5341 = vmatpush.msrb.mxu1 %v10774_v54  ;;  %5292 = vmatpush.msrb.mxu0 %v12058_v42  ;;  %v11627_v11 = vand.u32 4294901760, %v11038_v41  ;;  %v11628_v54 = vand.u32 4294901760, %v11042_v53  ;;  %v11629_v0 = vand.u32 4294901760, %v11046_v5 }
 0xad1   : > { %v5421_v13 = vand.u32 4294901760, %v5420_v62  ;;  %5383 = vmatpush.msrb.mxu2 %v11017_v9  ;;  %v11131_v62 = vand.u32 4294901760, %v6654_v21 }
 0xad2   : > { %5343 = vmatpush.msrb.mxu1 %v10777_v15  ;;  %5296 = vmatpush.msrb.mxu0 %v12059_v27  ;;  %v5426_v42 = vsub.f32 %v11038_v41, %v11627_v11  ;;  %v5432_v15 = vsub.f32 %v11042_v53, %v11628_v54  ;;  %v11086_v27 = vand.u32 4294901760, %v12060_v14  ;;  %v5438_v54 = vsub.f32 %v11046_v5, %v11629_v0 }
 0xad3   : > { %5422 = vmatpush.msrb.mxu3 %v5421_v13  ;;  %5385 = vmatpush.msrb.mxu2 %v11023_v58  ;;  %v11146_v13 = vand.u32 4294901760, %v6652_v20 }
 0xad4   : > { %5345 = vmatpush.msrb.mxu1 %v10780_v59  ;;  %5300 = vmatpush.msrb.mxu0 %v12061_v38  ;;  %v5427_v11 = vand.u32 4294901760, %v5426_v42  ;;  %v12062_v59 = vand.u32 4294901760, %v10868_v56  ;;  %v5444_v38 = vsub.f32 %v11053_v55, %v12063_v24  ;;  %v5433_v42 = vand.u32 4294901760, %v5432_v15 }
 0xad5   : > { %v11110_v0 = vsub.f32 %v12060_v14, %v11086_v27  ;;  %v12064_v56 = vand.u32 4294901760, %v10882_v48  ;;  %v5439_v15 = vand.u32 4294901760, %v5438_v54  ;;  %v11128_v24 = vsub.f32 %v6658_v23, %v11113_v51  ;;  %5387 = vmatpush.msrb.mxu2 %v11026_v1 }
 0xad6   : > { %5347 = vmatpush.msrb.mxu1 %v10783_v36  ;;  %5304 = vmatpush.msrb.mxu0 %v12062_v59  ;;  %v11116_v36 = vand.u32 4294901760, %v6656_v22  ;;  %v12065_v59 = vand.u32 4294901760, %v11057_v4  ;;  %v12067_v48 = vand.u32 4294901760, %v11073_v8  ;;  %v5445_v54 = vand.u32 4294901760, %v5444_v38 }
 0xad7   : > { %5428 = vmatpush.msrb.mxu3 %v5427_v11  ;;  %5389 = vmatpush.msrb.mxu2 %v11029_v46 }
 0xad8   : > { %5349 = vmatpush.msrb.mxu1 %v10786_v34  ;;  %5308 = vmatpush.msrb.mxu0 %v12064_v56  ;;  %v5450_v14 = vsub.f32 %v11057_v4, %v12065_v59  ;;  %v12066_v34 = vand.u32 4294901760, %v10896_v3  ;;  %v5456_v11 = vsub.f32 %v11073_v8, %v12067_v48  ;;  %v11143_v59 = vsub.f32 %v6656_v22, %v11116_v36 }
 0xad9   : > { %5434 = vmatpush.msrb.mxu3 %v5433_v42  ;;  %v12069_v3 = vand.u32 4294901760, %v11093_v52  ;;  %v11158_v48 = vsub.f32 %v6654_v21, %v11131_v62  ;;  %v11161_v56 = vand.u32 4294901760, %v6650_v19  ;;  %5391 = vmatpush.msrb.mxu2 %v11060_v2 }
 0xada   : > { %5351 = vmatpush.msrb.mxu1 %v10789_v10  ;;  %5312 = vmatpush.msrb.mxu0 %v12066_v34  ;;  %v12068_v10 = vand.u32 4294901760, %v10913_v7  ;;  %v5451_v42 = vand.u32 4294901760, %v5450_v14  ;;  %v5457_v7 = vand.u32 4294901760, %v5456_v11  ;;  %v11176_v34 = vand.u32 4294901760, %v6648_v18 }
 0xadb   : > { %v5462_v38 = vsub.f32 %v11093_v52, %v12069_v3  ;;  %5440 = vmatpush.msrb.mxu3 %v5439_v15  ;;  %v12071_v15 = vand.u32 4294901760, %v11110_v0  ;;  %v11173_v3 = vsub.f32 %v6652_v20, %v11146_v13  ;;  %v12073_v11 = vand.u32 4294901760, %v11128_v24  ;;  %5393 = vmatpush.msrb.mxu2 %v11086_v27 }
 0xadc   : > { %5353 = vmatpush.msrb.mxu1 %v10817_v45  ;;  %5316 = vmatpush.msrb.mxu0 %v12068_v10  ;;  %v12070_v45 = vand.u32 4294901760, %v10927_v26  ;;  %v11191_v10 = vand.u32 4294901760, %v6646_v17 }
 0xadd   : > { %5446 = vmatpush.msrb.mxu3 %v5445_v54  ;;  %v5468_v14 = vsub.f32 %v11110_v0, %v12071_v15  ;;  %v5463_v26 = vand.u32 4294901760, %v5462_v38  ;;  %v5474_v54 = vsub.f32 %v11128_v24, %v12073_v11  ;;  %v11188_v15 = vsub.f32 %v6650_v19, %v11161_v56  ;;  %5395 = vmatpush.msrb.mxu2 %v11113_v51 }
 0xade   : > { %5355 = vmatpush.msrb.mxu1 %v10843_v40  ;;  %5320 = vmatpush.msrb.mxu0 %v12070_v45  ;;  %v12072_v40 = vand.u32 4294901760, %v10931_v60  ;;  %v5485_v45 = vand.u32 4294901760, %v11158_v48  ;;  %v12075_v38 = vand.u32 4294901760, %v11143_v59  ;;  %v11203_v11 = vsub.f32 %v6648_v18, %v11176_v34 }
 0xadf   : > { %5452 = vmatpush.msrb.mxu3 %v5451_v42  ;;  %v5469_v60 = vand.u32 4294901760, %v5468_v14  ;;  %v5497_v14 = vand.u32 4294901760, %v11188_v15  ;;  %5397 = vmatpush.msrb.mxu2 %v11116_v36 }
 0xae0   : > { %5357 = vmatpush.msrb.mxu1 %v10864_v47  ;;  %5324 = vmatpush.msrb.mxu0 %v12072_v40  ;;  %v12074_v47 = vand.u32 4294901760, %v10955_v63  ;;  %v5480_v42 = vsub.f32 %v11143_v59, %v12075_v38  ;;  %v5491_v40 = vand.u32 4294901760, %v11173_v3  ;;  %v5475_v63 = vand.u32 4294901760, %v5474_v54 }
 0xae1   : > { %5458 = vmatpush.msrb.mxu3 %v5457_v7  ;;  %v5486_v7 = vsub.f32 %v11158_v48, %v5485_v45  ;;  %5399 = vmatpush.msrb.mxu2 %v11131_v62 }
 0xae2   : > { %5359 = vmatpush.msrb.mxu1 %v10871_v57  ;;  %5328 = vmatpush.msrb.mxu0 %v12074_v47  ;;  %v12076_v57 = vand.u32 4294901760, %v10968_v6  ;;  %v11215_v47 = vsub.f32 %v6646_v17, %v11191_v10  ;;  %v5492_v6 = vsub.f32 %v11173_v3, %v5491_v40 }
 0xae3   : > { %5464 = vmatpush.msrb.mxu3 %v5463_v26  ;;  %v5503_v26 = vand.u32 4294901760, %v11203_v11  ;;  %v5487_v54 = vand.u32 4294901760, %v5486_v7  ;;  %5401 = vmatpush.msrb.mxu2 %v11146_v13  ;;  %v12079_v7 = vand.u32 4294901760, %v11042_v53 }
 0xae4   : > { %5361 = vmatpush.msrb.mxu1 %v10885_v50  ;;  %5332 = vmatpush.msrb.mxu0 %v12076_v57  ;;  %v5481_v50 = vand.u32 4294901760, %v5480_v42  ;;  %v5493_v38 = vand.u32 4294901760, %v5492_v6 }
 0xae5   : > { %5334 = vmatmul.f32.vlgmr.msrb.gmra.mxu0 %v10946_v39  ;;  %5470 = vmatpush.msrb.mxu3 %v5469_v60  ;;  %v5509_v60 = vand.u32 4294901760, %v11215_v47 }
 0xae6   : > { %5363 = vmatpush.msrb.mxu1 %v10899_v33  ;;  %5520 = vmatpush.msra.mxu0 %v11034_v12  ;;  %v5498_v33 = vsub.f32 %v11188_v15, %v5497_v14 }
 0xae7   : > { %5476 = vmatpush.msrb.mxu3 %v5475_v63  ;;  %5403 = vmatpush.msrb.mxu2 %v11161_v56  ;;  %v12078_v63 = vand.u32 4294901760, %v11038_v41 }
 0xae8   : > { %5365 = vmatpush.msrb.mxu1 %v10905_v43  ;;  %5523 = vmatpush.msra.mxu0 %v11038_v41  ;;  %v5504_v43 = vsub.f32 %v11203_v11, %v5503_v26  ;;  %v5499_v42 = vand.u32 4294901760, %v5498_v33 }
 0xae9   : > { %5482 = vmatpush.msrb.mxu3 %v5481_v50  ;;  %5405 = vmatpush.msrb.mxu2 %v11176_v34 }
 0xaea   : > { %5367 = vmatpush.msrb.mxu1 %v10916_v61  ;;  %5526 = vmatpush.msra.mxu0 %v11042_v53  ;;  %v5510_v61 = vsub.f32 %v11215_v47, %v5509_v60  ;;  %v5505_v57 = vand.u32 4294901760, %v5504_v43 }
 0xaeb   : > { %5488 = vmatpush.msrb.mxu3 %v5487_v54  ;;  %5407 = vmatpush.msrb.mxu2 %v11191_v10  ;;  %v5718_v54 = vstv %s5717_s20 }
 0xaec   : > { %5369 = vmatpush.msrb.mxu1 %v10941_v28  ;;  %5529 = vmatpush.msra.mxu0 %v11046_v5  ;;  %v5511_v28 = vand.u32 4294901760, %v5510_v61 }
 0xaed   : > { %5371 = vmatmul.f32.vlgmr.msrb.gmra.mxu1 %v10946_v39  ;;  %5494 = vmatpush.msrb.mxu3 %v5493_v38  ;;  %v12077_v39 = vand.u32 4294901760, %v11034_v12  ;;  %v12087_v12 = vand.u32 4294901760, %v11143_v59 }
 0xaee   : > { %5573 = vmatpush.msra.mxu1 %v11008_v49  ;;  %5532 = vmatpush.msra.mxu0 %v11053_v55 }
 0xaef   : > { %5500 = vmatpush.msrb.mxu3 %v5499_v42  ;;  %5614 = vmatpush.msra.mxu2 %v12077_v39 }
 0xaf0   : > { %5575 = vmatpush.msra.mxu1 %v11011_v37  ;;  %5535 = vmatpush.msra.mxu0 %v11057_v4 }
 0xaf1   : > { %5506 = vmatpush.msrb.mxu3 %v5505_v57  ;;  %5618 = vmatpush.msra.mxu2 %v12078_v63 }
 0xaf2   : > { %5577 = vmatpush.msra.mxu1 %v11014_v44  ;;  %5538 = vmatpush.msra.mxu0 %v11073_v8 }
 0xaf3   : > { %5512 = vmatpush.msrb.mxu3 %v5511_v28  ;;  %5622 = vmatpush.msra.mxu2 %v12079_v7 }
 0xaf4   : > { %5579 = vmatpush.msra.mxu1 %v11017_v9  ;;  %5541 = vmatpush.msra.mxu0 %v11093_v52 }
 0xaf5   : > { %5681 = vmatpush.msra.mxu3 %v11008_v49  ;;  %v12080_v49 = vand.u32 4294901760, %v11046_v5 }
 0xaf6   : > { %5581 = vmatpush.msra.mxu1 %v11023_v58  ;;  %5544 = vmatpush.msra.mxu0 %v11110_v0 }
 0xaf7   : > { %5683 = vmatpush.msra.mxu3 %v11011_v37  ;;  %5626 = vmatpush.msra.mxu2 %v12080_v49  ;;  %v12081_v37 = vand.u32 4294901760, %v11053_v55 }
 0xaf8   : > { %5583 = vmatpush.msra.mxu1 %v11026_v1  ;;  %5547 = vmatpush.msra.mxu0 %v11128_v24 }
 0xaf9   : > { %5685 = vmatpush.msra.mxu3 %v11014_v44  ;;  %5630 = vmatpush.msra.mxu2 %v12081_v37  ;;  %v12082_v44 = vand.u32 4294901760, %v11057_v4 }
 0xafa   : > { %5585 = vmatpush.msra.mxu1 %v11029_v46  ;;  %5550 = vmatpush.msra.mxu0 %v11143_v59 }
 0xafb   : > { %5687 = vmatpush.msra.mxu3 %v11017_v9  ;;  %5634 = vmatpush.msra.mxu2 %v12082_v44  ;;  %v12083_v9 = vand.u32 4294901760, %v11073_v8 }
 0xafc   : > { %5587 = vmatpush.msra.mxu1 %v11060_v2  ;;  %5553 = vmatpush.msra.mxu0 %v11158_v48 }
 0xafd   : > { %5689 = vmatpush.msra.mxu3 %v11023_v58  ;;  %5638 = vmatpush.msra.mxu2 %v12083_v9  ;;  %v12084_v58 = vand.u32 4294901760, %v11093_v52 }
 0xafe   : > { %5589 = vmatpush.msra.mxu1 %v11086_v27  ;;  %5556 = vmatpush.msra.mxu0 %v11173_v3  ;;  %v12088_v3 = vld [vmem:[#allocation43_spill] sm:$0xff] }
 0xaff   : > { %5691 = vmatpush.msra.mxu3 %v11026_v1  ;;  %5642 = vmatpush.msra.mxu2 %v12084_v58  ;;  %v12085_v1 = vand.u32 4294901760, %v11110_v0 }
 0xb00   : > { %5591 = vmatpush.msra.mxu1 %v11113_v51  ;;  %5559 = vmatpush.msra.mxu0 %v11188_v15 }
 0xb01   : > { %5693 = vmatpush.msra.mxu3 %v11029_v46  ;;  %5646 = vmatpush.msra.mxu2 %v12085_v1  ;;  %v12086_v46 = vand.u32 4294901760, %v11128_v24 }
 0xb02   : > { %5593 = vmatpush.msra.mxu1 %v11116_v36  ;;  %5562 = vmatpush.msra.mxu0 %v11203_v11 }
 0xb03   : > { %5695 = vmatpush.msra.mxu3 %v11060_v2  ;;  %5650 = vmatpush.msra.mxu2 %v12086_v46 }
 0xb04   : > { %5595 = vmatpush.msra.mxu1 %v11131_v62  ;;  %5565 = vmatpush.msra.mxu0 %v11215_v47 }
 0xb05   : > { %5697 = vmatpush.msra.mxu3 %v11086_v27  ;;  %5654 = vmatpush.msra.mxu2 %v12087_v12 }
 0xb06   : > { %5597 = vmatpush.msra.mxu1 %v11146_v13 }
 0xb07   : > { %5699 = vmatpush.msra.mxu3 %v11113_v51  ;;  %5658 = vmatpush.msra.mxu2 %v5485_v45 }
 0xb08   : > { %5599 = vmatpush.msra.mxu1 %v11161_v56 }
 0xb09   : > { %5701 = vmatpush.msra.mxu3 %v11116_v36  ;;  %5662 = vmatpush.msra.mxu2 %v5491_v40 }
 0xb0a   : > { %5601 = vmatpush.msra.mxu1 %v11176_v34 }
 0xb0b   : > { %5703 = vmatpush.msra.mxu3 %v11131_v62  ;;  %5666 = vmatpush.msra.mxu2 %v5497_v14 }
 0xb0c   : > { %5603 = vmatpush.msra.mxu1 %v11191_v10 }
 0xb0d   : > { %5705 = vmatpush.msra.mxu3 %v11146_v13  ;;  %5670 = vmatpush.msra.mxu2 %v5503_v26 }
 0xb0f   : > { %5707 = vmatpush.msra.mxu3 %v11161_v56  ;;  %5674 = vmatpush.msra.mxu2 %v5509_v60 }
 0xb11   : > { %5709 = vmatpush.msra.mxu3 %v11176_v34 }
 0xb13   : > { %5711 = vmatpush.msra.mxu3 %v11191_v10 }
 0xb46   : > { %v5072_v41 = vpop.f32.mrf.mxu0 }
 0xb47   : > { %v5073_v53 = vadd.f32 %v5072_v41, %v6644_v16 }
 0xb4a   : > { %v5173_v5 = vpop.f32.mrf.mxu1  ;;  %v5266_v52 = vpop.f32.mrf.mxu3 }
 0xb4b   : > { %v5174_v55 = vadd.f32 %v5173_v5, %v5073_v53 }
 0xb4c   : > { %v5227_v4 = vpop.f32.mrf.mxu2 }
 0xb4d   : > { %v5228_v2 = vadd.f32 %v5227_v4, %v5174_v55 }
 0xb4f   : > { %v5267_v0 = vadd.f32 %v5266_v52, %v5228_v2 }
 0xb62   : > { %v5335_v51 = vpop.f32.mrf.mxu0 }
 0xb63   : > { %v5336_v8 = vadd.f32 %v5335_v51, %v5267_v0 }
 0xb6a   : > { %v5372_v27 = vpop.f32.mrf.mxu1 }
 0xb6b   : > { %v5373_v62 = vadd.f32 %v5372_v27, %v5336_v8 }
 0xb6d   : > { %6126 = vtanh.f32 %v5373_v62 }
 0xb73   : > { %v6127_v36 = vpop.eup %6126 }
 0xb74   : > { %v5408_v13 = vand.u32 4294901760, %v6127_v36 }
 0xb76   : > { %5514 = vmatmul.f32.vlgmr.msrb.gmra.mxu3 %v5408_v13  ;;  %v5409_v24 = vsub.f32 %v6127_v36, %v5408_v13 }
 0xb78   : > { %5568 = vmatmul.f32.vlgmr.msra.gmra.mxu0 %v5409_v24  ;;  %v5410_v56 = vand.u32 4294901760, %v5409_v24 }
 0xb7a   : > { %5607 = vmatmul.f32.vlgmr.msra.gmra.mxu1 %v5410_v56  ;;  %v5411_v59 = vsub.f32 %v5409_v24, %v5410_v56 }
 0xb7c   : > { %v5412_v34 = vand.u32 4294901760, %v5411_v59 }
 0xb7e   : > { %5413 = vmatmul.f32.vlgmr.msrb.gmra.mxu2 %v5412_v34  ;;  %5713 = vmatmul.f32.vlgmr.msra.gmra.mxu3 %v5408_v13 }
 0xb86   : > { %5676 = vmatmul.f32.vlgmr.msra.gmra.mxu2 %v5408_v13 }
 0xbf5   : > { %v5569_v40 = vpop.f32.mrf.mxu0 }
 0xbf7   : > { %v5608_v14 = vpop.f32.mrf.mxu1 }
 0xbf9   : > { %v5515_v48 = vpop.f32.mrf.mxu3 }
 0xc01   : > { %v5414_v10 = vpop.f32.mrf.mxu2  ;;  %v5714_v26 = vpop.f32.mrf.mxu3 }
 0xc02   : > { %v5415_v45 = vadd.f32 %v5414_v10, %v12088_v3 }
 0xc04   : > { %v5516_v15 = vadd.f32 %v5515_v48, %v5415_v45 }
 0xc06   : > { %v5570_v11 = vadd.f32 %v5569_v40, %v5516_v15 }
 0xc08   : > { %v5609_v47 = vadd.f32 %v5608_v14, %v5570_v11 }
 0xc09   : > { %v5677_v50 = vpop.f32.mrf.mxu2 }
 0xc0a   : > { %v5678_v6 = vadd.f32 %v5677_v50, %v5609_v47 }
 0xc0c   : > { %v5715_v33 = vadd.f32 %v5714_v26, %v5678_v6 }
 0xc0e   : > { %v5719_v60 = vmul.f32 %v5718_v54, %v5715_v33  ;;  %5032 = sbr.rel (!%p5029_p1) target bundleno = 2723 (0xaa3), region = 207 }
 0xc10   : > { %v5720_v38 = vadd.f32 %v6500_v35, %v5719_v60  }
 0xc12   : > { %v12089_v35 = vmov %v5720_v38  ;;  %v12090_v48 = vmov (%p5029_p1), %v5720_v38 }
 0xc13 PF:  { %5722 = vst [vmem:[#allocation2 + $0x38] sm:$0xff] %v6508_v48  ;;  %s5723_s6 = sld [smem:[#allocation6]]  ;;  %v6508_v48 = vphi %v12038_v48, %v12090_v48  }
 0xc14   :  { %s5727_s21 = sld [smem:[#allocation7]] }
 0xc15   :  { %s5731_s22 = sld [smem:[#allocation8]] }
 0xc16   :  { %s5893_s23 = sld [smem:[#allocation6 + $0x1]] }
 0xc17   :  { %s5895_s5 = sld [smem:[#allocation7 + $0x1]] }
 0xc18   :  { %s5897_s24 = sld [smem:[#allocation8 + $0x1]] }
 0xc19   :  { %s5891_s25 = sshll.u32 %s5723_s6, 3  ;;  %s5898_s26 = sld [smem:[#allocation6 + $0x2]] }
 0xc1a   :  { %s5892_s0 = sshll.u32 %s5727_s21, 3  ;;  %s5725_s7 = scalar_lea.vmem [#allocation2], %s5891_s25 }
 0xc1b   :  { %v5726_v35 = vld [vmem:[%s5725_s7] sm:$0xff]  ;;  %s5900_s8 = sld [smem:[#allocation7 + $0x2]]  ;;  %s5729_s27 = scalar_lea.vmem [#allocation2], %s5892_s0  ;;  %v5733_v17 = vstv %s5731_s22 }
 0xc1c   :  { %v5730_v16 = vld [vmem:[%s5729_s27] sm:$0xff]  ;;  %s5894_s1 = sshll.u32 %s5893_s23, 3  ;;  %s5902_s9 = sld [smem:[#allocation8 + $0x2]] }
 0xc1d   :  { %v5732_v18 = vsub.f32 %v5730_v16, %v5726_v35  ;;  %s5896_s28 = sshll.u32 %s5895_s5, 3  ;;  %s5739_s29 = scalar_lea.vmem [#allocation2], %s5894_s1 }
 0xc1e   :  { %v5740_v19 = vld [vmem:[%s5739_s29] sm:$0xff]  ;;  %s5903_s30 = sld [smem:[#allocation6 + $0x3]]  ;;  %s5743_s2 = scalar_lea.vmem [#allocation2], %s5896_s28  ;;  %v5747_v22 = vstv %s5897_s24 }
 0xc1f   :  { %v5734_v20 = vmul.f32 %v5733_v17, %v5732_v18  ;;  %v5744_v21 = vld [vmem:[%s5743_s2] sm:$0xff]  ;;  %s5899_s3 = sshll.u32 %s5898_s26, 3  ;;  %s5905_s11 = sld [smem:[#allocation7 + $0x3]] }
 0xc20   :  { %v5746_v23 = vsub.f32 %v5744_v21, %v5740_v19  ;;  %s5907_s12 = sld [smem:[#allocation8 + $0x3]]  ;;  %s5754_s13 = scalar_lea.vmem [#allocation2], %s5899_s3 }
 0xc21   :  { %v5735_v25 = vadd.f32 %v5734_v20, %v5726_v35  ;;  %v5755_v29 = vld [vmem:[%s5754_s13] sm:$0xff]  ;;  %s5901_s14 = sshll.u32 %s5900_s8, 3  ;;  %s6521_s6 = smov [#allocation17]  }
 0xc22   :  { %v5748_v30 = vmul.f32 %v5747_v22, %v5746_v23  ;;  %s5758_s4 = scalar_lea.vmem [#allocation2], %s5901_s14  ;;  %v5762_v32 = vstv %s5902_s9  ;;  %s5786_s21 = sshll.u32 %s6521_s6, 4  ;;  %s5787_s21 = int_to_ptr.vmem [resolvable:$true] %s5786_s21 }
 0xc23   :  { %5736 = vst [vmem:[#allocation17] sm:$0xff] %v5735_v25  ;;  %v5759_v31 = vld [vmem:[%s5758_s4] sm:$0xff]  ;;  %s5788_s5 = sshll.u32 %s11347_s10, 4  ;;  %s5789_s5 = int_to_ptr.hbm [resolvable:$true] %s5788_s5 }
 0xc24   :  { %v5749_v43 = vadd.f32 %v5748_v30, %v5740_v19  ;;  %v5761_v42 = vsub.f32 %v5759_v31, %v5755_v29  ;;  %s5904_s15 = sshll.u32 %s5903_s30, 3 }
 0xc25   :  { %s5906_s18 = sshll.u32 %s5905_s11, 3  ;;  %s5769_s19 = scalar_lea.vmem [#allocation2], %s5904_s15 }
 0xc26   :  { %5751 = vst [vmem:[#allocation17 + $0x8] sm:$0xff] %v5749_v43  ;;  %v5763_v61 = vmul.f32 %v5762_v32, %v5761_v42  ;;  %v5770_v57 = vld [vmem:[%s5769_s19] sm:$0xff]  ;;  %s5773_s20 = scalar_lea.vmem [#allocation2], %s5906_s18  ;;  %v5777_v39 = vstv %s5907_s12 }
 0xc27   :  { %v5774_v28 = vld [vmem:[%s5773_s20] sm:$0xff] }
 0xc28   :  { %v5764_v63 = vadd.f32 %v5763_v61, %v5755_v29  ;;  %v5776_v7 = vsub.f32 %v5774_v28, %v5770_v57 }
 0xc2a   :  { %5766 = vst [vmem:[#allocation17 + $0x10] sm:$0xff] %v5764_v63  ;;  %v5778_v49 = vmul.f32 %v5777_v39, %v5776_v7 }
 0xc2c   :  { %v5779_v37 = vadd.f32 %v5778_v49, %v5770_v57 }
 0xc2e   :  { %5781 = vst [vmem:[#allocation17 + $0x18] sm:$0xff] %v5779_v37 }
 0xc2f   :  { %5794 = dma.vmem_to_hbm [thread:$0]  %s5787_s21, 512, %s5789_s5, [#allocation11], %s6516_s16, %s6516_s16, %s6517_s17  }
 0xc30   :  { %6412 = dma.done.wait [#allocation11], 512  }
 0xc31   :  { %6413 = vsyncadd [#allocation11], 4294966784 }
 0xc32   :  { %5799 = vsyncpa [#allocation10], 1 }
 0xc33   :  { %5800 = vsyncpa [#allocation13], 1 }
 0xc34   :  { %5801 = vsyncpa [#allocation16], 1 }
 0xc35   :  { %5802 = vsyncpa [#allocation11], 1 }

</bundles_post_ra>
